<compile_context>
chip_gen: v6e
topology: v6e:2x2x1
jax: 0.10.0
libtpu: 0.0.40
codegen_flags: <defaults>
</compile_context>

<pallas_src>
import functools

import jax
import jax.numpy as jnp
from jax.experimental import pallas as pl
from jax.experimental.pallas import tpu as pltpu

EPS = 1e-6


def ln_linear_kernel(x_ref, w_ref, b_ref, o_ref):
    # x_ref: (M, C)   f32  input rows (same block every grid step -> stays resident)
    # w_ref: (C, TN)  bf16 folded-weight tile (gamma already baked in)
    # b_ref: (1, TN)  f32  folded-bias tile (beta @ W^T + b)
    # o_ref: (M, TN)  f32  output tile
    x = x_ref[...]

    # LayerNorm statistics over the feature axis (biased variance, eps inside rsqrt,
    # matching PyTorch). Affine is folded into w/b, so only normalization remains.
    mean = jnp.mean(x, axis=-1, keepdims=True)
    centered = x - mean
    var = jnp.mean(centered * centered, axis=-1, keepdims=True)
    xn = centered * jax.lax.rsqrt(var + EPS)

    # MXU native bf16 path, f32 accumulation.
    acc = jnp.dot(xn.astype(jnp.bfloat16), w_ref[...],
                  preferred_element_type=jnp.float32)
    o_ref[...] = acc + b_ref[...]


def fold_params(gamma, beta, w_t, b):
    """Fold LayerNorm affine into the linear. Done ONCE (not per forward call).

    gamma/beta: (C,) f32;  w_t: (C, N) f32 (torch weight transposed);  b: (N,) f32.
    Returns bf16 folded weight (C, N) and f32 folded bias (1, N).
    """
    w_folded = (gamma[:, None].astype(jnp.float32) * w_t.astype(jnp.float32))
    b_folded = beta.astype(jnp.float32) @ w_t.astype(jnp.float32) + b.astype(jnp.float32)
    return w_folded.astype(jnp.bfloat16), b_folded.reshape(1, -1)


@functools.partial(jax.jit, static_argnames=("tile_n",))
def layernorm_linear(x, w_folded_bf16, b_folded, *, tile_n=768):
    """x: (B, H, W, C) f32; w_folded_bf16: (C, N) bf16; b_folded: (1, N) f32."""
    B, H, Wd, C = x.shape
    N = w_folded_bf16.shape[1]
    M = B * H * Wd
    assert N % tile_n == 0 and tile_n % 128 == 0
    n_tiles = N // tile_n

    x2d = x.reshape(M, C)

    cost = pl.CostEstimate(
        flops=2 * M * C * N + 8 * M * C,
        transcendentals=M,
        bytes_accessed=(M * C * 4) + (C * N * 2) + (N * 4) + (M * N * 4),
    )

    out2d = pl.pallas_call(
        ln_linear_kernel,
        out_shape=jax.ShapeDtypeStruct((M, N), jnp.float32),
        grid_spec=pltpu.PrefetchScalarGridSpec(
            num_scalar_prefetch=0,
            grid=(n_tiles,),
            in_specs=[
                # Row block equals the full first dim (196) -> legal without padding.
                pl.BlockSpec((M, C), lambda j: (0, 0)),          # x (resident)
                pl.BlockSpec((C, tile_n), lambda j: (0, j)),     # folded W tile (bf16)
                pl.BlockSpec((1, tile_n), lambda j: (0, j)),     # folded bias tile
            ],
            out_specs=pl.BlockSpec((M, tile_n), lambda j: (0, j)),
        ),
        compiler_params=pltpu.CompilerParams(
            # 2 independent N tiles: one per TensorCore on v7x; cheap 2-step loop on
            # single-TC v5e/v6e with double-buffered W DMA.
            dimension_semantics=("parallel",),
        ),
        cost_estimate=cost,
    )(x2d, w_folded_bf16, b_folded)

    return out2d.reshape(B, H, Wd, N)


def reference_f32(x, gamma, beta, w_t, b):
    xf = x.astype(jnp.float32)
    mean = jnp.mean(xf, axis=-1, keepdims=True)
    var = jnp.mean((xf - mean) ** 2, axis=-1, keepdims=True)
    xn = (xf - mean) / jnp.sqrt(var + EPS) * gamma + beta
    return jnp.dot(xn, w_t, precision=jax.lax.Precision.HIGHEST) + b


def reference_bf16_operands(x, gamma, beta, w_t, b):
    # Same math as the kernel: f32 LN stats, affine folded into W/b, bf16 matmul
    # operands, f32 accumulation.
    xf = x.astype(jnp.float32)
    mean = jnp.mean(xf, axis=-1, keepdims=True)
    var = jnp.mean((xf - mean) ** 2, axis=-1, keepdims=True)
    xhat = (xf - mean) / jnp.sqrt(var + EPS)
    w_folded = (gamma[:, None] * w_t).astype(jnp.bfloat16).astype(jnp.float32)
    b_folded = beta @ w_t + b
    xhat_b = xhat.astype(jnp.bfloat16).astype(jnp.float32)
    return jnp.dot(xhat_b, w_folded, precision=jax.lax.Precision.HIGHEST) + b_folded


if __name__ == "__main__":
    key = jax.random.PRNGKey(0)
    k_x, k_w, k_b, k_g, k_bt = jax.random.split(key, 5)

    B, H, W, C, N = 1, 14, 14, 384, 1536   # shapes implied by the module

    x = jax.random.normal(k_x, (B, H, W, C), dtype=jnp.float32)

    # torch Linear weight is (N, K); keep it transposed to (K, N) for row-major matmul.
    bound = 1.0 / (C ** 0.5)
    w_t = jax.random.uniform(k_w, (C, N), minval=-bound, maxval=bound, dtype=jnp.float32)
    b = jax.random.uniform(k_b, (N,), minval=-bound, maxval=bound, dtype=jnp.float32)
    # LayerNorm affine params (torch default ones/zeros; perturb to exercise the fold).
    gamma = 1.0 + 0.01 * jax.random.normal(k_g, (C,), dtype=jnp.float32)
    beta = 0.01 * jax.random.normal(k_bt, (C,), dtype=jnp.float32)

    # One-time parameter preparation (bf16 cast + affine fold) -- NOT per call.
    w_folded_bf16, b_folded = fold_params(gamma, beta, w_t, b)
    w_folded_bf16 = jax.block_until_ready(w_folded_bf16)
    b_folded = jax.block_until_ready(b_folded)

    out = layernorm_linear(x, w_folded_bf16, b_folded)
    out = jax.block_until_ready(out)
    assert out.shape == (B, H, W, N), out.shape

    # Tight check vs a reference using identical bf16-operand / f32-accumulate math.
    ref_b = reference_bf16_operands(x, gamma, beta, w_t, b)
    assert jnp.allclose(out, ref_b, atol=1e-3, rtol=1e-3), "mismatch vs bf16-operand reference"

    # Loose check vs the pure-f32 module semantics (bf16 weight rounding is the only delta).
    ref_f = reference_f32(x, gamma, beta, w_t, b)
    assert jnp.allclose(out, ref_f, atol=2e-2, rtol=2e-2), "mismatch vs f32 reference"

    print("KERNEL_OK")
</pallas_src>

<mosaic_0001>
module attributes {stable_mosaic.version = 11 : i64} {
  func.func @ln_linear_kernel(%arg0: i32, %arg1: memref<196x384xf32, #tpu.memory_space<vmem>>, %arg2: memref<384x768xbf16, #tpu.memory_space<vmem>>, %arg3: memref<1x768xf32, #tpu.memory_space<vmem>>, %arg4: memref<196x768xf32, #tpu.memory_space<vmem>>) attributes {dimension_semantics = [#tpu.dimension_semantics<parallel>], iteration_bounds = array<i64: 2>, scalar_prefetch = 0 : i64, scratch_operands = 0 : i64, tpu.core_type = #tpu.core_type<tc>, window_params = [{pipeline_mode = #tpu.pipeline_mode<synchronous>, transform_indices = @transform_0, window_bounds = array<i64: 196, 384>}, {transform_indices = @transform_1, window_bounds = array<i64: 384, 768>}, {transform_indices = @transform_2, window_bounds = array<i64: 1, 768>}, {transform_indices = @transform_3, window_bounds = array<i64: 196, 768>}]} {
    %c0 = arith.constant 0 : index
    %c0_0 = arith.constant 0 : index
    %0 = vector.load %arg1[%c0, %c0_0] : memref<196x384xf32, #tpu.memory_space<vmem>>, vector<196x384xf32>
    %cst = arith.constant dense<0.000000e+00> : vector<196xf32>
    %1 = vector.multi_reduction <add>, %0, %cst [1] : vector<196x384xf32> to vector<196xf32>
    %2 = vector.shape_cast %1 : vector<196xf32> to vector<196x1xf32>
    %cst_1 = arith.constant 3.840000e+02 : f32
    %3 = vector.broadcast %cst_1 : f32 to vector<196x1xf32>
    %4 = arith.divf %2, %3 : vector<196x1xf32>
    %5 = vector.broadcast %4 : vector<196x1xf32> to vector<196x384xf32>
    %6 = arith.subf %0, %5 : vector<196x384xf32>
    %7 = arith.mulf %6, %6 : vector<196x384xf32>
    %cst_2 = arith.constant dense<0.000000e+00> : vector<196xf32>
    %8 = vector.multi_reduction <add>, %7, %cst_2 [1] : vector<196x384xf32> to vector<196xf32>
    %9 = vector.shape_cast %8 : vector<196xf32> to vector<196x1xf32>
    %cst_3 = arith.constant 3.840000e+02 : f32
    %10 = vector.broadcast %cst_3 : f32 to vector<196x1xf32>
    %11 = arith.divf %9, %10 : vector<196x1xf32>
    %cst_4 = arith.constant 9.99999997E-7 : f32
    %12 = vector.broadcast %cst_4 : f32 to vector<196x1xf32>
    %13 = arith.addf %11, %12 : vector<196x1xf32>
    %14 = math.rsqrt %13 : vector<196x1xf32>
    %15 = vector.broadcast %14 : vector<196x1xf32> to vector<196x384xf32>
    %16 = arith.mulf %6, %15 : vector<196x384xf32>
    %17 = arith.truncf %16 : vector<196x384xf32> to vector<196x384xbf16>
    %c0_5 = arith.constant 0 : index
    %c0_6 = arith.constant 0 : index
    %18 = vector.load %arg2[%c0_5, %c0_6] : memref<384x768xbf16, #tpu.memory_space<vmem>>, vector<384x768xbf16>
    %cst_7 = arith.constant dense<0.000000e+00> : vector<196x768xf32>
    %19 = tpu.matmul %17, %18, %cst_7 {dimension_numbers = #tpu.dot_dimension_numbers<[1], [0], [0], [1], [0, 0, 1, 1], [], []>} : vector<196x384xbf16>, vector<384x768xbf16>, vector<196x768xf32> -> vector<196x768xf32>
    %c0_8 = arith.constant 0 : index
    %c0_9 = arith.constant 0 : index
    %20 = vector.load %arg3[%c0_8, %c0_9] : memref<1x768xf32, #tpu.memory_space<vmem>>, vector<1x768xf32>
    %21 = vector.broadcast %20 : vector<1x768xf32> to vector<196x768xf32>
    %22 = arith.addf %19, %21 : vector<196x768xf32>
    %c0_10 = arith.constant 0 : index
    %c0_11 = arith.constant 0 : index
    %23 = vector.load %arg4[%c0_10, %c0_11] : memref<196x768xf32, #tpu.memory_space<vmem>>, vector<196x768xf32>
    tpu.vector_store %arg4[%c0_10, %c0_11], %22 {strides = array<i32>} : memref<196x768xf32, #tpu.memory_space<vmem>>, vector<196x768xf32>,
    return
  }
  func.func @transform_0(%arg0: i32) -> (i32, i32) {
    %c0_i32 = arith.constant 0 : i32
    %c0_i32_0 = arith.constant 0 : i32
    %c0_i32_1 = arith.constant 0 : i32
    return %c0_i32, %c0_i32_0 : i32, i32
  }
  func.func @transform_1(%arg0: i32) -> (i32, i32) {
    %c0_i32 = arith.constant 0 : i32
    %c0_i32_0 = arith.constant 0 : i32
    return %c0_i32, %arg0 : i32, i32
  }
  func.func @transform_2(%arg0: i32) -> (i32, i32) {
    %c0_i32 = arith.constant 0 : i32
    %c0_i32_0 = arith.constant 0 : i32
    return %c0_i32, %arg0 : i32, i32
  }
  func.func @transform_3(%arg0: i32) -> (i32, i32) {
    %c0_i32 = arith.constant 0 : i32
    %c0_i32_0 = arith.constant 0 : i32
    return %c0_i32, %arg0 : i32, i32
  }
}

</mosaic_0001>

<bundles_post_ra>
// kernel: layernorm_linear.1
= control target key start
LH: loop header
LB: loop body
LE: loop exit
PB: predicated region body
PF: predicated region fallthrough
CT: control target
= control target key end

     0   :  { %s4053_s12 = smov 0   ;;  %s4055_s13 = smov 0   ;;  %s6409_s0 = inlined_call_operand.vmem [shape: f32[196,384], index: 0, kind: input, shape index: {}]   ;;  %s6410_s1 = inlined_call_operand.vmem [shape: bf16[384,1536], index: 1, kind: input, shape index: {}]   ;;  %s6411_s2 = inlined_call_operand.vmem [shape: f32[1,1536], index: 2, kind: input, shape index: {}]   ;;  %s6412_s3 = inlined_call_operand.vmem [shape: f32[196,1536], index: 3, kind: output, shape index: {}]  }
   0x1   :  { %s4057_s14 = smov 0  }
   0x2 LB: > { %s4069_s15 = sadd.s32 4294967295, %s4030_s14   ;;  %s4072_s16 = sadd.s32 1, %s4030_s14   ;;  %s4030_s14 = sphi %s4057_s14, %s6646_s14   ;;  %s4026_s13 = sphi %s4055_s13, %s6645_s13   ;;  %s4022_s12 = sphi %s4053_s12, %s6644_s12  }
   0x3   : > { %s38_s17 = ssub.s32 %s4030_s14, %s4072_s16  ;;  %s41_s18 = sadd.s32 1, %s4026_s13 }
   0x4   : > { %p39_p0 = scmp.eq.s32.totalorder %s38_s17, 0  ;;  %p48_p1 = scmp.ne.s32.totalorder %s4026_s13, %s4022_s12 }
   0x5   : > { %p49_p2 = scmp.eq.s32.totalorder %s4030_s14, 0  ;;  %p104_p3 = scmp.eq.s32.totalorder %s4069_s15, 1 }
   0x6   : > { %s4082_s19 = scalar_select %p39_p0, %s4026_s13, %s41_s18  }
   0x7   : > { %p50_p4 = por %p49_p2, %p48_p1  ;;  %p4084_p5 = por %p104_p3, %p48_p1 }
   0x8   : > { %p3545_p6 = scmp.ge.s32.totalorder %s4030_s14, 2 }
   0xa   : > { %129 = sbr.rel (%p3545_p6) target bundleno = 92 (0x5c), region = 20 }
   0xf   : > { %132 = sbr.rel (!%p50_p4) target bundleno = 92 (0x5c), region = 24  ;;  %s134_s21 = sand.u32 (%p50_p4), 1, %s4026_s13  }
  0x10   : > { %s3695_s22 = smul.u32 (%p50_p4), 24, %s4030_s14 }
  0x11   : > { %s3713_s23 = smul.u32 (%p50_p4), 1152, %s134_s21 }
  0x12   : > { %s4094_s26 = scalar_lea.vmem (%p50_p4), %s6410_s1, %s3695_s22 }
  0x13   : > { %v152_v0 = vld [vmem:[%s4094_s26] sm:$0xff] (%p50_p4)  ;;  %v154_v1 = vld [vmem:[%s4094_s26 + $0x8] sm:$0xff] (%p50_p4)  ;;  %v156_v2 = vld [vmem:[%s4094_s26 + $0x10] sm:$0xff] (%p50_p4)  ;;  %s4099_s27 = scalar_lea.vmem (%p50_p4), [#allocation2], %s3713_s23 }
  0x14   : > { %153 = vst [vmem:[%s4099_s27] sm:$0xff] %v152_v0  ;;  %155 = vst [vmem:[%s4099_s27 + $0x8] sm:$0xff] %v154_v1  ;;  %v158_v3 = vld [vmem:[%s4094_s26 + $0x30] sm:$0xff]  ;;  %v160_v4 = vld [vmem:[%s4094_s26 + $0x38] sm:$0xff] }
  0x15   : > { %157 = vst [vmem:[%s4099_s27 + $0x10] sm:$0xff] %v156_v2  ;;  %v162_v5 = vld [vmem:[%s4094_s26 + $0x40] sm:$0xff]  ;;  %159 = vst [vmem:[%s4099_s27 + $0x18] sm:$0xff] %v158_v3  ;;  %v166_v7 = vld [vmem:[%s4094_s26 + $0x68] sm:$0xff] }
  0x16   : > { %161 = vst [vmem:[%s4099_s27 + $0x20] sm:$0xff] %v160_v4  ;;  %163 = vst [vmem:[%s4099_s27 + $0x28] sm:$0xff] %v162_v5  ;;  %v164_v6 = vld [vmem:[%s4094_s26 + $0x60] sm:$0xff]  ;;  %v168_v8 = vld [vmem:[%s4094_s26 + $0x70] sm:$0xff] }
  0x17   : > { %165 = vst [vmem:[%s4099_s27 + $0x30] sm:$0xff] %v164_v6  ;;  %167 = vst [vmem:[%s4099_s27 + $0x38] sm:$0xff] %v166_v7  ;;  %v170_v9 = vld [vmem:[%s4094_s26 + $0x90] sm:$0xff]  ;;  %v172_v10 = vld [vmem:[%s4094_s26 + $0x98] sm:$0xff] }
  0x18   : > { %169 = vst [vmem:[%s4099_s27 + $0x40] sm:$0xff] %v168_v8  ;;  %v174_v11 = vld [vmem:[%s4094_s26 + $0xa0] sm:$0xff]  ;;  %171 = vst [vmem:[%s4099_s27 + $0x48] sm:$0xff] %v170_v9  ;;  %v178_v13 = vld [vmem:[%s4094_s26 + $0xc8] sm:$0xff] }
  0x19   : > { %173 = vst [vmem:[%s4099_s27 + $0x50] sm:$0xff] %v172_v10  ;;  %175 = vst [vmem:[%s4099_s27 + $0x58] sm:$0xff] %v174_v11  ;;  %v176_v12 = vld [vmem:[%s4094_s26 + $0xc0] sm:$0xff]  ;;  %v180_v14 = vld [vmem:[%s4094_s26 + $0xd0] sm:$0xff] }
  0x1a   : > { %177 = vst [vmem:[%s4099_s27 + $0x60] sm:$0xff] %v176_v12  ;;  %179 = vst [vmem:[%s4099_s27 + $0x68] sm:$0xff] %v178_v13  ;;  %v182_v15 = vld [vmem:[%s4094_s26 + $0xf0] sm:$0xff]  ;;  %v184_v16 = vld [vmem:[%s4094_s26 + $0xf8] sm:$0xff] }
  0x1b   : > { %181 = vst [vmem:[%s4099_s27 + $0x70] sm:$0xff] %v180_v14  ;;  %v186_v17 = vld [vmem:[%s4094_s26 + $0x100] sm:$0xff]  ;;  %183 = vst [vmem:[%s4099_s27 + $0x78] sm:$0xff] %v182_v15  ;;  %v190_v19 = vld [vmem:[%s4094_s26 + $0x128] sm:$0xff] }
  0x1c   : > { %185 = vst [vmem:[%s4099_s27 + $0x80] sm:$0xff] %v184_v16  ;;  %187 = vst [vmem:[%s4099_s27 + $0x88] sm:$0xff] %v186_v17  ;;  %v188_v18 = vld [vmem:[%s4094_s26 + $0x120] sm:$0xff]  ;;  %v192_v20 = vld [vmem:[%s4094_s26 + $0x130] sm:$0xff] }
  0x1d   : > { %189 = vst [vmem:[%s4099_s27 + $0x90] sm:$0xff] %v188_v18  ;;  %191 = vst [vmem:[%s4099_s27 + $0x98] sm:$0xff] %v190_v19  ;;  %v194_v21 = vld [vmem:[%s4094_s26 + $0x150] sm:$0xff]  ;;  %v196_v22 = vld [vmem:[%s4094_s26 + $0x158] sm:$0xff] }
  0x1e   : > { %193 = vst [vmem:[%s4099_s27 + $0xa0] sm:$0xff] %v192_v20  ;;  %v198_v23 = vld [vmem:[%s4094_s26 + $0x160] sm:$0xff]  ;;  %195 = vst [vmem:[%s4099_s27 + $0xa8] sm:$0xff] %v194_v21  ;;  %v202_v25 = vld [vmem:[%s4094_s26 + $0x188] sm:$0xff] }
  0x1f   : > { %197 = vst [vmem:[%s4099_s27 + $0xb0] sm:$0xff] %v196_v22  ;;  %199 = vst [vmem:[%s4099_s27 + $0xb8] sm:$0xff] %v198_v23  ;;  %v200_v24 = vld [vmem:[%s4094_s26 + $0x180] sm:$0xff]  ;;  %v204_v26 = vld [vmem:[%s4094_s26 + $0x190] sm:$0xff] }
  0x20   : > { %201 = vst [vmem:[%s4099_s27 + $0xc0] sm:$0xff] %v200_v24  ;;  %203 = vst [vmem:[%s4099_s27 + $0xc8] sm:$0xff] %v202_v25  ;;  %v206_v27 = vld [vmem:[%s4094_s26 + $0x1b0] sm:$0xff]  ;;  %v208_v28 = vld [vmem:[%s4094_s26 + $0x1b8] sm:$0xff] }
  0x21   : > { %205 = vst [vmem:[%s4099_s27 + $0xd0] sm:$0xff] %v204_v26  ;;  %v210_v29 = vld [vmem:[%s4094_s26 + $0x1c0] sm:$0xff]  ;;  %207 = vst [vmem:[%s4099_s27 + $0xd8] sm:$0xff] %v206_v27  ;;  %v214_v31 = vld [vmem:[%s4094_s26 + $0x1e8] sm:$0xff] }
  0x22   : > { %209 = vst [vmem:[%s4099_s27 + $0xe0] sm:$0xff] %v208_v28  ;;  %211 = vst [vmem:[%s4099_s27 + $0xe8] sm:$0xff] %v210_v29  ;;  %v212_v30 = vld [vmem:[%s4094_s26 + $0x1e0] sm:$0xff]  ;;  %v216_v32 = vld [vmem:[%s4094_s26 + $0x1f0] sm:$0xff] }
  0x23   : > { %213 = vst [vmem:[%s4099_s27 + $0xf0] sm:$0xff] %v212_v30  ;;  %215 = vst [vmem:[%s4099_s27 + $0xf8] sm:$0xff] %v214_v31  ;;  %v218_v33 = vld [vmem:[%s4094_s26 + $0x210] sm:$0xff]  ;;  %v220_v34 = vld [vmem:[%s4094_s26 + $0x218] sm:$0xff] }
  0x24   : > { %217 = vst [vmem:[%s4099_s27 + $0x100] sm:$0xff] %v216_v32  ;;  %v222_v35 = vld [vmem:[%s4094_s26 + $0x220] sm:$0xff]  ;;  %219 = vst [vmem:[%s4099_s27 + $0x108] sm:$0xff] %v218_v33  ;;  %v226_v37 = vld [vmem:[%s4094_s26 + $0x248] sm:$0xff] }
  0x25   : > { %221 = vst [vmem:[%s4099_s27 + $0x110] sm:$0xff] %v220_v34  ;;  %223 = vst [vmem:[%s4099_s27 + $0x118] sm:$0xff] %v222_v35  ;;  %v224_v36 = vld [vmem:[%s4094_s26 + $0x240] sm:$0xff]  ;;  %v228_v38 = vld [vmem:[%s4094_s26 + $0x250] sm:$0xff] }
  0x26   : > { %225 = vst [vmem:[%s4099_s27 + $0x120] sm:$0xff] %v224_v36  ;;  %227 = vst [vmem:[%s4099_s27 + $0x128] sm:$0xff] %v226_v37  ;;  %v230_v39 = vld [vmem:[%s4094_s26 + $0x270] sm:$0xff]  ;;  %v232_v40 = vld [vmem:[%s4094_s26 + $0x278] sm:$0xff] }
  0x27   : > { %229 = vst [vmem:[%s4099_s27 + $0x130] sm:$0xff] %v228_v38  ;;  %v234_v41 = vld [vmem:[%s4094_s26 + $0x280] sm:$0xff]  ;;  %231 = vst [vmem:[%s4099_s27 + $0x138] sm:$0xff] %v230_v39  ;;  %v238_v43 = vld [vmem:[%s4094_s26 + $0x2a8] sm:$0xff] }
  0x28   : > { %233 = vst [vmem:[%s4099_s27 + $0x140] sm:$0xff] %v232_v40  ;;  %235 = vst [vmem:[%s4099_s27 + $0x148] sm:$0xff] %v234_v41  ;;  %v236_v42 = vld [vmem:[%s4094_s26 + $0x2a0] sm:$0xff]  ;;  %v240_v44 = vld [vmem:[%s4094_s26 + $0x2b0] sm:$0xff] }
  0x29   : > { %237 = vst [vmem:[%s4099_s27 + $0x150] sm:$0xff] %v236_v42  ;;  %239 = vst [vmem:[%s4099_s27 + $0x158] sm:$0xff] %v238_v43  ;;  %v242_v45 = vld [vmem:[%s4094_s26 + $0x2d0] sm:$0xff]  ;;  %v244_v46 = vld [vmem:[%s4094_s26 + $0x2d8] sm:$0xff] }
  0x2a   : > { %241 = vst [vmem:[%s4099_s27 + $0x160] sm:$0xff] %v240_v44  ;;  %v246_v47 = vld [vmem:[%s4094_s26 + $0x2e0] sm:$0xff]  ;;  %243 = vst [vmem:[%s4099_s27 + $0x168] sm:$0xff] %v242_v45  ;;  %v250_v49 = vld [vmem:[%s4094_s26 + $0x308] sm:$0xff] }
  0x2b   : > { %245 = vst [vmem:[%s4099_s27 + $0x170] sm:$0xff] %v244_v46  ;;  %247 = vst [vmem:[%s4099_s27 + $0x178] sm:$0xff] %v246_v47  ;;  %v248_v48 = vld [vmem:[%s4094_s26 + $0x300] sm:$0xff]  ;;  %v252_v50 = vld [vmem:[%s4094_s26 + $0x310] sm:$0xff] }
  0x2c   : > { %249 = vst [vmem:[%s4099_s27 + $0x180] sm:$0xff] %v248_v48  ;;  %251 = vst [vmem:[%s4099_s27 + $0x188] sm:$0xff] %v250_v49  ;;  %v254_v51 = vld [vmem:[%s4094_s26 + $0x330] sm:$0xff]  ;;  %v256_v52 = vld [vmem:[%s4094_s26 + $0x338] sm:$0xff] }
  0x2d   : > { %253 = vst [vmem:[%s4099_s27 + $0x190] sm:$0xff] %v252_v50  ;;  %v258_v53 = vld [vmem:[%s4094_s26 + $0x340] sm:$0xff]  ;;  %255 = vst [vmem:[%s4099_s27 + $0x198] sm:$0xff] %v254_v51  ;;  %v262_v55 = vld [vmem:[%s4094_s26 + $0x368] sm:$0xff] }
  0x2e   : > { %257 = vst [vmem:[%s4099_s27 + $0x1a0] sm:$0xff] %v256_v52  ;;  %259 = vst [vmem:[%s4099_s27 + $0x1a8] sm:$0xff] %v258_v53  ;;  %v260_v54 = vld [vmem:[%s4094_s26 + $0x360] sm:$0xff]  ;;  %v264_v56 = vld [vmem:[%s4094_s26 + $0x370] sm:$0xff] }
  0x2f   : > { %261 = vst [vmem:[%s4099_s27 + $0x1b0] sm:$0xff] %v260_v54  ;;  %263 = vst [vmem:[%s4099_s27 + $0x1b8] sm:$0xff] %v262_v55  ;;  %v266_v57 = vld [vmem:[%s4094_s26 + $0x390] sm:$0xff]  ;;  %v268_v58 = vld [vmem:[%s4094_s26 + $0x398] sm:$0xff] }
  0x30   : > { %265 = vst [vmem:[%s4099_s27 + $0x1c0] sm:$0xff] %v264_v56  ;;  %v270_v59 = vld [vmem:[%s4094_s26 + $0x3a0] sm:$0xff]  ;;  %267 = vst [vmem:[%s4099_s27 + $0x1c8] sm:$0xff] %v266_v57  ;;  %v274_v61 = vld [vmem:[%s4094_s26 + $0x3c8] sm:$0xff] }
  0x31   : > { %269 = vst [vmem:[%s4099_s27 + $0x1d0] sm:$0xff] %v268_v58  ;;  %271 = vst [vmem:[%s4099_s27 + $0x1d8] sm:$0xff] %v270_v59  ;;  %v272_v60 = vld [vmem:[%s4094_s26 + $0x3c0] sm:$0xff]  ;;  %v276_v62 = vld [vmem:[%s4094_s26 + $0x3d0] sm:$0xff] }
  0x32   : > { %273 = vst [vmem:[%s4099_s27 + $0x1e0] sm:$0xff] %v272_v60  ;;  %275 = vst [vmem:[%s4099_s27 + $0x1e8] sm:$0xff] %v274_v61  ;;  %v278_v63 = vld [vmem:[%s4094_s26 + $0x3f0] sm:$0xff]  ;;  %v280_v0 = vld [vmem:[%s4094_s26 + $0x3f8] sm:$0xff] }
  0x33   : > { %277 = vst [vmem:[%s4099_s27 + $0x1f0] sm:$0xff] %v276_v62  ;;  %v282_v1 = vld [vmem:[%s4094_s26 + $0x400] sm:$0xff]  ;;  %279 = vst [vmem:[%s4099_s27 + $0x1f8] sm:$0xff] %v278_v63  ;;  %v286_v3 = vld [vmem:[%s4094_s26 + $0x428] sm:$0xff] }
  0x34   : > { %281 = vst [vmem:[%s4099_s27 + $0x200] sm:$0xff] %v280_v0  ;;  %283 = vst [vmem:[%s4099_s27 + $0x208] sm:$0xff] %v282_v1  ;;  %v284_v2 = vld [vmem:[%s4094_s26 + $0x420] sm:$0xff]  ;;  %v288_v4 = vld [vmem:[%s4094_s26 + $0x430] sm:$0xff] }
  0x35   : > { %285 = vst [vmem:[%s4099_s27 + $0x210] sm:$0xff] %v284_v2  ;;  %287 = vst [vmem:[%s4099_s27 + $0x218] sm:$0xff] %v286_v3  ;;  %v290_v5 = vld [vmem:[%s4094_s26 + $0x450] sm:$0xff]  ;;  %v292_v6 = vld [vmem:[%s4094_s26 + $0x458] sm:$0xff] }
  0x36   : > { %289 = vst [vmem:[%s4099_s27 + $0x220] sm:$0xff] %v288_v4  ;;  %v294_v7 = vld [vmem:[%s4094_s26 + $0x460] sm:$0xff]  ;;  %291 = vst [vmem:[%s4099_s27 + $0x228] sm:$0xff] %v290_v5  ;;  %v298_v9 = vld [vmem:[%s4094_s26 + $0x488] sm:$0xff] }
  0x37   : > { %293 = vst [vmem:[%s4099_s27 + $0x230] sm:$0xff] %v292_v6  ;;  %295 = vst [vmem:[%s4099_s27 + $0x238] sm:$0xff] %v294_v7  ;;  %v296_v8 = vld [vmem:[%s4094_s26 + $0x480] sm:$0xff]  ;;  %v300_v10 = vld [vmem:[%s4094_s26 + $0x490] sm:$0xff] }
  0x38   : > { %297 = vst [vmem:[%s4099_s27 + $0x240] sm:$0xff] %v296_v8  ;;  %299 = vst [vmem:[%s4099_s27 + $0x248] sm:$0xff] %v298_v9  ;;  %v302_v11 = vld [vmem:[%s4094_s26 + $0x4b0] sm:$0xff]  ;;  %v304_v12 = vld [vmem:[%s4094_s26 + $0x4b8] sm:$0xff] }
  0x39   : > { %301 = vst [vmem:[%s4099_s27 + $0x250] sm:$0xff] %v300_v10  ;;  %v306_v13 = vld [vmem:[%s4094_s26 + $0x4c0] sm:$0xff]  ;;  %303 = vst [vmem:[%s4099_s27 + $0x258] sm:$0xff] %v302_v11  ;;  %v310_v15 = vld [vmem:[%s4094_s26 + $0x4e8] sm:$0xff] }
  0x3a   : > { %305 = vst [vmem:[%s4099_s27 + $0x260] sm:$0xff] %v304_v12  ;;  %307 = vst [vmem:[%s4099_s27 + $0x268] sm:$0xff] %v306_v13  ;;  %v308_v14 = vld [vmem:[%s4094_s26 + $0x4e0] sm:$0xff]  ;;  %v312_v16 = vld [vmem:[%s4094_s26 + $0x4f0] sm:$0xff] }
  0x3b   : > { %309 = vst [vmem:[%s4099_s27 + $0x270] sm:$0xff] %v308_v14  ;;  %311 = vst [vmem:[%s4099_s27 + $0x278] sm:$0xff] %v310_v15  ;;  %v314_v17 = vld [vmem:[%s4094_s26 + $0x510] sm:$0xff]  ;;  %v316_v18 = vld [vmem:[%s4094_s26 + $0x518] sm:$0xff] }
  0x3c   : > { %313 = vst [vmem:[%s4099_s27 + $0x280] sm:$0xff] %v312_v16  ;;  %v318_v19 = vld [vmem:[%s4094_s26 + $0x520] sm:$0xff]  ;;  %315 = vst [vmem:[%s4099_s27 + $0x288] sm:$0xff] %v314_v17  ;;  %v322_v21 = vld [vmem:[%s4094_s26 + $0x548] sm:$0xff] }
  0x3d   : > { %317 = vst [vmem:[%s4099_s27 + $0x290] sm:$0xff] %v316_v18  ;;  %319 = vst [vmem:[%s4099_s27 + $0x298] sm:$0xff] %v318_v19  ;;  %v320_v20 = vld [vmem:[%s4094_s26 + $0x540] sm:$0xff]  ;;  %v324_v22 = vld [vmem:[%s4094_s26 + $0x550] sm:$0xff] }
  0x3e   : > { %321 = vst [vmem:[%s4099_s27 + $0x2a0] sm:$0xff] %v320_v20  ;;  %323 = vst [vmem:[%s4099_s27 + $0x2a8] sm:$0xff] %v322_v21  ;;  %v326_v23 = vld [vmem:[%s4094_s26 + $0x570] sm:$0xff]  ;;  %v328_v24 = vld [vmem:[%s4094_s26 + $0x578] sm:$0xff] }
  0x3f   : > { %325 = vst [vmem:[%s4099_s27 + $0x2b0] sm:$0xff] %v324_v22  ;;  %v330_v25 = vld [vmem:[%s4094_s26 + $0x580] sm:$0xff]  ;;  %327 = vst [vmem:[%s4099_s27 + $0x2b8] sm:$0xff] %v326_v23  ;;  %v334_v27 = vld [vmem:[%s4094_s26 + $0x5a8] sm:$0xff] }
  0x40   : > { %329 = vst [vmem:[%s4099_s27 + $0x2c0] sm:$0xff] %v328_v24  ;;  %331 = vst [vmem:[%s4099_s27 + $0x2c8] sm:$0xff] %v330_v25  ;;  %v332_v26 = vld [vmem:[%s4094_s26 + $0x5a0] sm:$0xff]  ;;  %v336_v28 = vld [vmem:[%s4094_s26 + $0x5b0] sm:$0xff] }
  0x41   : > { %333 = vst [vmem:[%s4099_s27 + $0x2d0] sm:$0xff] %v332_v26  ;;  %335 = vst [vmem:[%s4099_s27 + $0x2d8] sm:$0xff] %v334_v27  ;;  %v338_v29 = vld [vmem:[%s4094_s26 + $0x5d0] sm:$0xff]  ;;  %v340_v30 = vld [vmem:[%s4094_s26 + $0x5d8] sm:$0xff] }
  0x42   : > { %337 = vst [vmem:[%s4099_s27 + $0x2e0] sm:$0xff] %v336_v28  ;;  %v342_v31 = vld [vmem:[%s4094_s26 + $0x5e0] sm:$0xff]  ;;  %339 = vst [vmem:[%s4099_s27 + $0x2e8] sm:$0xff] %v338_v29  ;;  %v346_v33 = vld [vmem:[%s4094_s26 + $0x608] sm:$0xff] }
  0x43   : > { %341 = vst [vmem:[%s4099_s27 + $0x2f0] sm:$0xff] %v340_v30  ;;  %343 = vst [vmem:[%s4099_s27 + $0x2f8] sm:$0xff] %v342_v31  ;;  %v344_v32 = vld [vmem:[%s4094_s26 + $0x600] sm:$0xff]  ;;  %v348_v34 = vld [vmem:[%s4094_s26 + $0x610] sm:$0xff] }
  0x44   : > { %345 = vst [vmem:[%s4099_s27 + $0x300] sm:$0xff] %v344_v32  ;;  %347 = vst [vmem:[%s4099_s27 + $0x308] sm:$0xff] %v346_v33  ;;  %v350_v35 = vld [vmem:[%s4094_s26 + $0x630] sm:$0xff]  ;;  %v352_v36 = vld [vmem:[%s4094_s26 + $0x638] sm:$0xff] }
  0x45   : > { %349 = vst [vmem:[%s4099_s27 + $0x310] sm:$0xff] %v348_v34  ;;  %v354_v37 = vld [vmem:[%s4094_s26 + $0x640] sm:$0xff]  ;;  %351 = vst [vmem:[%s4099_s27 + $0x318] sm:$0xff] %v350_v35  ;;  %v358_v39 = vld [vmem:[%s4094_s26 + $0x668] sm:$0xff] }
  0x46   : > { %353 = vst [vmem:[%s4099_s27 + $0x320] sm:$0xff] %v352_v36  ;;  %355 = vst [vmem:[%s4099_s27 + $0x328] sm:$0xff] %v354_v37  ;;  %v356_v38 = vld [vmem:[%s4094_s26 + $0x660] sm:$0xff]  ;;  %v360_v40 = vld [vmem:[%s4094_s26 + $0x670] sm:$0xff] }
  0x47   : > { %357 = vst [vmem:[%s4099_s27 + $0x330] sm:$0xff] %v356_v38  ;;  %359 = vst [vmem:[%s4099_s27 + $0x338] sm:$0xff] %v358_v39  ;;  %v362_v41 = vld [vmem:[%s4094_s26 + $0x690] sm:$0xff]  ;;  %v364_v42 = vld [vmem:[%s4094_s26 + $0x698] sm:$0xff] }
  0x48   : > { %361 = vst [vmem:[%s4099_s27 + $0x340] sm:$0xff] %v360_v40  ;;  %v366_v43 = vld [vmem:[%s4094_s26 + $0x6a0] sm:$0xff]  ;;  %363 = vst [vmem:[%s4099_s27 + $0x348] sm:$0xff] %v362_v41  ;;  %v370_v45 = vld [vmem:[%s4094_s26 + $0x6c8] sm:$0xff] }
  0x49   : > { %365 = vst [vmem:[%s4099_s27 + $0x350] sm:$0xff] %v364_v42  ;;  %367 = vst [vmem:[%s4099_s27 + $0x358] sm:$0xff] %v366_v43  ;;  %v368_v44 = vld [vmem:[%s4094_s26 + $0x6c0] sm:$0xff]  ;;  %v372_v46 = vld [vmem:[%s4094_s26 + $0x6d0] sm:$0xff] }
  0x4a   : > { %369 = vst [vmem:[%s4099_s27 + $0x360] sm:$0xff] %v368_v44  ;;  %371 = vst [vmem:[%s4099_s27 + $0x368] sm:$0xff] %v370_v45  ;;  %v374_v47 = vld [vmem:[%s4094_s26 + $0x6f0] sm:$0xff]  ;;  %v376_v48 = vld [vmem:[%s4094_s26 + $0x6f8] sm:$0xff] }
  0x4b   : > { %373 = vst [vmem:[%s4099_s27 + $0x370] sm:$0xff] %v372_v46  ;;  %v378_v49 = vld [vmem:[%s4094_s26 + $0x700] sm:$0xff]  ;;  %375 = vst [vmem:[%s4099_s27 + $0x378] sm:$0xff] %v374_v47  ;;  %v382_v51 = vld [vmem:[%s4094_s26 + $0x728] sm:$0xff] }
  0x4c   : > { %377 = vst [vmem:[%s4099_s27 + $0x380] sm:$0xff] %v376_v48  ;;  %379 = vst [vmem:[%s4099_s27 + $0x388] sm:$0xff] %v378_v49  ;;  %v380_v50 = vld [vmem:[%s4094_s26 + $0x720] sm:$0xff]  ;;  %v384_v52 = vld [vmem:[%s4094_s26 + $0x730] sm:$0xff] }
  0x4d   : > { %381 = vst [vmem:[%s4099_s27 + $0x390] sm:$0xff] %v380_v50  ;;  %383 = vst [vmem:[%s4099_s27 + $0x398] sm:$0xff] %v382_v51  ;;  %v386_v53 = vld [vmem:[%s4094_s26 + $0x750] sm:$0xff]  ;;  %v388_v54 = vld [vmem:[%s4094_s26 + $0x758] sm:$0xff] }
  0x4e   : > { %385 = vst [vmem:[%s4099_s27 + $0x3a0] sm:$0xff] %v384_v52  ;;  %v390_v55 = vld [vmem:[%s4094_s26 + $0x760] sm:$0xff]  ;;  %387 = vst [vmem:[%s4099_s27 + $0x3a8] sm:$0xff] %v386_v53  ;;  %v394_v57 = vld [vmem:[%s4094_s26 + $0x788] sm:$0xff] }
  0x4f   : > { %389 = vst [vmem:[%s4099_s27 + $0x3b0] sm:$0xff] %v388_v54  ;;  %391 = vst [vmem:[%s4099_s27 + $0x3b8] sm:$0xff] %v390_v55  ;;  %v392_v56 = vld [vmem:[%s4094_s26 + $0x780] sm:$0xff]  ;;  %v396_v58 = vld [vmem:[%s4094_s26 + $0x790] sm:$0xff] }
  0x50   : > { %393 = vst [vmem:[%s4099_s27 + $0x3c0] sm:$0xff] %v392_v56  ;;  %395 = vst [vmem:[%s4099_s27 + $0x3c8] sm:$0xff] %v394_v57  ;;  %v398_v59 = vld [vmem:[%s4094_s26 + $0x7b0] sm:$0xff]  ;;  %v400_v60 = vld [vmem:[%s4094_s26 + $0x7b8] sm:$0xff] }
  0x51   : > { %397 = vst [vmem:[%s4099_s27 + $0x3d0] sm:$0xff] %v396_v58  ;;  %v402_v61 = vld [vmem:[%s4094_s26 + $0x7c0] sm:$0xff]  ;;  %399 = vst [vmem:[%s4099_s27 + $0x3d8] sm:$0xff] %v398_v59  ;;  %v406_v63 = vld [vmem:[%s4094_s26 + $0x7e8] sm:$0xff] }
  0x52   : > { %401 = vst [vmem:[%s4099_s27 + $0x3e0] sm:$0xff] %v400_v60  ;;  %403 = vst [vmem:[%s4099_s27 + $0x3e8] sm:$0xff] %v402_v61  ;;  %v404_v62 = vld [vmem:[%s4094_s26 + $0x7e0] sm:$0xff]  ;;  %v408_v0 = vld [vmem:[%s4094_s26 + $0x7f0] sm:$0xff] }
  0x53   : > { %405 = vst [vmem:[%s4099_s27 + $0x3f0] sm:$0xff] %v404_v62  ;;  %407 = vst [vmem:[%s4099_s27 + $0x3f8] sm:$0xff] %v406_v63  ;;  %v410_v1 = vld [vmem:[%s4094_s26 + $0x810] sm:$0xff]  ;;  %v412_v2 = vld [vmem:[%s4094_s26 + $0x818] sm:$0xff] }
  0x54   : > { %409 = vst [vmem:[%s4099_s27 + $0x400] sm:$0xff] %v408_v0  ;;  %v414_v3 = vld [vmem:[%s4094_s26 + $0x820] sm:$0xff]  ;;  %411 = vst [vmem:[%s4099_s27 + $0x408] sm:$0xff] %v410_v1  ;;  %v418_v5 = vld [vmem:[%s4094_s26 + $0x848] sm:$0xff] }
  0x55   : > { %413 = vst [vmem:[%s4099_s27 + $0x410] sm:$0xff] %v412_v2  ;;  %415 = vst [vmem:[%s4099_s27 + $0x418] sm:$0xff] %v414_v3  ;;  %v416_v4 = vld [vmem:[%s4094_s26 + $0x840] sm:$0xff]  ;;  %v420_v6 = vld [vmem:[%s4094_s26 + $0x850] sm:$0xff] }
  0x56   : > { %417 = vst [vmem:[%s4099_s27 + $0x420] sm:$0xff] %v416_v4  ;;  %419 = vst [vmem:[%s4099_s27 + $0x428] sm:$0xff] %v418_v5  ;;  %v422_v7 = vld [vmem:[%s4094_s26 + $0x870] sm:$0xff]  ;;  %v424_v8 = vld [vmem:[%s4094_s26 + $0x878] sm:$0xff] }
  0x57   : > { %421 = vst [vmem:[%s4099_s27 + $0x430] sm:$0xff] %v420_v6  ;;  %v426_v9 = vld [vmem:[%s4094_s26 + $0x880] sm:$0xff]  ;;  %423 = vst [vmem:[%s4099_s27 + $0x438] sm:$0xff] %v422_v7  ;;  %v430_v11 = vld [vmem:[%s4094_s26 + $0x8a8] sm:$0xff] }
  0x58   : > { %425 = vst [vmem:[%s4099_s27 + $0x440] sm:$0xff] %v424_v8  ;;  %427 = vst [vmem:[%s4099_s27 + $0x448] sm:$0xff] %v426_v9  ;;  %v428_v10 = vld [vmem:[%s4094_s26 + $0x8a0] sm:$0xff]  ;;  %v432_v12 = vld [vmem:[%s4094_s26 + $0x8b0] sm:$0xff] }
  0x59   : > { %429 = vst [vmem:[%s4099_s27 + $0x450] sm:$0xff] %v428_v10  ;;  %431 = vst [vmem:[%s4099_s27 + $0x458] sm:$0xff] %v430_v11  ;;  %v434_v13 = vld [vmem:[%s4094_s26 + $0x8d0] sm:$0xff]  ;;  %v436_v14 = vld [vmem:[%s4094_s26 + $0x8d8] sm:$0xff] }
  0x5a   : > { %433 = vst [vmem:[%s4099_s27 + $0x460] sm:$0xff] %v432_v12  ;;  %v438_v15 = vld [vmem:[%s4094_s26 + $0x8e0] sm:$0xff]  ;;  %435 = vst [vmem:[%s4099_s27 + $0x468] sm:$0xff] %v434_v13 }
  0x5b   : > { %437 = vst [vmem:[%s4099_s27 + $0x470] sm:$0xff] %v436_v14  ;;  %439 = vst [vmem:[%s4099_s27 + $0x478] sm:$0xff] %v438_v15 }
  0x5c PF: > { %p3547_p7 = scmp.ge.s32.totalorder %s4030_s14, 1  ;;  %p452_p8 = scmp.lt.s32.totalorder %s4030_s14, 3 }
  0x5e   : > { %p453_p9 = pnand %p3547_p7, %p452_p8 }
  0x60   : > { %456 = sbr.rel (%p453_p9) target bundleno = 1042 (0x412), region = 51 }
  0x65   : > { %v4391_v16 = vld [vmem:[%s6409_s0] sm:$0xff]  ;;  %v4396_v17 = vld [vmem:[%s6409_s0 + $0x8] sm:$0xff]  ;;  %v4401_v18 = vld [vmem:[%s6409_s0 + $0x10] sm:$0xff]  ;;  %s459_s7 = sand.u32 1, %s4022_s12   ;;  %vm664_vm0 = vcmask 1043456  }
  0x66   : > { %v568_v19 = vadd.f32 %v4396_v17, %v4391_v16  ;;  %v4408_v20 = vld [vmem:[%s6409_s0 + $0x18] sm:$0xff]  ;;  %v4413_v21 = vld [vmem:[%s6409_s0 + $0x20] sm:$0xff]  ;;  %v4418_v22 = vld [vmem:[%s6409_s0 + $0x28] sm:$0xff]  ;;  %s3714_s8 = smul.u32 1152, %s459_s7 }
  0x67   : > { %v572_v23 = vadd.f32 %v4413_v21, %v4408_v20  ;;  %v4425_v24 = vld [vmem:[%s6409_s0 + $0x30] sm:$0xff]  ;;  %v4430_v25 = vld [vmem:[%s6409_s0 + $0x38] sm:$0xff]  ;;  %v4435_v26 = vld [vmem:[%s6409_s0 + $0x40] sm:$0xff]  ;;  %s3715_s18 = smul.u32 1200, %s459_s7 }
  0x68   : > { %v569_v27 = vadd.f32 %v568_v19, %v4401_v18  ;;  %v576_v28 = vadd.f32 %v4430_v25, %v4425_v24  ;;  %v4443_v29 = vld [vmem:[%s6409_s0 + $0x48] sm:$0xff]  ;;  %v4448_v30 = vld [vmem:[%s6409_s0 + $0x50] sm:$0xff]  ;;  %v4453_v31 = vld [vmem:[%s6409_s0 + $0x58] sm:$0xff]  ;;  %s4787_s9 = scalar_lea.vmem [#allocation2], %s3714_s8  ;;  %s486_s8 = smul.u32 6, %s4069_s15 }
  0x69   : > { %v580_v32 = vadd.f32 %v4448_v30, %v4443_v29  ;;  %v4460_v33 = vld [vmem:[%s6409_s0 + $0x78] sm:$0xff]  ;;  %v4465_v34 = vld [vmem:[%s6409_s0 + $0x80] sm:$0xff]  ;;  %v573_v35 = vadd.f32 %v572_v23, %v4418_v22  ;;  %v4477_v38 = vld [vmem:[%s6409_s0 + $0x68] sm:$0xff]  ;;  %s5658_s12 = scalar_lea.vmem [#allocation3], %s3715_s18  ;;  %s3696_s7 = smul.u32 (%p4084_p5), 48, %s4069_s15 }
  0x6a   : > { %570 = vadd.xlane.f32.xlu0 %v569_v27  ;;  %v577_v36 = vadd.f32 %v576_v28, %v4435_v26  ;;  %v4472_v37 = vld [vmem:[%s6409_s0 + $0x60] sm:$0xff]  ;;  %v4482_v39 = vld [vmem:[%s6409_s0 + $0x70] sm:$0xff]  ;;  %v588_v42 = vadd.f32 %v4465_v34, %v4460_v33  ;;  %v4497_v44 = vld [vmem:[%s6409_s0 + $0x98] sm:$0xff]  ;;  %p5563_p10 = scmp.lt.s32.totalorder %s486_s8, 11 }
  0x6b   : > { %v584_v40 = vadd.f32 %v4477_v38, %v4472_v37  ;;  %v581_v41 = vadd.f32 %v580_v32, %v4453_v31  ;;  %v4492_v43 = vld [vmem:[%s6409_s0 + $0x90] sm:$0xff]  ;;  %v4502_v45 = vld [vmem:[%s6409_s0 + $0x88] sm:$0xff]  ;;  %v4520_v50 = vld [vmem:[%s6409_s0 + $0xa0] sm:$0xff]  ;;  %s6103_s21 = scalar_lea.vmem (%p4084_p5), %s6412_s3, %s3696_s7 }
  0x6c   : > { %578 = vadd.xlane.f32.xlu1 %v577_v36  ;;  %v4507_v46 = vld [vmem:[%s6409_s0 + $0xa8] sm:$0xff]  ;;  %v4512_v47 = vld [vmem:[%s6409_s0 + $0xb0] sm:$0xff]  ;;  %v592_v49 = vadd.f32 %v4497_v44, %v4492_v43  ;;  %v4525_v51 = vld [vmem:[%s6409_s0 + $0xc0] sm:$0xff]  ;;  %v589_v53 = vadd.f32 %v588_v42, %v4502_v45  ;;  %s6648_s8 = smov (!%p5563_p10, %s486_s8), 11 }
  0x6d   : > { %v585_v48 = vadd.f32 %v584_v40, %v4482_v39  ;;  %v4530_v52 = vld [vmem:[%s6409_s0 + $0xc8] sm:$0xff]  ;;  %v596_v54 = vadd.f32 %v4512_v47, %v4507_v46  ;;  %v4538_v55 = vld [vmem:[%s6409_s0 + $0xb8] sm:$0xff]  ;;  %v4548_v57 = vld [vmem:[%s6409_s0 + $0xe0] sm:$0xff]  ;;  %s5598_s17 = scalar_lea.vmem %s6411_s2, %s6648_s8 }
  0x6e   : > { %574 = vadd.xlane.f32.xlu0 %v573_v35  ;;  %v4543_v56 = vld [vmem:[%s6409_s0 + $0xd8] sm:$0xff]  ;;  %v593_v58 = vadd.f32 %v592_v49, %v4520_v50  ;;  %v600_v59 = vadd.f32 %v4530_v52, %v4525_v51  ;;  %v4556_v60 = vld [vmem:[%s6409_s0 + $0xd0] sm:$0xff]  ;;  %v4574_v1 = vld [vmem:[%s6409_s0 + $0xe8] sm:$0xff] }
  0x6f   : > { %v4561_v61 = vld [vmem:[%s6409_s0 + $0xf0] sm:$0xff]  ;;  %v4566_v62 = vld [vmem:[%s6409_s0 + $0xf8] sm:$0xff]  ;;  %v597_v63 = vadd.f32 %v596_v54, %v4538_v55  ;;  %v604_v0 = vadd.f32 %v4548_v57, %v4543_v56  ;;  %v4579_v2 = vld [vmem:[%s6409_s0 + $0x108] sm:$0xff] }
  0x70   : > { %582 = vadd.xlane.f32.xlu1 %v581_v41  ;;  %v4584_v3 = vld [vmem:[%s6409_s0 + $0x110] sm:$0xff]  ;;  %v601_v4 = vadd.f32 %v600_v59, %v4556_v60  ;;  %v608_v5 = vadd.f32 %v4566_v62, %v4561_v61  ;;  %v4592_v6 = vld [vmem:[%s6409_s0 + $0x100] sm:$0xff]  ;;  %v4602_v8 = vld [vmem:[%s6409_s0 + $0x128] sm:$0xff] }
  0x71   : > { %v4597_v7 = vld [vmem:[%s6409_s0 + $0x120] sm:$0xff]  ;;  %v605_v9 = vadd.f32 %v604_v0, %v4574_v1  ;;  %v612_v10 = vadd.f32 %v4584_v3, %v4579_v2  ;;  %v4610_v11 = vld [vmem:[%s6409_s0 + $0x118] sm:$0xff]  ;;  %v4628_v19 = vld [vmem:[%s6409_s0 + $0x130] sm:$0xff] }
  0x72   : > { %586 = vadd.xlane.f32.xlu0 %v585_v48  ;;  %v4615_v12 = vld [vmem:[%s6409_s0 + $0x138] sm:$0xff]  ;;  %v4620_v13 = vld [vmem:[%s6409_s0 + $0x140] sm:$0xff]  ;;  %v609_v14 = vadd.f32 %v608_v5, %v4592_v6  ;;  %v616_v15 = vadd.f32 %v4602_v8, %v4597_v7  ;;  %v4633_v23 = vld [vmem:[%s6409_s0 + $0x150] sm:$0xff] }
  0x73   : > { %v4638_v27 = vld [vmem:[%s6409_s0 + $0x158] sm:$0xff]  ;;  %v613_v28 = vadd.f32 %v612_v10, %v4610_v11  ;;  %v620_v32 = vadd.f32 %v4620_v13, %v4615_v12  ;;  %v4646_v35 = vld [vmem:[%s6409_s0 + $0x148] sm:$0xff]  ;;  %v4656_v40 = vld [vmem:[%s6409_s0 + $0x170] sm:$0xff] }
  0x74   : > { %590 = vadd.xlane.f32.xlu1 %v589_v53  ;;  %6494 = vst [vmem:[#allocation4_spill] sm:$0xff] %v4638_v27  ;;  %v4651_v36 = vld [vmem:[%s6409_s0 + $0x168] sm:$0xff]  ;;  %v617_v41 = vadd.f32 %v616_v15, %v4628_v19  ;;  %v624_v42 = vadd.f32 %v4638_v27, %v4633_v23  ;;  %v4664_v48 = vld [vmem:[%s6409_s0 + $0x160] sm:$0xff]  ;;  %v4682_v59 = vld [vmem:[%s6409_s0 + $0x178] sm:$0xff] }
  0x75   : > { %6495 = vst [vmem:[#allocation5_spill] sm:$0xff] %v4664_v48  ;;  %v4669_v49 = vld [vmem:[%s6409_s0 + $0x180] sm:$0xff]  ;;  %v4674_v53 = vld [vmem:[%s6409_s0 + $0x188] sm:$0xff]  ;;  %v621_v54 = vadd.f32 %v620_v32, %v4646_v35  ;;  %v4705_v10 = vld [vmem:[%s6409_s0 + $0x1b0] sm:$0xff] }
  0x76   : > { %594 = vadd.xlane.f32.xlu0 %v593_v58  ;;  %6496 = vst [vmem:[#allocation6_spill] sm:$0xff] %v4669_v49  ;;  %6497 = vst [vmem:[#allocation7_spill] sm:$0xff] %v4674_v53  ;;  %v628_v58 = vadd.f32 %v4656_v40, %v4651_v36  ;;  %v4692_v0 = vld [vmem:[%s6409_s0 + $0x1a0] sm:$0xff]  ;;  %v632_v5 = vadd.f32 %v4674_v53, %v4669_v49  ;;  %v4718_v32 = vld [vmem:[%s6409_s0 + $0x1a8] sm:$0xff] }
  0x77   : > { %6499 = vst [vmem:[#allocation9_spill] sm:$0xff] %v4692_v0  ;;  %6501 = vst [vmem:[#allocation11_spill] sm:$0xff] %v4705_v10  ;;  %v4736_v53 = vld [vmem:[%s6409_s0 + $0x1c0] sm:$0xff] }
  0x78   : > { %598 = vadd.xlane.f32.xlu1 %v597_v63  ;;  %v4687_v63 = vld [vmem:[%s6409_s0 + $0x198] sm:$0xff]  ;;  %v629_v15 = vadd.f32 %v628_v58, %v4682_v59  ;;  %6503 = vst [vmem:[#allocation13_spill] sm:$0xff] %v4718_v32  ;;  %6506 = vst [vmem:[#allocation16_spill] sm:$0xff] %v4736_v53  ;;  %v4741_v49 = vld [vmem:[%s6409_s0 + $0x1e0] sm:$0xff] }
  0x79   : > { %6498 = vst [vmem:[#allocation8_spill] sm:$0xff] %v4687_v63  ;;  %6507 = vst [vmem:[#allocation17_spill] sm:$0xff] %v4741_v49 }
  0x7a   : > { %602 = vadd.xlane.f32.xlu0 %v601_v4  ;;  %v625_v4 = vadd.f32 %v624_v42, %v4664_v48  ;;  %v4728_v42 = vld [vmem:[%s6409_s0 + $0x1d0] sm:$0xff] }
  0x7b   : > { %6505 = vst [vmem:[#allocation15_spill] sm:$0xff] %v4728_v42 }
  0x7c   : > { %606 = vadd.xlane.f32.xlu1 %v605_v9  ;;  %v4700_v9 = vld [vmem:[%s6409_s0 + $0x190] sm:$0xff] }
  0x7d   : > { %6500 = vst [vmem:[#allocation10_spill] sm:$0xff] %v4700_v9 }
  0x7e   : > { %610 = vadd.xlane.f32.xlu0 %v609_v14  ;;  %v4710_v14 = vld [vmem:[%s6409_s0 + $0x1b8] sm:$0xff] }
  0x7f   : > { %6502 = vst [vmem:[#allocation12_spill] sm:$0xff] %v4710_v14  ;;  %v640_v58 = vadd.f32 %v4710_v14, %v4705_v10  ;;  %v4754_v14 = vld [vmem:[%s6409_s0 + $0x1d8] sm:$0xff] }
  0x80   : > { %614 = vadd.xlane.f32.xlu1 %v613_v28  ;;  %v636_v28 = vadd.f32 %v4692_v0, %v4687_v63  ;;  %v4746_v0 = vld [vmem:[%s6409_s0 + $0x1e8] sm:$0xff]  ;;  %6509 = vst [vmem:[#allocation19_spill] sm:$0xff] %v4754_v14  ;;  %v4759_v10 = vld [vmem:[%s6409_s0 + $0x1f8] sm:$0xff] }
  0x81   : > { %6508 = vst [vmem:[#allocation18_spill] sm:$0xff] %v4746_v0  ;;  %6510 = vst [vmem:[#allocation20_spill] sm:$0xff] %v4759_v10 }
  0x82   : > { %618 = vadd.xlane.f32.xlu0 %v617_v41  ;;  %v4723_v41 = vld [vmem:[%s6409_s0 + $0x1c8] sm:$0xff] }
  0x83   : > { %6504 = vst [vmem:[#allocation14_spill] sm:$0xff] %v4723_v41 }
  0x84   : > { %622 = vadd.xlane.f32.xlu1 %v621_v54  ;;  %v633_v54 = vadd.f32 %v632_v5, %v4700_v9  ;;  %v644_v5 = vadd.f32 %v4728_v42, %v4723_v41  ;;  %v648_v42 = vadd.f32 %v4746_v0, %v4741_v49  ;;  %v4772_v41 = vld [vmem:[%s6409_s0 + $0x1f0] sm:$0xff] }
  0x85   : > { %6512 = vst [vmem:[#allocation22_spill] sm:$0xff] %v4772_v41  ;;  %v3769_v49 = vld [vmem:[%s4787_s9 + $0x450] ss:$24 sps:$4 sm:$0xff]  }
  0x86   : > { %626 = vadd.xlane.f32.xlu0 %v625_v4  ;;  %v637_v4 = vadd.f32 %v636_v28, %v4718_v32  ;;  %v641_v28 = vadd.f32 %v640_v58, %v4736_v53  ;;  %v645_v9 = vadd.f32 %v644_v5, %v4754_v14  ;;  %v649_v58 = vadd.f32 %v648_v42, %v4772_v41  ;;  %v3741_v42 = vld [vmem:[%s4787_s9 + $0x154] ss:$24 sps:$4 sm:$0xff]   ;;  %v3749_v5 = vld [vmem:[%s4787_s9 + $0xf0] ss:$24 sps:$4 sm:$0xff]   ;;  %v4856_v53 = vld [vmem:[%s6409_s0 + $0x220] sm:$0xff] }
  0x87   : > { %2036 = vmatprep.subr.bf16.mxu0 %v3741_v42  ;;  %v3765_v41 = vld [vmem:[%s4787_s9 + $0x454] ss:$24 sps:$4 sm:$0xff]  }
  0x88   : > { %630 = vadd.xlane.f32.xlu1 %v629_v15  ;;  %v4764_v15 = vld [vmem:[%s6409_s0 + $0x200] sm:$0xff]  ;;  %v3753_v42 = vld [vmem:[%s4787_s9 + $0x94] ss:$24 sps:$4 sm:$0xff]   ;;  %2197 = vmatprep.subr.bf16.mxu1 %v3765_v41  ;;  %v3770_v41 = vld [vmem:[%s4787_s9 + $0x2d0] ss:$24 sps:$4 sm:$0xff]  }
  0x89   : > { %6511 = vst [vmem:[#allocation21_spill] sm:$0xff] %v4764_v15  ;;  %v652_v32 = vadd.f32 %v4764_v15, %v4759_v10  ;;  %2198 = vmatpush1.bf16.msra.mxu1 %v3769_v49  ;;  %v3764_v15 = vld [vmem:[%s4787_s9] ss:$24 sps:$4 sm:$0xff]   ;;  %v3767_v10 = vld [vmem:[%s4787_s9 + $0x2d4] ss:$24 sps:$4 sm:$0xff]  }
  0x8a   : > { %634 = vadd.xlane.f32.xlu0 %v633_v54  ;;  %v4780_v54 = vld [vmem:[%s6409_s0 + $0x208] sm:$0xff]  ;;  %v4813_v49 = vld [vmem:[%s6409_s0 + $0x210] sm:$0xff] }
  0x8b   : > { %6513 = vst [vmem:[#allocation23_spill] sm:$0xff] %v4780_v54  ;;  %v653_v0 = vadd.f32 %v652_v32, %v4780_v54  ;;  %v3746_v32 = vld [vmem:[%s4787_s9 + $0x120] ss:$24 sps:$4 sm:$0xff]   ;;  %v3759_v54 = vld [vmem:[%s4787_s9 + $0x34] ss:$24 sps:$4 sm:$0xff]   ;;  %6514 = vst [vmem:[#allocation24_spill] sm:$0xff] %v4813_v49 }
  0x8c   : > { %638 = vadd.xlane.f32.xlu1 %v637_v4  ;;  %v3747_v4 = vld [vmem:[%s4787_s9 + $0xf4] ss:$24 sps:$4 sm:$0xff]  }
  0x8e   : > { %642 = vadd.xlane.f32.xlu0 %v641_v28  ;;  %v3750_v28 = vld [vmem:[%s4787_s9 + $0xc4] ss:$24 sps:$4 sm:$0xff]  }
  0x90   : > { %646 = vadd.xlane.f32.xlu1 %v645_v9  ;;  %v3743_v9 = vld [vmem:[%s4787_s9 + $0x150] ss:$24 sps:$4 sm:$0xff]  }
  0x91   : > { %2037 = vmatpush1.bf16.msra.mxu0 %v3743_v9  ;;  %v3755_v9 = vld [vmem:[%s4787_s9 + $0x90] ss:$24 sps:$4 sm:$0xff]  }
  0x92   : > { %650 = vadd.xlane.f32.xlu0 %v649_v58  ;;  %v3752_v58 = vld [vmem:[%s4787_s9 + $0xc0] ss:$24 sps:$4 sm:$0xff]  }
  0x94   : > { %654 = vadd.xlane.f32.xlu1 %v653_v0  ;;  %v3744_v0 = vld [vmem:[%s4787_s9 + $0x124] ss:$24 sps:$4 sm:$0xff]  }
  0x95   : > { %2038 = vmatprep.subr.bf16.mxu0 %v3744_v0  ;;  %v3756_v0 = vld [vmem:[%s4787_s9 + $0x64] ss:$24 sps:$4 sm:$0xff]  }
  0x96   : > { %2039 = vmatpush1.bf16.msra.mxu0 %v3746_v32  ;;  %v3771_v32 = vld [vmem:[%s4787_s9 + $0x424] ss:$24 sps:$4 sm:$0xff]  }
  0x97   : > { %2040 = vmatprep.subr.bf16.mxu0 %v3747_v4  ;;  %2199 = vmatprep.subr.bf16.mxu1 %v3771_v32  ;;  %v3758_v4 = vld [vmem:[%s4787_s9 + $0x60] ss:$24 sps:$4 sm:$0xff]  }
  0x9a   : > { %2041 = vmatpush1.bf16.msra.mxu0 %v3749_v5  ;;  %v3761_v5 = vld [vmem:[%s4787_s9 + $0x30] ss:$24 sps:$4 sm:$0xff]  }
  0x9b   : > { %2042 = vmatprep.subr.bf16.mxu0 %v3750_v28  ;;  %v3762_v28 = vld [vmem:[%s4787_s9 + $0x4] ss:$24 sps:$4 sm:$0xff]  }
  0x9e   : > { %2043 = vmatpush1.bf16.msra.mxu0 %v3752_v58  ;;  %v4818_v58 = vld [vmem:[%s6409_s0 + $0x240] sm:$0xf] }
  0x9f   : > { %2044 = vmatprep.subr.bf16.mxu0 %v3753_v42  ;;  %6515 = vst [vmem:[#allocation25_spill] sm:$0xff] %v4818_v58  ;;  %v4838_v42 = vld [vmem:[%s6409_s0 + $0x230] sm:$0xff] }
  0xa0   : > { %6519 = vst [vmem:[#allocation29_spill] sm:$0xff] %v4838_v42 }
  0xa2   : > { %2045 = vmatpush1.bf16.msra.mxu0 %v3755_v9  ;;  %v4843_v9 = vld [vmem:[%s6409_s0 + $0x250] sm:$0xf] }
  0xa3   : > { %2046 = vmatprep.subr.bf16.mxu0 %v3756_v0  ;;  %v665_v0 = vsel %vm664_vm0, %v4818_v58, 0.0  ;;  %v4861_v58 = vld [vmem:[%s6409_s0 + $0x238] sm:$0xff]  ;;  %v668_v63 = vsel %vm664_vm0, %v4843_v9, 0.0 }
  0xa6   : > { %2047 = vmatpush1.bf16.msra.mxu0 %v3758_v4 }
  0xa7   : > { %2048 = vmatprep.subr.bf16.mxu0 %v3759_v54  ;;  %v4823_v54 = vld [vmem:[%s6409_s0 + $0x248] sm:$0xf] }
  0xa8   : > { %6516 = vst [vmem:[#allocation26_spill] sm:$0xff] %v4823_v54  ;;  %v666_v32 = vsel %vm664_vm0, %v4823_v54, 0.0 }
  0xa9   : > { %v667_v54 = vadd.f32 %v666_v32, %v665_v0 }
  0xaa   : > { %2049 = vmatpush1.bf16.msra.mxu0 %v3761_v5 }
  0xab   : > { %2050 = vmatprep.subr.bf16.mxu0 %v3762_v28 }
  0xae   : > { %2051 = vmatpush1.bf16.msra.mxu0 %v3764_v15  ;;  %v4833_v15 = vld [vmem:[%s6409_s0 + $0x228] sm:$0xff] }
  0xaf   : > { %2052 = vmatprep.subr.bf16.mxu0 %v3767_v10  ;;  %v4828_v10 = vld [vmem:[%s6409_s0 + $0x218] sm:$0xff]  ;;  %6518 = vst [vmem:[#allocation28_spill] sm:$0xff] %v4833_v15  ;;  %v660_v28 = vadd.f32 %v4838_v42, %v4833_v15 }
  0xb0   : > { %6517 = vst [vmem:[#allocation27_spill] sm:$0xff] %v4828_v10  ;;  %v656_v5 = vadd.f32 %v4828_v10, %v4813_v49 }
  0xb1   : > { %v4876_v27 = vadd.f32 %v660_v28, %v4861_v58 }
  0xb2   : > { %2053 = vmatpush2.bf16.msra.mxu0 %v3770_v41  ;;  %v657_v48 = vadd.f32 %v656_v5, %v4856_v53 }
  0xf3   : > { %v571_v4 = vpop.xlane.xlu0 %570 }
  0xf4   : > { %v673_v41 = vmul.f32 0.0026041667, %v571_v4 }
  0xf5   : > { %v579_v14 = vpop.xlane.xlu1 %578 }
  0xf6   : > { %v4866_v10 = vsub.f32 %v4391_v16, %v673_v41  ;;  %v4869_v4 = vsub.f32 %v4396_v17, %v673_v41  ;;  %v4872_v42 = vsub.f32 %v4401_v18, %v673_v41  ;;  %v675_v15 = vmul.f32 0.0026041667, %v579_v14 }
  0xf7   : > { %v575_v49 = vpop.xlane.xlu0 %574 }
  0xf8   : > { %6520 = vst [vmem:[#allocation30_spill] sm:$0xff] %v4866_v10  ;;  %6521 = vst [vmem:[#allocation31_spill] sm:$0xff] %v4869_v4  ;;  %v674_v0 = vmul.f32 0.0026041667, %v575_v49  ;;  %v4879_v32 = vsub.f32 %v4425_v24, %v675_v15  ;;  %v4882_v16 = vsub.f32 %v4430_v25, %v675_v15  ;;  %v4885_v17 = vsub.f32 %v4435_v26, %v675_v15 }
  0xf9   : > { %6522 = vst [vmem:[#allocation32_spill] sm:$0xff] %v4872_v42  ;;  %v773_v18 = vmul.f32 %v4866_v10, %v4866_v10  ;;  %v774_v14 = vmul.f32 %v4869_v4, %v4869_v4  ;;  %v775_v5 = vmul.f32 %v4872_v42, %v4872_v42  ;;  %v583_v28 = vpop.xlane.xlu1 %582  ;;  %v4893_v49 = vadd.f32 %v668_v63, %v667_v54 }
  0xfa   : > { %6523 = vst [vmem:[#allocation33_spill] sm:$0xff] %v4879_v32  ;;  %6524 = vst [vmem:[#allocation34_spill] sm:$0xff] %v4882_v16  ;;  %v4896_v24 = vsub.f32 %v4408_v20, %v674_v0  ;;  %v4899_v25 = vsub.f32 %v4413_v21, %v674_v0  ;;  %v4902_v26 = vsub.f32 %v4418_v22, %v674_v0  ;;  %v676_v15 = vmul.f32 0.0026041667, %v583_v28 }
  0xfb   : > { %6525 = vst [vmem:[#allocation35_spill] sm:$0xff] %v4885_v17  ;;  %v848_v41 = vadd.f32 %v774_v14, %v773_v18  ;;  %v587_v10 = vpop.xlane.xlu0 %586  ;;  %v779_v4 = vmul.f32 %v4879_v32, %v4879_v32  ;;  %v780_v42 = vmul.f32 %v4882_v16, %v4882_v16  ;;  %v781_v63 = vmul.f32 %v4885_v17, %v4885_v17 }
  0xfc   : > { %v4911_v20 = vsub.f32 %v4443_v29, %v676_v15  ;;  %v4914_v21 = vsub.f32 %v4448_v30, %v676_v15  ;;  %v4917_v22 = vsub.f32 %v4453_v31, %v676_v15  ;;  %v776_v54 = vmul.f32 %v4896_v24, %v4896_v24 }
  0xfd   : > { %v849_v0 = vadd.f32 %v848_v41, %v775_v5  ;;  %v777_v18 = vmul.f32 %v4899_v25, %v4899_v25  ;;  %v778_v14 = vmul.f32 %v4902_v26, %v4902_v26  ;;  %v591_v28 = vpop.xlane.xlu1 %590  ;;  %v677_v32 = vmul.f32 0.0026041667, %v587_v10 }
  0xfe   : > { %6526 = vst [vmem:[#allocation36_spill] sm:$0xff] %v4911_v20  ;;  %v678_v29 = vmul.f32 0.0026041667, %v591_v28  ;;  %v856_v17 = vadd.f32 %v780_v42, %v779_v4  ;;  %v782_v30 = vmul.f32 %v4911_v20, %v4911_v20  ;;  %v783_v31 = vmul.f32 %v4914_v21, %v4914_v21 }
  0xff   : > { %850 = vadd.xlane.f32.xlu0 %v849_v0  ;;  %v852_v15 = vadd.f32 %v777_v18, %v776_v54  ;;  %v4930_v5 = vsub.f32 %v4472_v37, %v677_v32  ;;  %v4933_v41 = vsub.f32 %v4477_v38, %v677_v32  ;;  %v4936_v16 = vsub.f32 %v4482_v39, %v677_v32  ;;  %v595_v10 = vpop.xlane.xlu0 %594 }
 0x100   : > { %v4939_v42 = vsub.f32 %v4460_v33, %v678_v29  ;;  %v4942_v4 = vsub.f32 %v4465_v34, %v678_v29  ;;  %v4945_v28 = vsub.f32 %v4502_v45, %v678_v29  ;;  %v857_v54 = vadd.f32 %v856_v17, %v781_v63 }
 0x101   : > { %v853_v0 = vadd.f32 %v852_v15, %v778_v14  ;;  %v599_v37 = vpop.xlane.xlu1 %598  ;;  %v679_v18 = vmul.f32 0.0026041667, %v595_v10  ;;  %v784_v38 = vmul.f32 %v4917_v22, %v4917_v22  ;;  %v860_v20 = vadd.f32 %v783_v31, %v782_v30 }
 0x102   : > { %v680_v39 = vmul.f32 0.0026041667, %v599_v37  ;;  %v788_v32 = vmul.f32 %v4939_v42, %v4939_v42  ;;  %v789_v33 = vmul.f32 %v4942_v4, %v4942_v4  ;;  %v790_v34 = vmul.f32 %v4945_v28, %v4945_v28 }
 0x103   : > { %658 = vadd.xlane.f32.xlu0 %v657_v48  ;;  %854 = vadd.xlane.f32.xlu1 %v853_v0  ;;  %v4956_v45 = vsub.f32 %v4492_v43, %v679_v18  ;;  %v4959_v17 = vsub.f32 %v4497_v44, %v679_v18  ;;  %v4962_v63 = vsub.f32 %v4520_v50, %v679_v18  ;;  %v603_v14 = vpop.xlane.xlu0 %602 }
 0x104   : > { %v4965_v29 = vsub.f32 %v4507_v46, %v680_v39  ;;  %v4968_v30 = vsub.f32 %v4512_v47, %v680_v39  ;;  %v4971_v31 = vsub.f32 %v4538_v55, %v680_v39  ;;  %v861_v48 = vadd.f32 %v860_v20, %v784_v38 }
 0x105   : > { %v607_v15 = vpop.xlane.xlu1 %606  ;;  %v681_v43 = vmul.f32 0.0026041667, %v603_v14  ;;  %v868_v10 = vadd.f32 %v789_v33, %v788_v32  ;;  %v785_v44 = vmul.f32 %v4930_v5, %v4930_v5  ;;  %v786_v50 = vmul.f32 %v4933_v41, %v4933_v41  ;;  %v3773_v33 = vld [vmem:[%s4787_s9 + $0x2a4] ss:$24 sps:$4 sm:$0xff]  }
 0x106   : > { %6527 = vst [vmem:[#allocation37_spill] sm:$0xff] %v4965_v29  ;;  %v682_v46 = vmul.f32 0.0026041667, %v607_v15  ;;  %v787_v47 = vmul.f32 %v4936_v16, %v4936_v16  ;;  %v794_v55 = vmul.f32 %v4965_v29, %v4965_v29  ;;  %v795_v20 = vmul.f32 %v4968_v30, %v4968_v30  ;;  %v3776_v29 = vld [vmem:[%s4787_s9 + $0x2a0] ss:$24 sps:$4 sm:$0xff]   ;;  %2054 = vmatprep.subr.bf16.mxu0 %v3773_v33 }
 0x107   : > { %858 = vadd.xlane.f32.xlu0 %v857_v54  ;;  %662 = vadd.xlane.f32.xlu1 %v4876_v27  ;;  %v4985_v0 = vsub.f32 %v4525_v51, %v681_v43  ;;  %v4988_v37 = vsub.f32 %v4530_v52, %v681_v43  ;;  %v4991_v18 = vsub.f32 %v4556_v60, %v681_v43  ;;  %v611_v38 = vpop.xlane.xlu0 %610  ;;  %v3775_v51 = vld [vmem:[%s4787_s9 + $0x420] ss:$24 sps:$4 sm:$0xff]  }
 0x108   : > { %v4994_v39 = vsub.f32 %v4543_v56, %v682_v46  ;;  %v4997_v32 = vsub.f32 %v4548_v57, %v682_v46  ;;  %v5000_v54 = vsub.f32 %v4574_v1, %v682_v46  ;;  %v869_v27 = vadd.f32 %v868_v10, %v790_v34  ;;  %2200 = vmatpush1.bf16.msra.mxu1 %v3775_v51 }
 0x109   : > { %v864_v14 = vadd.f32 %v786_v50, %v785_v44  ;;  %v615_v15 = vpop.xlane.xlu1 %614  ;;  %v683_v52 = vmul.f32 0.0026041667, %v611_v38  ;;  %v796_v60 = vmul.f32 %v4971_v31, %v4971_v31  ;;  %v876_v43 = vadd.f32 %v795_v20, %v794_v55  ;;  %v3777_v55 = vld [vmem:[%s4787_s9 + $0x3f4] ss:$24 sps:$4 sm:$0xff]   ;;  %2055 = vmatpush2.bf16.msra.mxu0 %v3776_v29 }
 0x10a   : > { %v684_v56 = vmul.f32 0.0026041667, %v615_v15  ;;  %v791_v57 = vmul.f32 %v4956_v45, %v4956_v45  ;;  %v792_v1 = vmul.f32 %v4959_v17, %v4959_v17  ;;  %v793_v34 = vmul.f32 %v4962_v63, %v4962_v63  ;;  %2201 = vmatprep.subr.bf16.mxu1 %v3777_v55 }
 0x10b   : > { %670 = vadd.xlane.f32.xlu0 %v4893_v49  ;;  %862 = vadd.xlane.f32.xlu1 %v861_v48  ;;  %v865_v10 = vadd.f32 %v864_v14, %v787_v47  ;;  %v5015_v44 = vsub.f32 %v4561_v61, %v683_v52  ;;  %v5018_v50 = vsub.f32 %v4566_v62, %v683_v52  ;;  %v619_v46 = vpop.xlane.xlu0 %618  ;;  %v3779_v61 = vld [vmem:[%s4787_s9 + $0x274] ss:$24 sps:$4 sm:$0xff]   ;;  %v3781_v48 = vld [vmem:[%s4787_s9 + $0x3f0] ss:$24 sps:$4 sm:$0xff]  }
 0x10c   : > { %v5022_v20 = vsub.f32 %v4579_v2, %v684_v56  ;;  %v5025_v38 = vsub.f32 %v4584_v3, %v684_v56  ;;  %v5028_v33 = vsub.f32 %v4610_v11, %v684_v56  ;;  %v5031_v49 = vsub.f32 %v4592_v6, %v683_v52  ;;  %v3782_v3 = vld [vmem:[%s4787_s9 + $0x270] ss:$24 sps:$4 sm:$0xff]   ;;  %2056 = vmatprep.subr.bf16.mxu0 %v3779_v61 }
 0x10d   : > { %6528 = vst [vmem:[#allocation38_spill] sm:$0xff] %v5015_v44  ;;  %v877_v62 = vadd.f32 %v876_v43, %v796_v60  ;;  %v872_v47 = vadd.f32 %v792_v1, %v791_v57  ;;  %v623_v51 = vpop.xlane.xlu1 %622  ;;  %v685_v14 = vmul.f32 0.0026041667, %v619_v46  ;;  %v800_v2 = vmul.f32 %v4994_v39, %v4994_v39  ;;  %2202 = vmatpush1.bf16.msra.mxu1 %v3781_v48  ;;  %v3783_v57 = vld [vmem:[%s4787_s9 + $0x3c4] ss:$24 sps:$4 sm:$0xff]  }
 0x10e   : > { %6529 = vst [vmem:[#allocation39_spill] sm:$0xff] %v5022_v20  ;;  %6530 = vst [vmem:[#allocation40_spill] sm:$0xff] %v5028_v33  ;;  %v686_v15 = vmul.f32 0.0026041667, %v623_v51  ;;  %v801_v11 = vmul.f32 %v4997_v32, %v4997_v32  ;;  %v802_v6 = vmul.f32 %v5000_v54, %v5000_v54  ;;  %v797_v29 = vmul.f32 %v4985_v0, %v4985_v0  ;;  %v3788_v48 = vld [vmem:[%s4787_s9 + $0x240] ss:$24 sps:$4 sm:$0xff]  }
 0x10f   : > { %870 = vadd.xlane.f32.xlu0 %v869_v27  ;;  %866 = vadd.xlane.f32.xlu1 %v865_v10  ;;  %v873_v52 = vadd.f32 %v872_v47, %v793_v34  ;;  %v5045_v60 = vsub.f32 %v4597_v7, %v685_v14  ;;  %v5048_v43 = vsub.f32 %v4602_v8, %v685_v14  ;;  %v627_v56 = vpop.xlane.xlu0 %626  ;;  %v3785_v7 = vld [vmem:[%s4787_s9 + $0x244] ss:$24 sps:$4 sm:$0xff]   ;;  %v3787_v34 = vld [vmem:[%s4787_s9 + $0x3c0] ss:$24 sps:$4 sm:$0xff]  }
 0x110   : > { %v5052_v1 = vsub.f32 %v4615_v12, %v686_v15  ;;  %v5055_v46 = vsub.f32 %v4620_v13, %v686_v15  ;;  %v5058_v55 = vsub.f32 %v4646_v35, %v686_v15  ;;  %v5061_v27 = vsub.f32 %v4628_v19, %v685_v14  ;;  %2057 = vmatpush2.bf16.msra.mxu0 %v3782_v3 }
 0x111   : > { %6531 = vst [vmem:[#allocation41_spill] sm:$0xff] %v5045_v60  ;;  %6532 = vst [vmem:[#allocation42_spill] sm:$0xff] %v5048_v43  ;;  %v884_v8 = vadd.f32 %v801_v11, %v800_v2  ;;  %v798_v10 = vmul.f32 %v4988_v37, %v4988_v37  ;;  %v799_v12 = vmul.f32 %v4991_v18, %v4991_v18  ;;  %v631_v61 = vpop.xlane.xlu1 %630  ;;  %v687_v13 = vmul.f32 0.0026041667, %v627_v56  ;;  %v3789_v11 = vld [vmem:[%s4787_s9 + $0x394] ss:$24 sps:$4 sm:$0xff]  }
 0x112   : > { %6533 = vst [vmem:[#allocation43_spill] sm:$0xff] %v5052_v1  ;;  %6534 = vst [vmem:[#allocation44_spill] sm:$0xff] %v5055_v46  ;;  %2203 = vmatprep.subr.bf16.mxu1 %v3783_v57  ;;  %v688_v35 = vmul.f32 0.0026041667, %v631_v61  ;;  %v806_v19 = vmul.f32 %v5022_v20, %v5022_v20  ;;  %v807_v47 = vmul.f32 %v5025_v38, %v5025_v38  ;;  %2058 = vmatprep.subr.bf16.mxu0 %v3785_v7  ;;  %v6541_v7 = vld [vmem:[#allocation4_spill] sm:$0xff] }
 0x113   : > { %6535 = vst [vmem:[#allocation45_spill] sm:$0xff] %v5058_v55  ;;  %6536 = vst [vmem:[#allocation46_spill] sm:$0xff] %v5061_v27  ;;  %v808_v51 = vmul.f32 %v5028_v33, %v5028_v33  ;;  %2204 = vmatpush1.bf16.msra.mxu1 %v3787_v34  ;;  %878 = vadd.xlane.f32.xlu0 %v877_v62  ;;  %v885_v14 = vadd.f32 %v884_v8, %v802_v6  ;;  %v635_v15 = vpop.xlane.xlu0 %634  ;;  %v3791_v6 = vld [vmem:[%s4787_s9 + $0x214] ss:$24 sps:$4 sm:$0xff]  }
 0x114   : > { %874 = vadd.xlane.f32.xlu1 %v873_v52  ;;  %v880_v2 = vadd.f32 %v798_v10, %v797_v29  ;;  %v5077_v3 = vsub.f32 %v4633_v23, %v687_v13  ;;  %v5081_v56 = vsub.f32 %v4651_v36, %v688_v35  ;;  %v5084_v57 = vsub.f32 %v4656_v40, %v688_v35  ;;  %v3793_v29 = vld [vmem:[%s4787_s9 + $0x390] ss:$24 sps:$4 sm:$0xff]  }
 0x115   : > { %v5087_v61 = vsub.f32 %v4682_v59, %v688_v35  ;;  %v5090_v62 = vsub.f32 %v6541_v7, %v687_v13  ;;  %2059 = vmatpush2.bf16.msra.mxu0 %v3788_v48  ;;  %v6542_v52 = vld [vmem:[#allocation5_spill] sm:$0xff]  ;;  %v892_v8 = vadd.f32 %v807_v47, %v806_v19  ;;  %v803_v36 = vmul.f32 %v5015_v44, %v5015_v44  ;;  %v639_v40 = vpop.xlane.xlu1 %638  ;;  %v6550_v44 = vld [vmem:[#allocation10_spill] sm:$0xff] }
 0x116   : > { %6537 = vst [vmem:[#allocation47_spill] sm:$0xff] %v5077_v3  ;;  %6538 = vst [vmem:[#allocation48_spill] sm:$0xff] %v5081_v56  ;;  %v881_v23 = vadd.f32 %v880_v2, %v799_v12  ;;  %v5095_v34 = vsub.f32 %v6542_v52, %v687_v13  ;;  %2205 = vmatprep.subr.bf16.mxu1 %v3789_v11  ;;  %v3794_v10 = vld [vmem:[%s4787_s9 + $0x210] ss:$24 sps:$4 sm:$0xff]   ;;  %v804_v59 = vmul.f32 %v5018_v50, %v5018_v50  ;;  %v3795_v11 = vld [vmem:[%s4787_s9 + $0x364] ss:$24 sps:$4 sm:$0xff]  }
 0x117   : > { %6539 = vst [vmem:[#allocation49_spill] sm:$0xff] %v5084_v57  ;;  %6540 = vst [vmem:[#allocation50_spill] sm:$0xff] %v5087_v61  ;;  %v805_v48 = vmul.f32 %v5031_v49, %v5031_v49  ;;  %v690_v35 = vmul.f32 0.0026041667, %v639_v40  ;;  %v689_v12 = vmul.f32 0.0026041667, %v635_v15  ;;  %2060 = vmatprep.subr.bf16.mxu0 %v3791_v6  ;;  %2206 = vmatpush1.bf16.msra.mxu1 %v3793_v29  ;;  %v643_v2 = vpop.xlane.xlu0 %642 }
 0x118   : > { %886 = vadd.xlane.f32.xlu0 %v885_v14  ;;  %882 = vadd.xlane.f32.xlu1 %v881_v23  ;;  %v893_v13 = vadd.f32 %v892_v8, %v808_v51  ;;  %v812_v19 = vmul.f32 %v5052_v1, %v5052_v1  ;;  %v813_v47 = vmul.f32 %v5055_v46, %v5055_v46  ;;  %v6543_v52 = vld [vmem:[#allocation8_spill] sm:$0xff]  ;;  %v6545_v15 = vld [vmem:[#allocation9_spill] sm:$0xff]  ;;  %v6548_v23 = vld [vmem:[#allocation6_spill] sm:$0xff] }
 0x119   : > { %v888_v7 = vadd.f32 %v804_v59, %v803_v36  ;;  %v5110_v40 = vsub.f32 %v6543_v52, %v690_v35  ;;  %v5113_v20 = vsub.f32 %v6545_v15, %v690_v35  ;;  %v6547_v6 = vld [vmem:[#allocation13_spill] sm:$0xff]  ;;  %2061 = vmatpush2.bf16.msra.mxu0 %v3794_v10  ;;  %v3797_v51 = vld [vmem:[%s4787_s9 + $0x1e4] ss:$24 sps:$4 sm:$0xff]   ;;  %v3799_v29 = vld [vmem:[%s4787_s9 + $0x360] ss:$24 sps:$4 sm:$0xff]   ;;  %v5121_v8 = vsub.f32 %v6548_v23, %v689_v12  ;;  %v647_v52 = vpop.xlane.xlu1 %646 }
 0x11a   : > { %v5116_v14 = vsub.f32 %v6547_v6, %v690_v35  ;;  %v6549_v1 = vld [vmem:[#allocation7_spill] sm:$0xff]  ;;  %v5127_v36 = vsub.f32 %v6550_v44, %v689_v12  ;;  %v814_v59 = vmul.f32 %v5058_v55, %v5058_v55  ;;  %2207 = vmatprep.subr.bf16.mxu1 %v3795_v11  ;;  %v900_v10 = vadd.f32 %v813_v47, %v812_v19  ;;  %v6551_v55 = vld [vmem:[#allocation14_spill] sm:$0xff] }
 0x11b   : > { %6544 = vst [vmem:[#allocation4_spill] sm:$0xff] %v5110_v40  ;;  %6546 = vst [vmem:[#allocation5_spill] sm:$0xff] %v5113_v20  ;;  %v5124_v46 = vsub.f32 %v6549_v1, %v689_v12  ;;  %v3800_v35 = vld [vmem:[%s4787_s9 + $0x1e0] ss:$24 sps:$4 sm:$0xff]   ;;  %v889_v15 = vadd.f32 %v888_v7, %v805_v48  ;;  %v809_v6 = vmul.f32 %v5045_v60, %v5045_v60  ;;  %2062 = vmatprep.subr.bf16.mxu0 %v3797_v51  ;;  %v3801_v48 = vld [vmem:[%s4787_s9 + $0x334] ss:$24 sps:$4 sm:$0xff]  }
 0x11c   : > { %v810_v1 = vmul.f32 %v5048_v43, %v5048_v43  ;;  %894 = vadd.xlane.f32.xlu0 %v893_v13  ;;  %v811_v44 = vmul.f32 %v5061_v27, %v5061_v27  ;;  %v692_v12 = vmul.f32 0.0026041667, %v647_v52  ;;  %v691_v23 = vmul.f32 0.0026041667, %v643_v2  ;;  %2208 = vmatpush1.bf16.msra.mxu1 %v3799_v29  ;;  %v3803_v51 = vld [vmem:[%s4787_s9 + $0x1b4] ss:$24 sps:$4 sm:$0xff]  }
 0x11d   : > { %v818_v11 = vmul.f32 %v5081_v56, %v5081_v56  ;;  %890 = vadd.xlane.f32.xlu1 %v889_v15  ;;  %v901_v19 = vadd.f32 %v900_v10, %v814_v59  ;;  %v819_v7 = vmul.f32 %v5084_v57, %v5084_v57  ;;  %v820_v13 = vmul.f32 %v5087_v61, %v5087_v61  ;;  %v3805_v60 = vld [vmem:[%s4787_s9 + $0x330] ss:$24 sps:$4 sm:$0xff]   ;;  %v6553_v2 = vld [vmem:[#allocation15_spill] sm:$0xff]  ;;  %v655_v10 = vpop.xlane.xlu1 %654  ;;  %v6556_v57 = vld [vmem:[#allocation12_spill] sm:$0xff] }
 0x11e   : > { %v896_v47 = vadd.f32 %v810_v1, %v809_v6  ;;  %v5148_v52 = vsub.f32 %v6551_v55, %v692_v12  ;;  %v5151_v27 = vsub.f32 %v6553_v2, %v692_v12  ;;  %v6554_v29 = vld [vmem:[#allocation19_spill] sm:$0xff]  ;;  %v651_v6 = vpop.xlane.xlu0 %650  ;;  %2063 = vmatpush2.bf16.msra.mxu0 %v3800_v35  ;;  %v3806_v1 = vld [vmem:[%s4787_s9 + $0x1b0] ss:$24 sps:$4 sm:$0xff]   ;;  %v5161_v43 = vsub.f32 %v6556_v57, %v691_v23  ;;  %v6557_v55 = vld [vmem:[#allocation16_spill] sm:$0xff] }
 0x11f   : > { %v5154_v56 = vsub.f32 %v6554_v29, %v692_v12  ;;  %v6555_v15 = vld [vmem:[#allocation11_spill] sm:$0xff]  ;;  %v5164_v33 = vsub.f32 %v6557_v55, %v691_v23  ;;  %v908_v2 = vadd.f32 %v819_v7, %v818_v11  ;;  %2209 = vmatprep.subr.bf16.mxu1 %v3801_v48  ;;  %v815_v12 = vmul.f32 %v5077_v3, %v5077_v3  ;;  %v6560_v3 = vld [vmem:[#allocation21_spill] sm:$0xff] }
 0x120   : > { %6552 = vst [vmem:[#allocation8_spill] sm:$0xff] %v5148_v52  ;;  %v5157_v59 = vsub.f32 %v6555_v15, %v691_v23  ;;  %v897_v61 = vadd.f32 %v896_v47, %v811_v44  ;;  %902 = vadd.xlane.f32.xlu0 %v901_v19  ;;  %v816_v29 = vmul.f32 %v5090_v62, %v5090_v62  ;;  %v694_v44 = vmul.f32 0.0026041667, %v655_v10  ;;  %v3807_v57 = vld [vmem:[%s4787_s9 + $0x304] ss:$24 sps:$4 sm:$0xff]  }
 0x121   : > { %v817_v35 = vmul.f32 %v5095_v34, %v5095_v34  ;;  %2064 = vmatprep.subr.bf16.mxu0 %v3803_v51  ;;  %v909_v47 = vadd.f32 %v908_v2, %v820_v13  ;;  %v693_v23 = vmul.f32 0.0026041667, %v651_v6  ;;  %v824_v11 = vmul.f32 %v5110_v40, %v5110_v40  ;;  %2210 = vmatpush1.bf16.msra.mxu1 %v3805_v60  ;;  %v3809_v19 = vld [vmem:[%s4787_s9 + $0x184] ss:$24 sps:$4 sm:$0xff]   ;;  %v6562_v13 = vld [vmem:[#allocation17_spill] sm:$0xff]  ;;  %v6563_v2 = vld [vmem:[#allocation18_spill] sm:$0xff] }
 0x122   : > { %898 = vadd.xlane.f32.xlu1 %v897_v61  ;;  %v825_v48 = vmul.f32 %v5113_v20, %v5113_v20  ;;  %v904_v7 = vadd.f32 %v816_v29, %v815_v12  ;;  %v6558_v15 = vld [vmem:[#allocation20_spill] sm:$0xff]  ;;  %v5182_v10 = vsub.f32 %v6560_v3, %v694_v44  ;;  %v6561_v51 = vld [vmem:[#allocation23_spill] sm:$0xff]  ;;  %2065 = vmatpush2.bf16.msra.mxu0 %v3806_v1  ;;  %v6564_v60 = vld [vmem:[#allocation22_spill] sm:$0xff] }
 0x123   : > { %v5179_v55 = vsub.f32 %v6558_v15, %v694_v44  ;;  %v5185_v61 = vsub.f32 %v6561_v51, %v694_v44  ;;  %v5188_v6 = vsub.f32 %v6562_v13, %v693_v23  ;;  %v5191_v40 = vsub.f32 %v6563_v2, %v693_v23  ;;  %2211 = vmatprep.subr.bf16.mxu1 %v3807_v57  ;;  %v3811_v3 = vld [vmem:[%s4787_s9 + $0x300] ss:$24 sps:$4 sm:$0xff]  }
 0x124   : > { %v5194_v20 = vsub.f32 %v6564_v60, %v693_v23  ;;  %v826_v12 = vmul.f32 %v5116_v14, %v5116_v14  ;;  %910 = vadd.xlane.f32.xlu0 %v909_v47  ;;  %v905_v29 = vadd.f32 %v904_v7, %v817_v35  ;;  %v916_v44 = vadd.f32 %v825_v48, %v824_v11  ;;  %v3812_v35 = vld [vmem:[%s4787_s9 + $0x180] ss:$24 sps:$4 sm:$0xff]  }
 0x125   : > { %6559 = vst [vmem:[#allocation9_spill] sm:$0xff] %v5179_v55  ;;  %v821_v1 = vmul.f32 %v5121_v8, %v5121_v8  ;;  %v822_v15 = vmul.f32 %v5124_v46, %v5124_v46  ;;  %v823_v51 = vmul.f32 %v5127_v36, %v5127_v36  ;;  %v830_v23 = vmul.f32 %v5148_v52, %v5148_v52 }
 0x126   : > { %v831_v13 = vmul.f32 %v5151_v27, %v5151_v27  ;;  %v832_v57 = vmul.f32 %v5154_v56, %v5154_v56  ;;  %2066 = vmatprep.subr.bf16.mxu0 %v3809_v19  ;;  %906 = vadd.xlane.f32.xlu1 %v905_v29  ;;  %v917_v47 = vadd.f32 %v916_v44, %v826_v12 }
 0x127   : > { %v912_v11 = vadd.f32 %v822_v15, %v821_v1  ;;  %v827_v48 = vmul.f32 %v5157_v59, %v5157_v59  ;;  %v828_v7 = vmul.f32 %v5161_v43, %v5161_v43  ;;  %v829_v60 = vmul.f32 %v5164_v33, %v5164_v33  ;;  %2212 = vmatpush1.bf16.msra.mxu1 %v3811_v3 }
 0x128   : > { %v924_v2 = vadd.f32 %v831_v13, %v830_v23  ;;  %v836_v52 = vmul.f32 %v5179_v55, %v5179_v55  ;;  %v837_v19 = vmul.f32 %v5182_v10, %v5182_v10  ;;  %918 = vadd.xlane.f32.xlu0 %v917_v47  ;;  %v838_v44 = vmul.f32 %v5185_v61, %v5185_v61 }
 0x129   : > { %v913_v12 = vadd.f32 %v912_v11, %v823_v51  ;;  %v920_v29 = vadd.f32 %v828_v7, %v827_v48  ;;  %v833_v1 = vmul.f32 %v5188_v6, %v5188_v6  ;;  %v834_v13 = vmul.f32 %v5191_v40, %v5191_v40  ;;  %2067 = vmatpush2.bf16.msra.mxu0 %v3812_v35  ;;  %v3830_v48 = vld [vmem:[%s4787_s9 + $0x45c] ss:$24 sps:$4 sm:$0xff]  }
 0x12a   : > { %v925_v15 = vadd.f32 %v924_v2, %v832_v57  ;;  %v932_v23 = vadd.f32 %v837_v19, %v836_v52  ;;  %v835_v3 = vmul.f32 %v5194_v20, %v5194_v20  ;;  %v6464_v47 = vmov 0   ;;  %v3815_v52 = vld [vmem:[%s4787_s9 + $0x15c] ss:$24 sps:$4 sm:$0xff]   ;;  %2519 = vmatprep.subr.bf16.mxu0 %v3830_v48 }
 0x12b   : > { %914 = vadd.xlane.f32.xlu1 %v913_v12  ;;  %v921_v55 = vadd.f32 %v920_v29, %v829_v60  ;;  %v928_v51 = vadd.f32 %v834_v13, %v833_v1  ;;  %2229 = vmatprep.mubr.bf16.mxu1 %v6464_v47  ;;  %v6565_v13 = vld [vmem:[#allocation24_spill] sm:$0xff] }
 0x12c   : > { %926 = vadd.xlane.f32.xlu0 %v925_v15  ;;  %v933_v11 = vadd.f32 %v932_v23, %v838_v44  ;;  %2358 = vmatprep.subr.bf16.mxu1 %v3815_v52 }
 0x12d   : > { %v929_v57 = vadd.f32 %v928_v51, %v835_v3 }
 0x12f   : > { %922 = vadd.xlane.f32.xlu1 %v921_v55  ;;  %v6567_v55 = vld [vmem:[#allocation27_spill] sm:$0xff] }
 0x130   : > { %934 = vadd.xlane.f32.xlu0 %v933_v11 }
 0x133   : > { %930 = vadd.xlane.f32.xlu1 %v929_v57 }
 0x188   : > { %v851_v35 = vpop.xlane.xlu0 %850 }
 0x189   : > { %v951_v7 = vmul.f32 0.0026041667, %v851_v35 }
 0x18b   : > { %v976_v2 = vadd.f32 1e-06, %v951_v7  ;;  %v6569_v7 = vld [vmem:[#allocation28_spill] sm:$0xff] }
 0x18c   : > { %v855_v60 = vpop.xlane.xlu1 %854  ;;  %v659_v19 = vpop.xlane.xlu0 %658 }
 0x18d   : > { %v952_v12 = vmul.f32 0.0026041667, %v855_v60  ;;  %v695_v29 = vmul.f32 0.0026041667, %v659_v19  ;;  %3957 = vrsqrt.f32 %v976_v2  ;;  %v6571_v60 = vld [vmem:[#allocation29_spill] sm:$0xff] }
 0x18f   : > { %v977_v1 = vadd.f32 1e-06, %v952_v12  ;;  %v5234_v15 = vsub.f32 %v6565_v13, %v695_v29  ;;  %v5237_v44 = vsub.f32 %v6567_v55, %v695_v29  ;;  %v5240_v23 = vsub.f32 %v4856_v53, %v695_v29 }
 0x190   : > { %v663_v3 = vpop.xlane.xlu1 %662  ;;  %v859_v51 = vpop.xlane.xlu0 %858 }
 0x191   : > { %6566 = vst [vmem:[#allocation13_spill] sm:$0xff] %v5234_v15  ;;  %6568 = vst [vmem:[#allocation6_spill] sm:$0xff] %v5240_v23  ;;  %3959 = vrsqrt.f32 %v977_v1  ;;  %v696_v11 = vmul.f32 0.0026041667, %v663_v3  ;;  %v953_v57 = vmul.f32 0.0026041667, %v859_v51  ;;  %v839_v52 = vmul.f32 %v5234_v15, %v5234_v15 }
 0x192   : > { %v840_v48 = vmul.f32 %v5237_v44, %v5237_v44  ;;  %v841_v35 = vmul.f32 %v5240_v23, %v5240_v23 }
 0x193   : > { %v5249_v2 = vsub.f32 %v6569_v7, %v696_v11  ;;  %v5252_v53 = vsub.f32 %v6571_v60, %v696_v11  ;;  %v978_v19 = vadd.f32 1e-06, %v953_v57  ;;  %v5255_v12 = vsub.f32 %v4861_v58, %v696_v11  ;;  %v6574_v60 = vld [vmem:[#allocation25_spill] sm:$0xff]  ;;  %v6576_v57 = vld [vmem:[#allocation26_spill] sm:$0xff] }
 0x194   : > { %v863_v29 = vpop.xlane.xlu1 %862  ;;  %v671_v1 = vpop.xlane.xlu0 %670  ;;  %v936_v13 = vadd.f32 %v840_v48, %v839_v52 }
 0x195   : > { %6570 = vst [vmem:[#allocation7_spill] sm:$0xff] %v5249_v2  ;;  %6572 = vst [vmem:[#allocation10_spill] sm:$0xff] %v5252_v53  ;;  %v954_v55 = vmul.f32 0.0026041667, %v863_v29  ;;  %v697_v3 = vmul.f32 0.0026041667, %v671_v1  ;;  %v842_v51 = vmul.f32 %v5249_v2, %v5249_v2  ;;  %3961 = vrsqrt.f32 %v978_v19 }
 0x196   : > { %6573 = vst [vmem:[#allocation14_spill] sm:$0xff] %v5255_v12  ;;  %v937_v47 = vadd.f32 %v936_v13, %v841_v35  ;;  %v843_v7 = vmul.f32 %v5252_v53, %v5252_v53  ;;  %v844_v19 = vmul.f32 %v5255_v12, %v5255_v12  ;;  %v6580_v53 = vld [vmem:[#allocation32_spill] sm:$0xff] }
 0x197   : > { %v979_v15 = vadd.f32 1e-06, %v954_v55  ;;  %v5262_v23 = vsub.f32 %v6574_v60, %v697_v3  ;;  %v5265_v58 = vsub.f32 %v6576_v57, %v697_v3  ;;  %v5268_v11 = vsub.f32 %v4843_v9, %v697_v3 }
 0x198   : > { %938 = vadd.xlane.f32.xlu1 %v937_v47  ;;  %v867_v52 = vpop.xlane.xlu1 %866  ;;  %v871_v48 = vpop.xlane.xlu0 %870  ;;  %v940_v35 = vadd.f32 %v843_v7, %v842_v51 }
 0x199   : > { %6575 = vst [vmem:[#allocation15_spill] sm:$0xff] %v5262_v23  ;;  %6577 = vst [vmem:[#allocation19_spill] sm:$0xff] %v5265_v58  ;;  %3963 = vrsqrt.f32 %v979_v15  ;;  %v955_v29 = vmul.f32 0.0026041667, %v867_v52  ;;  %v956_v1 = vmul.f32 0.0026041667, %v871_v48  ;;  %v845_v13 = vmul.f32 %v5262_v23, %v5262_v23 }
 0x19a   : > { %6578 = vst [vmem:[#allocation11_spill] sm:$0xff] %v5268_v11  ;;  %v941_v55 = vadd.f32 %v940_v35, %v844_v19  ;;  %v846_v60 = vmul.f32 %v5265_v58, %v5265_v58  ;;  %v847_v9 = vmul.f32 %v5268_v11, %v5268_v11  ;;  %v3958_v47 = vpop.eup %3957  ;;  %v6579_v58 = vld [vmem:[#allocation31_spill] sm:$0xff] }
 0x19b   : > { %v980_v3 = vadd.f32 1e-06, %v955_v29  ;;  %v981_v57 = vadd.f32 1e-06, %v956_v1  ;;  %v944_v2 = vsel %vm664_vm0, %v845_v13, 0.0  ;;  %v1027_v11 = vmul.f32 %v3958_v47, %v6579_v58 }
 0x19c   : > { %942 = vadd.xlane.f32.xlu0 %v941_v55  ;;  %v879_v15 = vpop.xlane.xlu0 %878  ;;  %v945_v7 = vsel %vm664_vm0, %v846_v60, 0.0  ;;  %v947_v52 = vsel %vm664_vm0, %v847_v9, 0.0  ;;  %v1028_v9 = vmul.f32 %v3958_v47, %v6580_v53  ;;  %v3818_v53 = vld [vmem:[%s4787_s9 + $0x12c] ss:$24 sps:$4 sm:$0xff]  }
 0x19d   : > { %v875_v51 = vpop.xlane.xlu1 %874  ;;  %3965 = vrsqrt.f32 %v980_v3  ;;  %v958_v19 = vmul.f32 0.0026041667, %v879_v15  ;;  %v946_v35 = vadd.f32 %v945_v7, %v944_v2 }
 0x19e   : > { %v957_v48 = vmul.f32 0.0026041667, %v875_v51  ;;  %v3960_v23 = vpop.eup %3959  ;;  %3967 = vrsqrt.f32 %v981_v57  ;;  %v6581_v51 = vld [vmem:[#allocation30_spill] sm:$0xff] }
 0x19f   : > { %v983_v1 = vadd.f32 1e-06, %v958_v19  ;;  %v948_v12 = vadd.f32 %v947_v52, %v946_v35  ;;  %v1030_v13 = vmul.f32 %v3960_v23, %v4899_v25  ;;  %v1031_v3 = vmul.f32 %v3960_v23, %v4902_v26  ;;  %v3813_v25 = vld [vmem:[%s4787_s9 + $0x158] ss:$24 sps:$4 sm:$0xff]  }
 0x1a0   : > { %v982_v29 = vadd.f32 1e-06, %v957_v48  ;;  %v1026_v2 = vmul.f32 %v3958_v47, %v6581_v51  ;;  %v1029_v57 = vmul.f32 %v3960_v23, %v4896_v24  ;;  %v3828_v26 = vld [vmem:[%s4787_s9 + $0x458] ss:$24 sps:$4 sm:$0xff]   ;;  %v3839_v24 = vld [vmem:[%s4787_s9 + $0x42c] ss:$24 sps:$4 sm:$0xff]  }
 0x1a1   : > { %v883_v55 = vpop.xlane.xlu1 %882  ;;  %v887_v60 = vpop.xlane.xlu0 %886  ;;  %949 = vadd.xlane.f32.xlu1 %v948_v12  ;;  %v5287_v7 = vpack.c.bf16 %v1030_v13, %v1027_v11  ;;  %v5290_v52 = vpack.c.bf16 %v1031_v3, %v1028_v9  ;;  %v6586_v9 = vld [vmem:[#allocation35_spill] sm:$0xff] }
 0x1a2   : > { %3969 = vrsqrt.f32 %v982_v29  ;;  %v959_v58 = vmul.f32 0.0026041667, %v883_v55  ;;  %v960_v15 = vmul.f32 0.0026041667, %v887_v60  ;;  %v5292_v48 = vpack.c.bf16 %v1029_v57, %v1026_v2  ;;  %v3962_v19 = vpop.eup %3961  ;;  %v6585_v55 = vld [vmem:[#allocation34_spill] sm:$0xff] }
 0x1a3   : > { %3971 = vrsqrt.f32 %v983_v1  ;;  %6582 = vst [vmem:[#allocation12_spill] sm:$0xff] %v5290_v52  ;;  %2068 = vmatprep.mubr.bf16.mxu0 %v5287_v7  ;;  %2230 = vmatmul.mubr.bf16.vlgmr.msra.gmra.mxu1 %v5290_v52  ;;  %v6584_v29 = vmov 0   ;;  %v3816_v1 = vld [vmem:[%s4787_s9 + $0x128] ss:$24 sps:$4 sm:$0xff]   ;;  %v1033_v60 = vmul.f32 %v3962_v19, %v6585_v55  ;;  %v1034_v3 = vmul.f32 %v3962_v19, %v6586_v9  ;;  %v3821_v51 = vld [vmem:[%s4787_s9 + $0xfc] ss:$24 sps:$4 sm:$0xff]  }
 0x1a4   : > { %6583 = vst [vmem:[#allocation16_spill] sm:$0xff] %v5292_v48  ;;  %v984_v47 = vadd.f32 1e-06, %v959_v58  ;;  %v985_v35 = vadd.f32 1e-06, %v960_v15  ;;  %2069 = vmatmul.mubr.bf16.vlgmr.msra.gmra.mxu0 %v5292_v48  ;;  %2239 = vmatprep.mubr.bf16.mxu1 %v6584_v29 }
 0x1a5   : > { %v895_v23 = vpop.xlane.xlu0 %894  ;;  %2359 = vmatpush1.bf16.msra.mxu1 %v3813_v25  ;;  %2520 = vmatpush1.bf16.msra.mxu0 %v3828_v26  ;;  %v3837_v2 = vld [vmem:[%s4787_s9 + $0x428] ss:$24 sps:$4 sm:$0xff]   ;;  %v3819_v26 = vld [vmem:[%s4787_s9 + $0xf8] ss:$24 sps:$4 sm:$0xff]  }
 0x1a6   : > { %3973 = vrsqrt.f32 %v984_v47  ;;  %v891_v12 = vpop.xlane.xlu1 %890  ;;  %v962_v11 = vmul.f32 0.0026041667, %v895_v23  ;;  %v3964_v13 = vpop.eup %3963  ;;  %2360 = vmatprep.subr.bf16.mxu1 %v3818_v53  ;;  %v6587_v25 = vld [vmem:[#allocation36_spill] sm:$0xff]  ;;  %2521 = vmatprep.subr.bf16.mxu0 %v3839_v24  ;;  %v6588_v23 = vld [vmem:[#allocation33_spill] sm:$0xff] }
 0x1a7   : > { %3975 = vrsqrt.f32 %v985_v35  ;;  %v961_v57 = vmul.f32 0.0026041667, %v891_v12  ;;  %v1036_v58 = vmul.f32 %v3964_v13, %v4914_v21  ;;  %v1037_v15 = vmul.f32 %v3964_v13, %v4917_v22  ;;  %v3848_v35 = vld [vmem:[%s4787_s9 + $0x3fc] ss:$24 sps:$4 sm:$0xff]   ;;  %v3824_v21 = vld [vmem:[%s4787_s9 + $0xcc] ss:$24 sps:$4 sm:$0xff]  }
 0x1a8   : > { %v1035_v47 = vmul.f32 %v3964_v13, %v6587_v25  ;;  %v1032_v55 = vmul.f32 %v3962_v19, %v6588_v23  ;;  %v987_v52 = vadd.f32 1e-06, %v962_v11  ;;  %v3846_v22 = vld [vmem:[%s4787_s9 + $0x3f8] ss:$24 sps:$4 sm:$0xff]   ;;  %v3857_v11 = vld [vmem:[%s4787_s9 + $0x3cc] ss:$24 sps:$4 sm:$0xff]  }
 0x1a9   : > { %v5311_v9 = vpack.c.bf16 %v1036_v58, %v1033_v60  ;;  %v5313_v53 = vpack.c.bf16 %v1037_v15, %v1034_v3  ;;  %2361 = vmatpush1.bf16.msra.mxu1 %v3816_v1  ;;  %2522 = vmatpush1.bf16.msra.mxu0 %v3837_v2  ;;  %v986_v24 = vadd.f32 1e-06, %v961_v57  ;;  %v903_v25 = vpop.xlane.xlu0 %902 }
 0x1aa   : > { %v3966_v12 = vpop.eup %3965  ;;  %v5316_v48 = vpack.c.bf16 %v1035_v47, %v1032_v55  ;;  %2362 = vmatprep.subr.bf16.mxu1 %v3821_v51  ;;  %2523 = vmatprep.subr.bf16.mxu0 %v3848_v35  ;;  %3977 = vrsqrt.f32 %v987_v52  ;;  %v964_v57 = vmul.f32 0.0026041667, %v903_v25  ;;  %v3827_v35 = vld [vmem:[%s4787_s9 + $0x9c] ss:$24 sps:$4 sm:$0xff]   ;;  %v3833_v25 = vld [vmem:[%s4787_s9 + $0x6c] ss:$24 sps:$4 sm:$0xff]  }
 0x1ab   : > { %v3968_v13 = vpop.eup %3967  ;;  %2078 = vmatprep.mubr.bf16.mxu0 %v5311_v9  ;;  %v1039_v19 = vmul.f32 %v3966_v12, %v4933_v41  ;;  %v899_v60 = vpop.xlane.xlu1 %898  ;;  %2240 = vmatmul.mubr.bf16.gmra.mxu1 %v5313_v53  ;;  %v1040_v3 = vmul.f32 %v3966_v12, %v4936_v16  ;;  %v1038_v51 = vmul.f32 %v3966_v12, %v4930_v5  ;;  %v3822_v41 = vld [vmem:[%s4787_s9 + $0xc8] ss:$24 sps:$4 sm:$0xff]   ;;  %3979 = vrsqrt.f32 %v986_v24 }
 0x1ac   : > { %2079 = vmatmul.mubr.bf16.gmra.mxu0 %v5316_v48  ;;  %v1042_v1 = vmul.f32 %v3968_v13, %v4942_v4  ;;  %2249 = vmatprep.mubr.bf16.mxu1 %v6584_v29  ;;  %v1043_v15 = vmul.f32 %v3968_v13, %v4945_v28  ;;  %v1041_v47 = vmul.f32 %v3968_v13, %v4939_v42  ;;  %v3855_v4 = vld [vmem:[%s4787_s9 + $0x3c8] ss:$24 sps:$4 sm:$0xff]   ;;  %v963_v16 = vmul.f32 0.0026041667, %v899_v60 }
 0x1ad   : > { %2363 = vmatpush1.bf16.msra.mxu1 %v3819_v26  ;;  %2524 = vmatpush1.bf16.msra.mxu0 %v3846_v22  ;;  %v989_v23 = vadd.f32 1e-06, %v964_v57  ;;  %v911_v55 = vpop.xlane.xlu0 %910  ;;  %v3866_v22 = vld [vmem:[%s4787_s9 + $0x39c] ss:$24 sps:$4 sm:$0xff]   ;;  %v3831_v57 = vld [vmem:[%s4787_s9 + $0x68] ss:$24 sps:$4 sm:$0xff]  }
 0x1ae   : > { %v5330_v58 = vpack.c.bf16 %v1042_v1, %v1039_v19  ;;  %2364 = vmatprep.subr.bf16.mxu1 %v3824_v21  ;;  %2525 = vmatprep.subr.bf16.mxu0 %v3857_v11  ;;  %v5339_v26 = vpack.c.bf16 %v1043_v15, %v1040_v3  ;;  %v5341_v12 = vpack.c.bf16 %v1041_v47, %v1038_v51  ;;  %v3825_v21 = vld [vmem:[%s4787_s9 + $0x98] ss:$24 sps:$4 sm:$0xff]   ;;  %v988_v13 = vadd.f32 1e-06, %v963_v16  ;;  %v6590_v51 = vld [vmem:[#allocation37_spill] sm:$0xff] }
 0x1af   : > { %v3970_v2 = vpop.eup %3969  ;;  %v3864_v19 = vld [vmem:[%s4787_s9 + $0x398] ss:$24 sps:$4 sm:$0xff]   ;;  %v966_v11 = vmul.f32 0.0026041667, %v911_v55  ;;  %3981 = vrsqrt.f32 %v989_v23 }
 0x1b0   : > { %v3972_v52 = vpop.eup %3971  ;;  %v1045_v5 = vmul.f32 %v3970_v2, %v4959_v17  ;;  %2088 = vmatprep.mubr.bf16.mxu0 %v5330_v58  ;;  %6589 = vst [vmem:[#allocation20_spill] sm:$0xff] %v5339_v26  ;;  %v1046_v60 = vmul.f32 %v3970_v2, %v4962_v63  ;;  %v1044_v3 = vmul.f32 %v3970_v2, %v4956_v45  ;;  %3983 = vrsqrt.f32 %v988_v13  ;;  %v3836_v63 = vld [vmem:[%s4787_s9 + $0x3c] ss:$24 sps:$4 sm:$0xff]  }
 0x1b1   : > { %v1048_v28 = vmul.f32 %v3972_v52, %v4968_v30  ;;  %2365 = vmatpush1.bf16.msra.mxu1 %v3822_v41  ;;  %2526 = vmatpush1.bf16.msra.mxu0 %v3855_v4  ;;  %v907_v30 = vpop.xlane.xlu1 %906  ;;  %v1049_v1 = vmul.f32 %v3972_v52, %v4971_v31  ;;  %v1047_v41 = vmul.f32 %v3972_v52, %v6590_v51  ;;  %v991_v4 = vadd.f32 1e-06, %v966_v11  ;;  %v919_v16 = vpop.xlane.xlu0 %918  ;;  %v3834_v52 = vld [vmem:[%s4787_s9 + $0x38] ss:$24 sps:$4 sm:$0xff]  }
 0x1b2   : > { %2366 = vmatprep.subr.bf16.mxu1 %v3827_v35  ;;  %2527 = vmatprep.subr.bf16.mxu0 %v3866_v22  ;;  %v965_v15 = vmul.f32 0.0026041667, %v907_v30  ;;  %v968_v55 = vmul.f32 0.0026041667, %v919_v16  ;;  %v6597_v16 = vld [vmem:[#allocation38_spill] sm:$0xff] }
 0x1b3   : > { %v3974_v42 = vpop.eup %3973  ;;  %v5345_v24 = vpack.c.bf16 %v1048_v28, %v1045_v5  ;;  %2250 = vmatmul.mubr.bf16.gmra.mxu1 %v5339_v26  ;;  %v5361_v45 = vpack.c.bf16 %v1049_v1, %v1046_v60  ;;  %v5363_v2 = vpack.c.bf16 %v1047_v41, %v1044_v3  ;;  %3985 = vrsqrt.f32 %v991_v4  ;;  %v3845_v1 = vld [vmem:[%s4787_s9 + $0x2dc] ss:$24 sps:$4 sm:$0xff]  }
 0x1b4   : > { %v3976_v17 = vpop.eup %3975  ;;  %2089 = vmatmul.mubr.bf16.gmra.mxu0 %v5341_v12  ;;  %2259 = vmatprep.mubr.bf16.mxu1 %v6584_v29  ;;  %v1051_v47 = vmul.f32 %v3974_v42, %v4988_v37  ;;  %v990_v5 = vadd.f32 1e-06, %v965_v15  ;;  %v3842_v37 = vld [vmem:[%s4787_s9 + $0xc] ss:$24 sps:$4 sm:$0xff]   ;;  %v1050_v13 = vmul.f32 %v3974_v42, %v4985_v0  ;;  %v3843_v0 = vld [vmem:[%s4787_s9 + $0x2d8] ss:$24 sps:$4 sm:$0xff]  }
 0x1b5   : > { %2098 = vmatprep.mubr.bf16.mxu0 %v5345_v24  ;;  %2367 = vmatpush1.bf16.msra.mxu1 %v3825_v21  ;;  %v1054_v35 = vmul.f32 %v3976_v17, %v4997_v32  ;;  %6591 = vst [vmem:[#allocation21_spill] sm:$0xff] %v5361_v45  ;;  %6592 = vst [vmem:[#allocation23_spill] sm:$0xff] %v5363_v2  ;;  %v915_v32 = vpop.xlane.xlu1 %914  ;;  %v1052_v21 = vmul.f32 %v3974_v42, %v4991_v18  ;;  %v993_v18 = vadd.f32 1e-06, %v968_v55  ;;  %v927_v51 = vpop.xlane.xlu0 %926  ;;  %v3873_v15 = vld [vmem:[%s4787_s9 + $0x368] ss:$24 sps:$4 sm:$0xff]  }
 0x1b6   : > { %2368 = vmatprep.subr.bf16.mxu1 %v3833_v25  ;;  %2528 = vmatpush1.bf16.msra.mxu0 %v3864_v19  ;;  %v1055_v22 = vmul.f32 %v3976_v17, %v5000_v54  ;;  %v1053_v25 = vmul.f32 %v3976_v17, %v4994_v39  ;;  %v3840_v19 = vld [vmem:[%s4787_s9 + $0x8] ss:$24 sps:$4 sm:$0xff]   ;;  %3987 = vrsqrt.f32 %v990_v5  ;;  %v967_v30 = vmul.f32 0.0026041667, %v915_v32  ;;  %v3875_v39 = vld [vmem:[%s4787_s9 + $0x36c] ss:$24 sps:$4 sm:$0xff]  }
 0x1b7   : > { %v3978_v31 = vpop.eup %3977  ;;  %v5366_v28 = vpack.c.bf16 %v1054_v35, %v1051_v47  ;;  %3989 = vrsqrt.f32 %v993_v18  ;;  %v970_v35 = vmul.f32 0.0026041667, %v927_v51  ;;  %v6598_v5 = vld [vmem:[#allocation39_spill] sm:$0xff]  ;;  %v3849_v32 = vld [vmem:[%s4787_s9 + $0x2a8] ss:$24 sps:$4 sm:$0xff]   ;;  %2529 = vmatprep.subr.bf16.mxu0 %v3875_v39 }
 0x1b8   : > { %v3980_v23 = vpop.eup %3979  ;;  %v1060_v60 = vmul.f32 %v3978_v31, %v5025_v38  ;;  %v5381_v3 = vpack.c.bf16 %v1055_v22, %v1052_v21  ;;  %v5383_v54 = vpack.c.bf16 %v1053_v25, %v1050_v13  ;;  %v992_v17 = vadd.f32 1e-06, %v967_v30  ;;  %v3881_v55 = vld [vmem:[%s4787_s9 + $0x33c] ss:$24 sps:$4 sm:$0xff]   ;;  %v6600_v25 = vld [vmem:[#allocation44_spill] sm:$0xff] }
 0x1b9   : > { %2369 = vmatpush1.bf16.msra.mxu1 %v3831_v57  ;;  %6593 = vst [vmem:[#allocation17_spill] sm:$0xff] %v5366_v28  ;;  %v1057_v11 = vmul.f32 %v3980_v23, %v5018_v50  ;;  %v3851_v50 = vld [vmem:[%s4787_s9 + $0x2ac] ss:$24 sps:$4 sm:$0xff]   ;;  %v923_v57 = vpop.xlane.xlu1 %922  ;;  %v1058_v47 = vmul.f32 %v3980_v23, %v5031_v49  ;;  %v6599_v22 = vld [vmem:[#allocation42_spill] sm:$0xff]  ;;  %v935_v30 = vpop.xlane.xlu0 %934 }
 0x1ba   : > { %2370 = vmatprep.subr.bf16.mxu1 %v3836_v63  ;;  %6594 = vst [vmem:[#allocation18_spill] sm:$0xff] %v5381_v3  ;;  %v6596_v63 = vld [vmem:[#allocation40_spill] sm:$0xff]  ;;  %3991 = vrsqrt.f32 %v992_v17  ;;  %v969_v21 = vmul.f32 0.0026041667, %v923_v57  ;;  %v3854_v49 = vld [vmem:[%s4787_s9 + $0x27c] ss:$24 sps:$4 sm:$0xff]   ;;  %2530 = vmatpush1.bf16.msra.mxu0 %v3873_v15 }
 0x1bb   : > { %2260 = vmatmul.mubr.bf16.gmra.mxu1 %v5361_v45  ;;  %v5387_v41 = vpack.c.bf16 %v1060_v60, %v1057_v11  ;;  %v1061_v4 = vmul.f32 %v3978_v31, %v6596_v63  ;;  %2531 = vmatprep.subr.bf16.mxu0 %v3881_v55  ;;  %v3879_v18 = vld [vmem:[%s4787_s9 + $0x338] ss:$24 sps:$4 sm:$0xff]   ;;  %v3860_v17 = vld [vmem:[%s4787_s9 + $0x24c] ss:$24 sps:$4 sm:$0xff]   ;;  %v972_v15 = vmul.f32 0.0026041667, %v935_v30 }
 0x1bc   : > { %2099 = vmatmul.mubr.bf16.gmra.mxu0 %v5363_v2  ;;  %2269 = vmatprep.mubr.bf16.mxu1 %v6584_v29  ;;  %v3982_v42 = vpop.eup %3981  ;;  %v3884_v51 = vld [vmem:[%s4787_s9 + $0x30c] ss:$24 sps:$4 sm:$0xff]   ;;  %v3882_v55 = vld [vmem:[%s4787_s9 + $0x308] ss:$24 sps:$4 sm:$0xff]   ;;  %v3861_v30 = vld [vmem:[%s4787_s9 + $0x218] ss:$24 sps:$4 sm:$0xff]  }
 0x1bd   : > { %2108 = vmatprep.mubr.bf16.mxu0 %v5366_v28  ;;  %2371 = vmatpush1.bf16.msra.mxu1 %v3834_v52  ;;  %6595 = vst [vmem:[#allocation22_spill] sm:$0xff] %v5387_v41  ;;  %v3984_v38 = vpop.eup %3983  ;;  %v1056_v52 = vmul.f32 %v3980_v23, %v6597_v16  ;;  %v5404_v11 = vpack.c.bf16 %v1061_v4, %v1058_v47  ;;  %v931_v57 = vpop.xlane.xlu1 %930  ;;  %v6601_v47 = vld [vmem:[#allocation46_spill] sm:$0xff]  ;;  %v6602_v63 = vld [vmem:[#allocation45_spill] sm:$0xff] }
 0x1be   : > { %2372 = vmatprep.subr.bf16.mxu1 %v3842_v37  ;;  %v1059_v37 = vmul.f32 %v3978_v31, %v6598_v5  ;;  %v1063_v13 = vmul.f32 %v3984_v38, %v6599_v22  ;;  %v995_v31 = vadd.f32 1e-06, %v970_v35  ;;  %v1064_v35 = vmul.f32 %v3984_v38, %v6601_v47  ;;  %v6603_v16 = vld [vmem:[#allocation41_spill] sm:$0xff]  ;;  %v6604_v5 = vld [vmem:[#allocation43_spill] sm:$0xff]  ;;  %2532 = vmatpush1.bf16.msra.mxu0 %v3879_v18 }
 0x1bf   : > { %v1067_v4 = vmul.f32 %v3982_v42, %v6602_v63  ;;  %2533 = vmatprep.subr.bf16.mxu0 %v3884_v51  ;;  %v6606_v51 = vld [vmem:[#allocation50_spill] sm:$0xff] }
 0x1c0   : > { %v3986_v23 = vpop.eup %3985  ;;  %v5406_v60 = vpack.c.bf16 %v1059_v37, %v1056_v52  ;;  %3993 = vrsqrt.f32 %v995_v31  ;;  %v1062_v52 = vmul.f32 %v3984_v38, %v6603_v16  ;;  %v1065_v37 = vmul.f32 %v3982_v42, %v6604_v5 }
 0x1c1   : > { %2373 = vmatpush1.bf16.msra.mxu1 %v3840_v19  ;;  %v1066_v19 = vmul.f32 %v3982_v42, %v6600_v25  ;;  %v5427_v38 = vpack.c.bf16 %v1067_v4, %v1064_v35  ;;  %v6608_v35 = vld [vmem:[#allocation48_spill] sm:$0xff] }
 0x1c2   : > { %2374 = vmatprep.subr.bf16.mxu1 %v3845_v1  ;;  %v3852_v1 = vld [vmem:[%s4787_s9 + $0x278] ss:$24 sps:$4 sm:$0xff]   ;;  %v5429_v42 = vpack.c.bf16 %v1065_v37, %v1062_v52  ;;  %2534 = vmatpush1.bf16.msra.mxu0 %v3882_v55  ;;  %v1071_v63 = vmul.f32 %v3986_v23, %v6608_v35  ;;  %v3867_v4 = vld [vmem:[%s4787_s9 + $0x1e8] ss:$24 sps:$4 sm:$0xff]   ;;  %v3872_v37 = vld [vmem:[%s4787_s9 + $0x1bc] ss:$24 sps:$4 sm:$0xff]  }
 0x1c3   : > { %2270 = vmatmul.mubr.bf16.gmra.mxu1 %v5381_v3  ;;  %v5410_v39 = vpack.c.bf16 %v1066_v19, %v1063_v13  ;;  %v6605_v13 = vld [vmem:[#allocation49_spill] sm:$0xff]  ;;  %v3863_v19 = vld [vmem:[%s4787_s9 + $0x21c] ss:$24 sps:$4 sm:$0xff]  }
 0x1c4   : > { %2109 = vmatmul.mubr.bf16.gmra.mxu0 %v5383_v54  ;;  %2279 = vmatprep.mubr.bf16.mxu1 %v6584_v29  ;;  %v1072_v25 = vmul.f32 %v3986_v23, %v6605_v13  ;;  %v6609_v52 = vld [vmem:[#allocation5_spill] sm:$0xff] }
 0x1c5   : > { %2118 = vmatprep.mubr.bf16.mxu0 %v5387_v41  ;;  %2375 = vmatpush2.bf16.msra.mxu1 %v3843_v0  ;;  %v994_v0 = vadd.f32 1e-06, %v969_v21  ;;  %v971_v21 = vmul.f32 0.0026041667, %v931_v57  ;;  %v1073_v57 = vmul.f32 %v3986_v23, %v6606_v51  ;;  %v3878_v23 = vld [vmem:[%s4787_s9 + $0x18c] ss:$24 sps:$4 sm:$0xff]  }
 0x1c6   : > { %2376 = vmatprep.subr.bf16.mxu1 %v3851_v50  ;;  %v3988_v50 = vpop.eup %3987 }
 0x1c7   : > { %3995 = vrsqrt.f32 %v994_v0  ;;  %v1069_v22 = vmul.f32 %v3988_v50, %v5090_v62  ;;  %v3990_v31 = vpop.eup %3989  ;;  %v3869_v62 = vld [vmem:[%s4787_s9 + $0x1ec] ss:$24 sps:$4 sm:$0xff]  }
 0x1c8   : > { %v3992_v0 = vpop.eup %3991  ;;  %v1078_v5 = vmul.f32 %v3990_v31, %v6609_v52  ;;  %v1079_v13 = vmul.f32 %v3990_v31, %v5116_v14  ;;  %v5490_v52 = vld [vmem:[%s4787_s9 + $0x464] ss:$24 sps:$4 sm:$0xff]  }
 0x1c9   : > { %2377 = vmatpush2.bf16.msra.mxu1 %v3849_v32  ;;  %v3858_v32 = vld [vmem:[%s4787_s9 + $0x248] ss:$24 sps:$4 sm:$0xff]   ;;  %v5432_v18 = vpack.c.bf16 %v1072_v25, %v1069_v22  ;;  %v1075_v16 = vmul.f32 %v3992_v0, %v5124_v46  ;;  %v1076_v46 = vmul.f32 %v3992_v0, %v5127_v36  ;;  %v1074_v25 = vmul.f32 %v3992_v0, %v5121_v8 }
 0x1ca   : > { %2378 = vmatprep.subr.bf16.mxu1 %v3854_v49  ;;  %v997_v49 = vadd.f32 1e-06, %v972_v15  ;;  %v6607_v15 = vld [vmem:[#allocation47_spill] sm:$0xff]  ;;  %2841 = vmatprep.subr.bf16.mxu0 %v5490_v52 }
 0x1cb   : > { %2280 = vmatmul.mubr.bf16.gmra.mxu1 %v5404_v11  ;;  %v1068_v47 = vmul.f32 %v3988_v50, %v6607_v15 }
 0x1cc   : > { %2119 = vmatmul.mubr.bf16.gmra.mxu0 %v5406_v60  ;;  %2289 = vmatprep.mubr.bf16.mxu1 %v6584_v29  ;;  %3997 = vrsqrt.f32 %v997_v49 }
 0x1cd   : > { %2128 = vmatprep.mubr.bf16.mxu0 %v5410_v39  ;;  %2379 = vmatpush2.bf16.msra.mxu1 %v3852_v1  ;;  %v996_v1 = vadd.f32 1e-06, %v971_v21  ;;  %v5449_v55 = vpack.c.bf16 %v1071_v63, %v1068_v47  ;;  %v5452_v21 = vpack.c.bf16 %v1078_v5, %v1075_v16 }
 0x1ce   : > { %2380 = vmatprep.subr.bf16.mxu1 %v3860_v17  ;;  %v1070_v17 = vmul.f32 %v3988_v50, %v5095_v34  ;;  %v3870_v34 = vld [vmem:[%s4787_s9 + $0x1b8] ss:$24 sps:$4 sm:$0xff]   ;;  %v3994_v50 = vpop.eup %3993 }
 0x1cf   : > { %3999 = vrsqrt.f32 %v996_v1 }
 0x1d1   : > { %2381 = vmatpush2.bf16.msra.mxu1 %v3858_v32  ;;  %v5447_v32 = vpack.c.bf16 %v1073_v57, %v1070_v17  ;;  %v3887_v17 = vld [vmem:[%s4787_s9 + $0x164] ss:$24 sps:$4 sm:$0xff]   ;;  %v5467_v57 = vpack.c.bf16 %v1079_v13, %v1076_v46 }
 0x1d2   : > { %2382 = vmatprep.subr.bf16.mxu1 %v3863_v19  ;;  %v6610_v19 = vld [vmem:[#allocation4_spill] sm:$0xff] }
 0x1d3   : > { %2290 = vmatmul.mubr.bf16.gmra.mxu1 %v5427_v38  ;;  %v1077_v49 = vmul.f32 %v3990_v31, %v6610_v19  ;;  %v6611_v31 = vld [vmem:[#allocation8_spill] sm:$0xff] }
 0x1d4   : > { %2129 = vmatmul.mubr.bf16.gmra.mxu0 %v5429_v42  ;;  %2299 = vmatprep.mubr.bf16.mxu1 %v6584_v29  ;;  %v3996_v22 = vpop.eup %3995  ;;  %v1083_v0 = vmul.f32 %v3994_v50, %v6611_v31 }
 0x1d5   : > { %2138 = vmatprep.mubr.bf16.mxu0 %v5432_v18  ;;  %2383 = vmatpush2.bf16.msra.mxu1 %v3861_v30  ;;  %v3876_v30 = vld [vmem:[%s4787_s9 + $0x188] ss:$24 sps:$4 sm:$0xff]   ;;  %v1081_v1 = vmul.f32 %v3996_v22, %v5161_v43  ;;  %v5469_v15 = vpack.c.bf16 %v1077_v49, %v1074_v25  ;;  %v1082_v43 = vmul.f32 %v3996_v22, %v5164_v33 }
 0x1d6   : > { %2384 = vmatprep.subr.bf16.mxu1 %v3869_v62  ;;  %v1084_v62 = vmul.f32 %v3994_v50, %v5151_v27  ;;  %v1085_v27 = vmul.f32 %v3994_v50, %v5154_v56  ;;  %v1080_v8 = vmul.f32 %v3996_v22, %v5157_v59  ;;  %v6612_v59 = vld [vmem:[#allocation9_spill] sm:$0xff] }
 0x1d8   : > { %v5471_v36 = vpack.c.bf16 %v1084_v62, %v1081_v1  ;;  %v5483_v63 = vpack.c.bf16 %v1085_v27, %v1082_v43  ;;  %v6614_v62 = vld [vmem:[#allocation10_spill] sm:$0xff]  ;;  %v6616_v43 = vld [vmem:[#allocation13_spill] sm:$0xff] }
 0x1d9   : > { %2385 = vmatpush2.bf16.msra.mxu1 %v3867_v4  ;;  %v3998_v51 = vpop.eup %3997  ;;  %v5485_v4 = vpack.c.bf16 %v1083_v0, %v1080_v8  ;;  %v6617_v8 = vld [vmem:[#allocation7_spill] sm:$0xff] }
 0x1da   : > { %2386 = vmatprep.subr.bf16.mxu1 %v3872_v37  ;;  %v1090_v35 = vmul.f32 %v3998_v51, %v5182_v10  ;;  %v1091_v56 = vmul.f32 %v3998_v51, %v5185_v61  ;;  %v1089_v10 = vmul.f32 %v3998_v51, %v6612_v59  ;;  %v6615_v51 = vld [vmem:[#allocation14_spill] sm:$0xff] }
 0x1db   : > { %2300 = vmatmul.mubr.bf16.gmra.mxu1 %v5447_v32 }
 0x1dc   : > { %2139 = vmatmul.mubr.bf16.gmra.mxu0 %v5449_v55  ;;  %2309 = vmatprep.mubr.bf16.mxu1 %v6584_v29  ;;  %v4000_v14 = vpop.eup %3999 }
 0x1dd   : > { %2148 = vmatprep.mubr.bf16.mxu0 %v5452_v21  ;;  %2387 = vmatpush2.bf16.msra.mxu1 %v3870_v34  ;;  %v1087_v47 = vmul.f32 %v4000_v14, %v5191_v40  ;;  %v1088_v33 = vmul.f32 %v4000_v14, %v5194_v20  ;;  %v1086_v40 = vmul.f32 %v4000_v14, %v5188_v6 }
 0x1de   : > { %2388 = vmatprep.subr.bf16.mxu1 %v3878_v23 }
 0x1df   : > { %v5487_v16 = vpack.c.bf16 %v1090_v35, %v1087_v47  ;;  %v5501_v5 = vpack.c.bf16 %v1091_v56, %v1088_v33  ;;  %v5503_v37 = vpack.c.bf16 %v1089_v10, %v1086_v40  ;;  %v6619_v40 = vld [vmem:[#allocation11_spill] sm:$0xff] }
 0x1e1   : > { %2389 = vmatpush2.bf16.msra.mxu1 %v3876_v30  ;;  %v6613_v30 = vld [vmem:[#allocation6_spill] sm:$0xff] }
 0x1e2   : > { %2680 = vmatprep.subr.bf16.mxu1 %v3887_v17 }
 0x1e3   : > { %2310 = vmatmul.mubr.bf16.gmra.mxu1 %v5467_v57 }
 0x1e4   : > { %2149 = vmatmul.mubr.bf16.gmra.mxu0 %v5469_v15  ;;  %2319 = vmatprep.mubr.bf16.mxu1 %v6584_v29 }
 0x1e5   : > { %2158 = vmatprep.mubr.bf16.mxu0 %v5471_v36 }
 0x1eb   : > { %2320 = vmatmul.mubr.bf16.gmra.mxu1 %v5483_v63 }
 0x1ec   : > { %2159 = vmatmul.mubr.bf16.gmra.mxu0 %v5485_v4  ;;  %2329 = vmatprep.mubr.bf16.mxu1 %v6584_v29 }
 0x1ed   : > { %2168 = vmatprep.mubr.bf16.mxu0 %v5487_v16 }
 0x1f3   : > { %2330 = vmatmul.mubr.bf16.gmra.mxu1 %v5501_v5 }
 0x1f4   : > { %2169 = vmatmul.mubr.bf16.gmra.mxu0 %v5503_v37  ;;  %2339 = vmatprep.mubr.bf16.mxu1 %v6584_v29 }
 0x221   : > { %v939_v34 = vpop.xlane.xlu1 %938 }
 0x222   : > { %v973_v20 = vmul.f32 0.0026041667, %v939_v34  ;;  %v6620_v34 = vld [vmem:[#allocation15_spill] sm:$0xff] }
 0x224   : > { %v998_v50 = vadd.f32 1e-06, %v973_v20 }
 0x225   : > { %v943_v61 = vpop.xlane.xlu0 %942 }
 0x226   : > { %v974_v23 = vmul.f32 0.0026041667, %v943_v61  ;;  %4001 = vrsqrt.f32 %v998_v50 }
 0x228   : > { %v999_v6 = vadd.f32 1e-06, %v974_v23  ;;  %v3885_v23 = vld [vmem:[%s4787_s9 + $0x160] ss:$24 sps:$4 sm:$0xff]  }
 0x22a   : > { %4003 = vrsqrt.f32 %v999_v6  ;;  %v950_v22 = vpop.xlane.xlu1 %949  ;;  %v3890_v6 = vld [vmem:[%s4787_s9 + $0x134] ss:$24 sps:$4 sm:$0xff]  }
 0x22b   : > { %v975_v46 = vmul.f32 0.0026041667, %v950_v22  ;;  %v5541_v22 = vld [vmem:[%s4787_s9 + $0x460] ss:$24 sps:$4 sm:$0xff]  }
 0x22d   : > { %v1000_v13 = vadd.f32 1e-06, %v975_v46  ;;  %v6621_v46 = vld [vmem:[#allocation16_spill] sm:$0xff] }
 0x22f   : > { %4005 = vrsqrt.f32 %v1000_v13  ;;  %v5545_v13 = vld [vmem:[%s4787_s9 + $0x434] ss:$24 sps:$4 sm:$0xff]  }
 0x233   : > { %v4002_v25 = vpop.eup %4001 }
 0x234   : > { %v1093_v49 = vmul.f32 %v4002_v25, %v5237_v44  ;;  %v1094_v1 = vmul.f32 %v4002_v25, %v6613_v30  ;;  %v1092_v27 = vmul.f32 %v4002_v25, %v6616_v43  ;;  %v6618_v44 = vld [vmem:[#allocation19_spill] sm:$0xff]  ;;  %v3888_v25 = vld [vmem:[%s4787_s9 + $0x130] ss:$24 sps:$4 sm:$0xff]  }
 0x235   : > { %v5555_v30 = vld [vmem:[%s4787_s9 + $0x430] ss:$24 sps:$4 sm:$0xff]  }
 0x236   : > { %v3894_v43 = vld [vmem:[%s4787_s9 + $0xd0] ss:$24 sps:$4 sm:$0xff]  }
 0x237   : > { %v4004_v19 = vpop.eup %4003 }
 0x238   : > { %v1096_v17 = vmul.f32 %v4004_v19, %v6614_v62  ;;  %v1097_v14 = vmul.f32 %v4004_v19, %v6615_v51  ;;  %v1095_v31 = vmul.f32 %v4004_v19, %v6617_v8  ;;  %v6622_v19 = vld [vmem:[#allocation12_spill] sm:$0xff] }
 0x239   : > { %v3891_v62 = vld [vmem:[%s4787_s9 + $0x100] ss:$24 sps:$4 sm:$0xff]   ;;  %v3899_v8 = vld [vmem:[%s4787_s9 + $0xa4] ss:$24 sps:$4 sm:$0xff]  }
 0x23a   : > { %v5514_v0 = vpack.c.bf16 %v1096_v17, %v1093_v49  ;;  %v5516_v47 = vpack.c.bf16 %v1097_v14, %v1094_v1  ;;  %v5518_v35 = vpack.c.bf16 %v1095_v31, %v1092_v27  ;;  %v3893_v49 = vld [vmem:[%s4787_s9 + $0x104] ss:$24 sps:$4 sm:$0xff]   ;;  %v3896_v17 = vld [vmem:[%s4787_s9 + $0xd4] ss:$24 sps:$4 sm:$0xff]   ;;  %v5569_v51 = vld [vmem:[%s4787_s9 + $0x400] ss:$24 sps:$4 sm:$0xff]   ;;  %v1286_v27 = vlaneseq }
 0x23b   : > { %v5559_v1 = vld [vmem:[%s4787_s9 + $0x404] ss:$24 sps:$4 sm:$0xff]   ;;  %v5574_v14 = vld [vmem:[%s4787_s9 + $0x3d4] ss:$24 sps:$4 sm:$0xff]   ;;  %v5585_v31 = vld [vmem:[%s4787_s9 + $0x3d0] ss:$24 sps:$4 sm:$0xff]  }
 0x23c   : > { %v4006_v33 = vpop.eup %4005  ;;  %2178 = vmatprep.mubr.bf16.mxu0 %v5514_v0  ;;  %2340 = vmatmul.mubr.bf16.gmra.mxu1 %v5516_v47 }
 0x23d   : > { %2179 = vmatmul.mubr.bf16.gmra.mxu0 %v5518_v35  ;;  %v1099_v56 = vmul.f32 %v4006_v33, %v6618_v44  ;;  %2349 = vmatprep.mubr.bf16.mxu1 %v6584_v29  ;;  %v1100_v59 = vmul.f32 %v4006_v33, %v6619_v40  ;;  %v1098_v20 = vmul.f32 %v4006_v33, %v6620_v34  ;;  %v5589_v33 = vld [vmem:[%s4787_s9 + $0x3a4] ss:$24 sps:$4 sm:$0xff]   ;;  %v5591_v44 = vshrl.u32 %v1286_v27, 7  ;;  %v3905_v40 = vld [vmem:[%s4787_s9 + $0x74] ss:$24 sps:$4 sm:$0xff]  }
 0x23e   : > { %v5607_v34 = vld [vmem:[%s4787_s9 + $0x374] ss:$24 sps:$4 sm:$0xff]   ;;  %v3906_v27 = vld [vmem:[%s4787_s9 + $0x40] ss:$24 sps:$4 sm:$0xff]  }
 0x23f   : > { %v5526_v10 = vpack.c.bf16 %v1099_v56, %v1099_v56  ;;  %v5530_v50 = vpack.c.bf16 %v1100_v59, %v1100_v59  ;;  %v5532_v61 = vpack.c.bf16 %v1098_v20, %v1098_v20  ;;  %6624 = vst [vmem:[#allocation24_spill] sm:$0xff] %v5591_v44  ;;  %v3897_v56 = vld [vmem:[%s4787_s9 + $0xa0] ss:$24 sps:$4 sm:$0xff]   ;;  %6625 = vst [vmem:[#allocation27_spill] sm:$0xff] %v5607_v34  ;;  %v1288_v20 = vsub.s32 0, %v5591_v44 }
 0x240   : > { %v5602_v59 = vld [vmem:[%s4787_s9 + $0x3a0] ss:$24 sps:$4 sm:$0xff]  }
 0x241   : > { %2188 = vmatprep.mubr.bf16.mxu0 %v5526_v10 }
 0x244   : > { %2350 = vmatmul.mubr.bf16.gmra.mxu1 %v5530_v50 }
 0x245   : > { %2189 = vmatmul.mubr.bf16.gmra.mxu0 %v5532_v61  ;;  %2390 = vmatprep.mubr.bf16.mxu1 %v5287_v7 }
 0x246   : > { %2551 = vmatprep.mubr.bf16.mxu0 %v6584_v29 }
 0x24c   : > { %2391 = vmatmul.mubr.bf16.vlgmr.msra.gmra.mxu1 %v6621_v46 }
 0x24d   : > { %2681 = vmatpush1.bf16.msra.mxu1 %v3885_v23  ;;  %2400 = vmatprep.mubr.bf16.mxu1 %v5311_v9  ;;  %v3903_v23 = vld [vmem:[%s4787_s9 + $0x70] ss:$24 sps:$4 sm:$0xff]  }
 0x24e   : > { %2552 = vmatmul.mubr.bf16.vlgmr.msra.gmra.mxu0 %v6622_v19  ;;  %2682 = vmatprep.subr.bf16.mxu1 %v3890_v6  ;;  %v5614_v6 = vld [vmem:[%s5598_s17] sm:$0x3f] }
 0x24f   : > { %2561 = vmatprep.mubr.bf16.mxu0 %v6584_v29  ;;  %2842 = vmatpush1.bf16.msra.mxu0 %v5541_v22  ;;  %6626 = vst [vmem:[#allocation28_spill] sm:$0xff] %v5614_v6 }
 0x250   : > { %2843 = vmatprep.subr.bf16.mxu0 %v5545_v13 }
 0x251   : > { %2683 = vmatpush1.bf16.msra.mxu1 %v3888_v25  ;;  %v3908_v25 = vld [vmem:[%s4787_s9 + $0x44] ss:$24 sps:$4 sm:$0xff]  }
 0x252   : > { %2684 = vmatprep.subr.bf16.mxu1 %v3893_v49  ;;  %v1292_v49 = vsub.s32 1, %v5591_v44 }
 0x253   : > { %2844 = vmatpush1.bf16.msra.mxu0 %v5555_v30 }
 0x254   : > { %2401 = vmatmul.mubr.bf16.gmra.mxu1 %v5316_v48  ;;  %2845 = vmatprep.subr.bf16.mxu0 %v5559_v1 }
 0x255   : > { %2410 = vmatprep.mubr.bf16.mxu1 %v5330_v58  ;;  %2685 = vmatpush1.bf16.msra.mxu1 %v3891_v62  ;;  %v5621_v62 = vld [vmem:[%s4787_s9 + $0x370] ss:$24 sps:$4 sm:$0xff]  }
 0x256   : > { %2562 = vmatmul.mubr.bf16.gmra.mxu0 %v5313_v53  ;;  %2686 = vmatprep.subr.bf16.mxu1 %v3896_v17  ;;  %6627 = vst [vmem:[#allocation29_spill] sm:$0xff] %v5621_v62  ;;  %v5625_v17 = vld [vmem:[%s4787_s9 + $0x344] ss:$24 sps:$4 sm:$0xff]  }
 0x257   : > { %2571 = vmatprep.mubr.bf16.mxu0 %v6584_v29  ;;  %2846 = vmatpush1.bf16.msra.mxu0 %v5569_v51  ;;  %6628 = vst [vmem:[#allocation25_spill] sm:$0xff] %v5625_v17 }
 0x258   : > { %2847 = vmatprep.subr.bf16.mxu0 %v5574_v14 }
 0x259   : > { %2687 = vmatpush1.bf16.msra.mxu1 %v3894_v43  ;;  %v5628_v43 = vrot.slane %v5614_v6, %v1288_v20 }
 0x25a   : > { %2688 = vmatprep.subr.bf16.mxu1 %v3899_v8  ;;  %v3914_v8 = vld [vmem:[%s4787_s9 + $0x14] ss:$24 sps:$4 sm:$0xff]  }
 0x25b   : > { %2848 = vmatpush1.bf16.msra.mxu0 %v5585_v31 }
 0x25c   : > { %2411 = vmatmul.mubr.bf16.gmra.mxu1 %v5341_v12  ;;  %2849 = vmatprep.subr.bf16.mxu0 %v5589_v33 }
 0x25d   : > { %2420 = vmatprep.mubr.bf16.mxu1 %v5345_v24  ;;  %2689 = vmatpush1.bf16.msra.mxu1 %v3897_v56  ;;  %v5635_v56 = vrot.slane %v5614_v6, %v1292_v49  ;;  %v3912_v49 = vld [vmem:[%s4787_s9 + $0x10] ss:$24 sps:$4 sm:$0xff]  }
 0x25e   : > { %2572 = vmatmul.mubr.bf16.gmra.mxu0 %v5339_v26  ;;  %2690 = vmatprep.subr.bf16.mxu1 %v3905_v40  ;;  %v5639_v40 = vld [vmem:[%s4787_s9 + $0x340] ss:$24 sps:$4 sm:$0xff]  }
 0x25f   : > { %2581 = vmatprep.mubr.bf16.mxu0 %v6584_v29  ;;  %2850 = vmatpush1.bf16.msra.mxu0 %v5602_v59  ;;  %6629 = vst [vmem:[#allocation26_spill] sm:$0xff] %v5639_v40 }
 0x260   : > { %2851 = vmatprep.subr.bf16.mxu0 %v5607_v34  ;;  %v3917_v34 = vld [vmem:[%s4787_s9 + $0x2e4] ss:$24 sps:$4 sm:$0xff]  }
 0x261   : > { %2691 = vmatpush1.bf16.msra.mxu1 %v3903_v23  ;;  %v5644_v23 = vld [vmem:[%s4787_s9 + $0x314] ss:$24 sps:$4 sm:$0xff]  }
 0x262   : > { %2692 = vmatprep.subr.bf16.mxu1 %v3908_v25  ;;  %6630 = vst [vmem:[#allocation31_spill] sm:$0xff] %v5644_v23 }
 0x263   : > { %2852 = vmatpush1.bf16.msra.mxu0 %v5621_v62  ;;  %v2231_v44 = vpop.f32.mrf.mxu1 }
 0x264   : > { %2421 = vmatmul.mubr.bf16.gmra.mxu1 %v5363_v2  ;;  %v2070_v20 = vpop.f32.mrf.mxu0  ;;  %2853 = vmatprep.subr.bf16.mxu0 %v5625_v17 }
 0x265   : > { %v2071_v25 = vadd.f32 %v2070_v20, %v5628_v43  ;;  %2430 = vmatprep.mubr.bf16.mxu1 %v5366_v28  ;;  %2693 = vmatpush1.bf16.msra.mxu1 %v3906_v27  ;;  %v2233_v6 = vpop.f32.mrf.mxu1  ;;  %v5655_v20 = vld [vmem:[%s4787_s9 + $0x310] ss:$24 sps:$4 sm:$0xff]  }
 0x266   : > { %2582 = vmatmul.mubr.bf16.gmra.mxu0 %v5361_v45  ;;  %v2072_v62 = vpop.f32.mrf.mxu0  ;;  %2694 = vmatprep.subr.bf16.mxu1 %v3914_v8  ;;  %v3915_v8 = vld [vmem:[%s4787_s9 + $0x2e0] ss:$24 sps:$4 sm:$0xff]  }
 0x267   : > { %v2232_v2 = vadd.f32 %v2231_v44, %v2071_v25  ;;  %v2073_v26 = vadd.f32 %v2072_v62, %v5635_v56  ;;  %2591 = vmatprep.mubr.bf16.mxu0 %v6584_v29  ;;  %2854 = vmatpush1.bf16.msra.mxu0 %v5639_v40  ;;  %v2235_v28 = vpop.f32.mrf.mxu1  ;;  %v3923_v40 = vld [vmem:[%s4787_s9 + $0x2b4] ss:$24 sps:$4 sm:$0xff]  }
 0x268   : > { %v2074_v27 = vpop.f32.mrf.mxu0  ;;  %2855 = vmatprep.subr.bf16.mxu0 %v5644_v23 }
 0x269   : > { %3002 = vst [vmem:[%s5658_s12] sm:$0xff] %v2232_v2  ;;  %v2234_v44 = vadd.f32 %v2233_v6, %v2073_v26  ;;  %v2075_v62 = vadd.f32 %v2074_v27, %v5628_v43  ;;  %2695 = vmatpush1.bf16.msra.mxu1 %v3912_v49  ;;  %v2237_v25 = vpop.f32.mrf.mxu1  ;;  %v3926_v27 = vld [vmem:[%s4787_s9 + $0x284] ss:$24 sps:$4 sm:$0xff]  }
 0x26a   : > { %v2076_v45 = vpop.f32.mrf.mxu0  ;;  %2696 = vmatprep.subr.bf16.mxu1 %v3917_v34  ;;  %v3921_v34 = vld [vmem:[%s4787_s9 + $0x2b0] ss:$24 sps:$4 sm:$0xff]  }
 0x26b   : > { %3003 = vst [vmem:[%s5658_s12 + $0x8] sm:$0xff] %v2234_v44  ;;  %v2236_v17 = vadd.f32 %v2235_v28, %v2075_v62  ;;  %v2077_v23 = vadd.f32 %v2076_v45, %v5635_v56  ;;  %2856 = vmatpush1.bf16.msra.mxu0 %v5655_v20  ;;  %v2241_v2 = vpop.f32.mrf.mxu1 }
 0x26c   : > { %2431 = vmatmul.mubr.bf16.gmra.mxu1 %v5383_v54  ;;  %v2080_v26 = vpop.f32.mrf.mxu0 }
 0x26d   : > { %3008 = vst [vmem:[%s5658_s12 + $0x30] sm:$0xff] %v2236_v17  ;;  %v2238_v6 = vadd.f32 %v2237_v25, %v2077_v23  ;;  %v2081_v49 = vadd.f32 %v2080_v26, %v5628_v43  ;;  %2440 = vmatprep.mubr.bf16.mxu1 %v5387_v41  ;;  %2697 = vmatpush2.bf16.msra.mxu1 %v3915_v8  ;;  %v2243_v45 = vpop.f32.mrf.mxu1  ;;  %v3924_v26 = vld [vmem:[%s4787_s9 + $0x280] ss:$24 sps:$4 sm:$0xff]   ;;  %v3932_v41 = vld [vmem:[%s4787_s9 + $0x254] ss:$24 sps:$4 sm:$0xff]  }
 0x26e   : > { %2592 = vmatmul.mubr.bf16.gmra.mxu0 %v5381_v3  ;;  %v2082_v28 = vpop.f32.mrf.mxu0  ;;  %2698 = vmatprep.subr.bf16.mxu1 %v3923_v40 }
 0x26f   : > { %3009 = vst [vmem:[%s5658_s12 + $0x38] sm:$0xff] %v2238_v6  ;;  %v2242_v44 = vadd.f32 %v2241_v2, %v2081_v49  ;;  %v2083_v17 = vadd.f32 %v2082_v28, %v5635_v56  ;;  %2601 = vmatprep.mubr.bf16.mxu0 %v6584_v29  ;;  %v2245_v23 = vpop.f32.mrf.mxu1 }
 0x270   : > { %v2084_v62 = vpop.f32.mrf.mxu0 }
 0x271   : > { %3014 = vst [vmem:[%s5658_s12 + $0x60] sm:$0xff] %v2242_v44  ;;  %v2244_v8 = vadd.f32 %v2243_v45, %v2083_v17  ;;  %v2085_v25 = vadd.f32 %v2084_v62, %v5628_v43  ;;  %2699 = vmatpush2.bf16.msra.mxu1 %v3921_v34  ;;  %v2247_v40 = vpop.f32.mrf.mxu1 }
 0x272   : > { %v2086_v3 = vpop.f32.mrf.mxu0  ;;  %2700 = vmatprep.subr.bf16.mxu1 %v3926_v27  ;;  %v3930_v27 = vld [vmem:[%s4787_s9 + $0x250] ss:$24 sps:$4 sm:$0xff]  }
 0x273   : > { %3015 = vst [vmem:[%s5658_s12 + $0x68] sm:$0xff] %v2244_v8  ;;  %v2246_v2 = vadd.f32 %v2245_v23, %v2085_v25  ;;  %v2087_v6 = vadd.f32 %v2086_v3, %v5635_v56  ;;  %v2251_v49 = vpop.f32.mrf.mxu1  ;;  %v3935_v3 = vld [vmem:[%s4787_s9 + $0x224] ss:$24 sps:$4 sm:$0xff]  }
 0x274   : > { %2441 = vmatmul.mubr.bf16.gmra.mxu1 %v5406_v60  ;;  %v2090_v28 = vpop.f32.mrf.mxu0 }
 0x275   : > { %3020 = vst [vmem:[%s5658_s12 + $0x90] sm:$0xff] %v2246_v2  ;;  %v2248_v45 = vadd.f32 %v2247_v40, %v2087_v6  ;;  %v2091_v34 = vadd.f32 %v2090_v28, %v5628_v43  ;;  %2450 = vmatprep.mubr.bf16.mxu1 %v5410_v39  ;;  %2701 = vmatpush2.bf16.msra.mxu1 %v3924_v26  ;;  %v2253_v44 = vpop.f32.mrf.mxu1  ;;  %v3933_v2 = vld [vmem:[%s4787_s9 + $0x220] ss:$24 sps:$4 sm:$0xff]   ;;  %v3941_v28 = vld [vmem:[%s4787_s9 + $0x1f4] ss:$24 sps:$4 sm:$0xff]  }
 0x276   : > { %2602 = vmatmul.mubr.bf16.gmra.mxu0 %v5404_v11  ;;  %v2092_v17 = vpop.f32.mrf.mxu0  ;;  %2702 = vmatprep.subr.bf16.mxu1 %v3932_v41 }
 0x277   : > { %3021 = vst [vmem:[%s5658_s12 + $0x98] sm:$0xff] %v2248_v45  ;;  %v2252_v23 = vadd.f32 %v2251_v49, %v2091_v34  ;;  %v2093_v62 = vadd.f32 %v2092_v17, %v5635_v56  ;;  %2611 = vmatprep.mubr.bf16.mxu0 %v6584_v29  ;;  %v2255_v8 = vpop.f32.mrf.mxu1 }
 0x278   : > { %v2094_v25 = vpop.f32.mrf.mxu0 }
 0x279   : > { %3026 = vst [vmem:[%s5658_s12 + $0xc0] sm:$0xff] %v2252_v23  ;;  %v2254_v26 = vadd.f32 %v2253_v44, %v2093_v62  ;;  %v2095_v40 = vadd.f32 %v2094_v25, %v5628_v43  ;;  %2703 = vmatpush2.bf16.msra.mxu1 %v3930_v27  ;;  %v2257_v41 = vpop.f32.mrf.mxu1 }
 0x27a   : > { %v2096_v6 = vpop.f32.mrf.mxu0  ;;  %2704 = vmatprep.subr.bf16.mxu1 %v3935_v3  ;;  %v3939_v3 = vld [vmem:[%s4787_s9 + $0x1f0] ss:$24 sps:$4 sm:$0xff]  }
 0x27b   : > { %3027 = vst [vmem:[%s5658_s12 + $0xc8] sm:$0xff] %v2254_v26  ;;  %v2256_v49 = vadd.f32 %v2255_v8, %v2095_v40  ;;  %v2097_v45 = vadd.f32 %v2096_v6, %v5635_v56  ;;  %v2261_v34 = vpop.f32.mrf.mxu1  ;;  %v3944_v8 = vld [vmem:[%s4787_s9 + $0x1c4] ss:$24 sps:$4 sm:$0xff]  }
 0x27c   : > { %2451 = vmatmul.mubr.bf16.gmra.mxu1 %v5429_v42  ;;  %v2100_v17 = vpop.f32.mrf.mxu0 }
 0x27d   : > { %3032 = vst [vmem:[%s5658_s12 + $0xf0] sm:$0xff] %v2256_v49  ;;  %v2258_v44 = vadd.f32 %v2257_v41, %v2097_v45  ;;  %v2101_v27 = vadd.f32 %v2100_v17, %v5628_v43  ;;  %2460 = vmatprep.mubr.bf16.mxu1 %v5432_v18  ;;  %2705 = vmatpush2.bf16.msra.mxu1 %v3933_v2  ;;  %v2263_v23 = vpop.f32.mrf.mxu1  ;;  %v3942_v49 = vld [vmem:[%s4787_s9 + $0x1c0] ss:$24 sps:$4 sm:$0xff]   ;;  %v3950_v17 = vld [vmem:[%s4787_s9 + $0x194] ss:$24 sps:$4 sm:$0xff]  }
 0x27e   : > { %2612 = vmatmul.mubr.bf16.gmra.mxu0 %v5427_v38  ;;  %v2102_v62 = vpop.f32.mrf.mxu0  ;;  %2706 = vmatprep.subr.bf16.mxu1 %v3941_v28 }
 0x27f   : > { %3033 = vst [vmem:[%s5658_s12 + $0xf8] sm:$0xff] %v2258_v44  ;;  %v2262_v25 = vadd.f32 %v2261_v34, %v2101_v27  ;;  %v2103_v26 = vadd.f32 %v2102_v62, %v5635_v56  ;;  %2621 = vmatprep.mubr.bf16.mxu0 %v6584_v29  ;;  %v2265_v40 = vpop.f32.mrf.mxu1 }
 0x280   : > { %v2104_v41 = vpop.f32.mrf.mxu0 }
 0x281   : > { %3038 = vst [vmem:[%s5658_s12 + $0x120] sm:$0xff] %v2262_v25  ;;  %v2264_v2 = vadd.f32 %v2263_v23, %v2103_v26  ;;  %v2105_v6 = vadd.f32 %v2104_v41, %v5628_v43  ;;  %2707 = vmatpush2.bf16.msra.mxu1 %v3939_v3  ;;  %v2267_v28 = vpop.f32.mrf.mxu1  ;;  %v3948_v25 = vld [vmem:[%s4787_s9 + $0x190] ss:$24 sps:$4 sm:$0xff]  }
 0x282   : > { %v2106_v45 = vpop.f32.mrf.mxu0  ;;  %2708 = vmatprep.subr.bf16.mxu1 %v3944_v8 }
 0x283   : > { %3039 = vst [vmem:[%s5658_s12 + $0x128] sm:$0xff] %v2264_v2  ;;  %v2266_v34 = vadd.f32 %v2265_v40, %v2105_v6  ;;  %v2107_v44 = vadd.f32 %v2106_v45, %v5635_v56  ;;  %v2271_v27 = vpop.f32.mrf.mxu1 }
 0x284   : > { %2461 = vmatmul.mubr.bf16.gmra.mxu1 %v5449_v55  ;;  %v2110_v62 = vpop.f32.mrf.mxu0 }
 0x285   : > { %3044 = vst [vmem:[%s5658_s12 + $0x150] sm:$0xff] %v2266_v34  ;;  %v2268_v23 = vadd.f32 %v2267_v28, %v2107_v44  ;;  %v2111_v3 = vadd.f32 %v2110_v62, %v5628_v43  ;;  %2470 = vmatprep.mubr.bf16.mxu1 %v5452_v21  ;;  %2709 = vmatpush2.bf16.msra.mxu1 %v3942_v49  ;;  %v2273_v8 = vpop.f32.mrf.mxu1 }
 0x286   : > { %2622 = vmatmul.mubr.bf16.gmra.mxu0 %v5447_v32  ;;  %v2112_v26 = vpop.f32.mrf.mxu0  ;;  %2710 = vmatprep.subr.bf16.mxu1 %v3950_v17 }
 0x287   : > { %3045 = vst [vmem:[%s5658_s12 + $0x158] sm:$0xff] %v2268_v23  ;;  %v2272_v40 = vadd.f32 %v2271_v27, %v2111_v3  ;;  %v2113_v41 = vadd.f32 %v2112_v26, %v5635_v56  ;;  %2631 = vmatprep.mubr.bf16.mxu0 %v6584_v29  ;;  %v2275_v2 = vpop.f32.mrf.mxu1 }
 0x288   : > { %v2114_v6 = vpop.f32.mrf.mxu0 }
 0x289   : > { %3050 = vst [vmem:[%s5658_s12 + $0x180] sm:$0xff] %v2272_v40  ;;  %v2274_v28 = vadd.f32 %v2273_v8, %v2113_v41  ;;  %v2115_v49 = vadd.f32 %v2114_v6, %v5628_v43  ;;  %2711 = vmatpush2.bf16.msra.mxu1 %v3948_v25  ;;  %v2277_v45 = vpop.f32.mrf.mxu1 }
 0x28a   : > { %v2116_v34 = vpop.f32.mrf.mxu0  ;;  %3697 = vmatprep.subr.bf16.mxu1 %v5490_v52 }
 0x28b   : > { %3051 = vst [vmem:[%s5658_s12 + $0x188] sm:$0xff] %v2274_v28  ;;  %v2276_v17 = vadd.f32 %v2275_v2, %v2115_v49  ;;  %v2117_v44 = vadd.f32 %v2116_v34, %v5635_v56  ;;  %v2281_v27 = vpop.f32.mrf.mxu1 }
 0x28c   : > { %2471 = vmatmul.mubr.bf16.gmra.mxu1 %v5469_v15  ;;  %v2120_v62 = vpop.f32.mrf.mxu0 }
 0x28d   : > { %3056 = vst [vmem:[%s5658_s12 + $0x1b0] sm:$0xff] %v2276_v17  ;;  %v2278_v23 = vadd.f32 %v2277_v45, %v2117_v44  ;;  %v2121_v3 = vadd.f32 %v2120_v62, %v5628_v43  ;;  %2480 = vmatprep.mubr.bf16.mxu1 %v5471_v36  ;;  %v2283_v25 = vpop.f32.mrf.mxu1 }
 0x28e   : > { %2632 = vmatmul.mubr.bf16.gmra.mxu0 %v5467_v57  ;;  %v2122_v52 = vpop.f32.mrf.mxu0 }
 0x28f   : > { %3057 = vst [vmem:[%s5658_s12 + $0x1b8] sm:$0xff] %v2278_v23  ;;  %v2282_v8 = vadd.f32 %v2281_v27, %v2121_v3  ;;  %v2123_v26 = vadd.f32 %v2122_v52, %v5635_v56  ;;  %2641 = vmatprep.mubr.bf16.mxu0 %v6584_v29  ;;  %v2285_v40 = vpop.f32.mrf.mxu1 }
 0x290   : > { %v2124_v41 = vpop.f32.mrf.mxu0 }
 0x291   : > { %3062 = vst [vmem:[%s5658_s12 + $0x1e0] sm:$0xff] %v2282_v8  ;;  %v2284_v2 = vadd.f32 %v2283_v25, %v2123_v26  ;;  %v2125_v6 = vadd.f32 %v2124_v41, %v5628_v43  ;;  %v2287_v28 = vpop.f32.mrf.mxu1 }
 0x292   : > { %v2126_v49 = vpop.f32.mrf.mxu0 }
 0x293   : > { %3063 = vst [vmem:[%s5658_s12 + $0x1e8] sm:$0xff] %v2284_v2  ;;  %v2286_v45 = vadd.f32 %v2285_v40, %v2125_v6  ;;  %v2127_v34 = vadd.f32 %v2126_v49, %v5635_v56  ;;  %v2291_v17 = vpop.f32.mrf.mxu1 }
 0x294   : > { %2481 = vmatmul.mubr.bf16.gmra.mxu1 %v5485_v4  ;;  %v2130_v44 = vpop.f32.mrf.mxu0 }
 0x295   : > { %3068 = vst [vmem:[%s5658_s12 + $0x210] sm:$0xff] %v2286_v45  ;;  %v2288_v27 = vadd.f32 %v2287_v28, %v2127_v34  ;;  %v2131_v62 = vadd.f32 %v2130_v44, %v5628_v43  ;;  %2490 = vmatprep.mubr.bf16.mxu1 %v5487_v16  ;;  %v2293_v23 = vpop.f32.mrf.mxu1 }
 0x296   : > { %2642 = vmatmul.mubr.bf16.gmra.mxu0 %v5483_v63  ;;  %v2132_v3 = vpop.f32.mrf.mxu0 }
 0x297   : > { %3069 = vst [vmem:[%s5658_s12 + $0x218] sm:$0xff] %v2288_v27  ;;  %v2292_v25 = vadd.f32 %v2291_v17, %v2131_v62  ;;  %v2133_v52 = vadd.f32 %v2132_v3, %v5635_v56  ;;  %2651 = vmatprep.mubr.bf16.mxu0 %v6584_v29  ;;  %v2295_v8 = vpop.f32.mrf.mxu1 }
 0x298   : > { %v2134_v26 = vpop.f32.mrf.mxu0 }
 0x299   : > { %3074 = vst [vmem:[%s5658_s12 + $0x240] sm:$0xff] %v2292_v25  ;;  %v2294_v40 = vadd.f32 %v2293_v23, %v2133_v52  ;;  %v2135_v41 = vadd.f32 %v2134_v26, %v5628_v43  ;;  %v2297_v2 = vpop.f32.mrf.mxu1 }
 0x29a   : > { %v2136_v6 = vpop.f32.mrf.mxu0 }
 0x29b   : > { %3075 = vst [vmem:[%s5658_s12 + $0x248] sm:$0xff] %v2294_v40  ;;  %v2296_v28 = vadd.f32 %v2295_v8, %v2135_v41  ;;  %v2137_v49 = vadd.f32 %v2136_v6, %v5635_v56  ;;  %v2301_v45 = vpop.f32.mrf.mxu1 }
 0x29c   : > { %2491 = vmatmul.mubr.bf16.gmra.mxu1 %v5503_v37  ;;  %v2140_v34 = vpop.f32.mrf.mxu0 }
 0x29d   : > { %3080 = vst [vmem:[%s5658_s12 + $0x270] sm:$0xff] %v2296_v28  ;;  %v2298_v17 = vadd.f32 %v2297_v2, %v2137_v49  ;;  %v2141_v44 = vadd.f32 %v2140_v34, %v5628_v43  ;;  %2500 = vmatprep.mubr.bf16.mxu1 %v5514_v0  ;;  %v2303_v27 = vpop.f32.mrf.mxu1 }
 0x29e   : > { %2652 = vmatmul.mubr.bf16.gmra.mxu0 %v5501_v5  ;;  %v2142_v62 = vpop.f32.mrf.mxu0 }
 0x29f   : > { %3081 = vst [vmem:[%s5658_s12 + $0x278] sm:$0xff] %v2298_v17  ;;  %v2302_v23 = vadd.f32 %v2301_v45, %v2141_v44  ;;  %v2143_v3 = vadd.f32 %v2142_v62, %v5635_v56  ;;  %2661 = vmatprep.mubr.bf16.mxu0 %v6584_v29  ;;  %v2305_v25 = vpop.f32.mrf.mxu1 }
 0x2a0   : > { %v2144_v52 = vpop.f32.mrf.mxu0 }
 0x2a1   : > { %3086 = vst [vmem:[%s5658_s12 + $0x2a0] sm:$0xff] %v2302_v23  ;;  %v2304_v8 = vadd.f32 %v2303_v27, %v2143_v3  ;;  %v2145_v26 = vadd.f32 %v2144_v52, %v5628_v43  ;;  %v2307_v40 = vpop.f32.mrf.mxu1 }
 0x2a2   : > { %v2146_v41 = vpop.f32.mrf.mxu0 }
 0x2a3   : > { %3087 = vst [vmem:[%s5658_s12 + $0x2a8] sm:$0xff] %v2304_v8  ;;  %v2306_v2 = vadd.f32 %v2305_v25, %v2145_v26  ;;  %v2147_v6 = vadd.f32 %v2146_v41, %v5635_v56  ;;  %v2311_v28 = vpop.f32.mrf.mxu1 }
 0x2a4   : > { %2501 = vmatmul.mubr.bf16.gmra.mxu1 %v5518_v35  ;;  %v2150_v49 = vpop.f32.mrf.mxu0 }
 0x2a5   : > { %3092 = vst [vmem:[%s5658_s12 + $0x2d0] sm:$0xff] %v2306_v2  ;;  %v2308_v45 = vadd.f32 %v2307_v40, %v2147_v6  ;;  %v2151_v34 = vadd.f32 %v2150_v49, %v5628_v43  ;;  %2510 = vmatprep.mubr.bf16.mxu1 %v5526_v10  ;;  %v2313_v17 = vpop.f32.mrf.mxu1 }
 0x2a6   : > { %2662 = vmatmul.mubr.bf16.gmra.mxu0 %v5516_v47  ;;  %v2152_v44 = vpop.f32.mrf.mxu0 }
 0x2a7   : > { %3093 = vst [vmem:[%s5658_s12 + $0x2d8] sm:$0xff] %v2308_v45  ;;  %v2312_v27 = vadd.f32 %v2311_v28, %v2151_v34  ;;  %v2153_v62 = vadd.f32 %v2152_v44, %v5635_v56  ;;  %2671 = vmatprep.mubr.bf16.mxu0 %v6584_v29  ;;  %v2315_v23 = vpop.f32.mrf.mxu1 }
 0x2a8   : > { %v2154_v3 = vpop.f32.mrf.mxu0 }
 0x2a9   : > { %3098 = vst [vmem:[%s5658_s12 + $0x300] sm:$0xff] %v2312_v27  ;;  %v2314_v25 = vadd.f32 %v2313_v17, %v2153_v62  ;;  %v2155_v52 = vadd.f32 %v2154_v3, %v5628_v43  ;;  %v2317_v8 = vpop.f32.mrf.mxu1 }
 0x2aa   : > { %v2156_v26 = vpop.f32.mrf.mxu0 }
 0x2ab   : > { %3099 = vst [vmem:[%s5658_s12 + $0x308] sm:$0xff] %v2314_v25  ;;  %v2316_v40 = vadd.f32 %v2315_v23, %v2155_v52  ;;  %v2157_v41 = vadd.f32 %v2156_v26, %v5635_v56  ;;  %v2321_v2 = vpop.f32.mrf.mxu1 }
 0x2ac   : > { %2511 = vmatmul.mubr.bf16.gmra.mxu1 %v5532_v61  ;;  %v2160_v6 = vpop.f32.mrf.mxu0 }
 0x2ad   : > { %3104 = vst [vmem:[%s5658_s12 + $0x330] sm:$0xff] %v2316_v40  ;;  %v2318_v28 = vadd.f32 %v2317_v8, %v2157_v41  ;;  %v2161_v49 = vadd.f32 %v2160_v6, %v5628_v43  ;;  %2712 = vmatprep.mubr.bf16.mxu1 %v5287_v7  ;;  %v2323_v45 = vpop.f32.mrf.mxu1 }
 0x2ae   : > { %2672 = vmatmul.mubr.bf16.gmra.mxu0 %v5530_v50  ;;  %v2162_v34 = vpop.f32.mrf.mxu0 }
 0x2af   : > { %3105 = vst [vmem:[%s5658_s12 + $0x338] sm:$0xff] %v2318_v28  ;;  %v2322_v17 = vadd.f32 %v2321_v2, %v2161_v49  ;;  %v2163_v44 = vadd.f32 %v2162_v34, %v5635_v56  ;;  %2873 = vmatprep.mubr.bf16.mxu0 %v6584_v29  ;;  %v2325_v27 = vpop.f32.mrf.mxu1 }
 0x2b0   : > { %v2164_v62 = vpop.f32.mrf.mxu0 }
 0x2b1   : > { %3110 = vst [vmem:[%s5658_s12 + $0x360] sm:$0xff] %v2322_v17  ;;  %v2324_v23 = vadd.f32 %v2323_v45, %v2163_v44  ;;  %v2165_v3 = vadd.f32 %v2164_v62, %v5628_v43  ;;  %v2327_v25 = vpop.f32.mrf.mxu1 }
 0x2b2   : > { %v2166_v52 = vpop.f32.mrf.mxu0 }
 0x2b3   : > { %3111 = vst [vmem:[%s5658_s12 + $0x368] sm:$0xff] %v2324_v23  ;;  %v2326_v7 = vadd.f32 %v2325_v27, %v2165_v3  ;;  %v2167_v8 = vadd.f32 %v2166_v52, %v5635_v56  ;;  %v2331_v26 = vpop.f32.mrf.mxu1 }
 0x2b4   : > { %2713 = vmatmul.mubr.bf16.vlgmr.msra.gmra.mxu1 %v6621_v46  ;;  %v2170_v40 = vpop.f32.mrf.mxu0 }
 0x2b5   : > { %3116 = vst [vmem:[%s5658_s12 + $0x390] sm:$0xff] %v2326_v7  ;;  %v2328_v41 = vadd.f32 %v2327_v25, %v2167_v8  ;;  %3705 = vmatpush1.bf16.msra.mxu1 %v5541_v22  ;;  %v2171_v2 = vadd.f32 %v2170_v40, %v5628_v43  ;;  %2722 = vmatprep.mubr.bf16.mxu1 %v5311_v9  ;;  %v2333_v6 = vpop.f32.mrf.mxu1 }
 0x2b6   : > { %2874 = vmatmul.mubr.bf16.vlgmr.msra.gmra.mxu0 %v6622_v19  ;;  %v2172_v28 = vpop.f32.mrf.mxu0  ;;  %3698 = vmatprep.subr.bf16.mxu1 %v5545_v13 }
 0x2b7   : > { %3117 = vst [vmem:[%s5658_s12 + $0x398] sm:$0xff] %v2328_v41  ;;  %v2332_v49 = vadd.f32 %v2331_v26, %v2171_v2  ;;  %v2173_v46 = vadd.f32 %v2172_v28, %v5635_v56  ;;  %2883 = vmatprep.mubr.bf16.mxu0 %v6584_v29  ;;  %v2335_v45 = vpop.f32.mrf.mxu1 }
 0x2b8   : > { %v2174_v22 = vpop.f32.mrf.mxu0 }
 0x2b9   : > { %3122 = vst [vmem:[%s5658_s12 + $0x3c0] sm:$0xff] %v2332_v49  ;;  %v2334_v34 = vadd.f32 %v2333_v6, %v2173_v46  ;;  %v2175_v9 = vadd.f32 %v2174_v22, %v5628_v43  ;;  %3706 = vmatpush1.bf16.msra.mxu1 %v5555_v30  ;;  %v2337_v44 = vpop.f32.mrf.mxu1  ;;  %v6634_v30 = vld [vmem:[#allocation25_spill] sm:$0xff] }
 0x2ba   : > { %v2176_v19 = vpop.f32.mrf.mxu0  ;;  %3699 = vmatprep.subr.bf16.mxu1 %v5559_v1  ;;  %v6635_v1 = vld [vmem:[#allocation23_spill] sm:$0xff] }
 0x2bb   : > { %3123 = vst [vmem:[%s5658_s12 + $0x3c8] sm:$0xff] %v2334_v34  ;;  %v2336_v13 = vadd.f32 %v2335_v45, %v2175_v9  ;;  %v2177_v17 = vadd.f32 %v2176_v19, %v5635_v56 }
 0x2bc   : > { %2723 = vmatmul.mubr.bf16.gmra.mxu1 %v5316_v48  ;;  %v6631_v48 = vld [vmem:[#allocation20_spill] sm:$0xff] }
 0x2bd   : > { %3128 = vst [vmem:[%s5658_s12 + $0x3f0] sm:$0xff] %v2336_v13  ;;  %v2338_v27 = vadd.f32 %v2337_v44, %v2177_v17  ;;  %2732 = vmatprep.mubr.bf16.mxu1 %v5330_v58  ;;  %3707 = vmatpush1.bf16.msra.mxu1 %v5569_v51  ;;  %v6632_v58 = vld [vmem:[#allocation27_spill] sm:$0xff]  ;;  %v6636_v51 = vld [vmem:[#allocation17_spill] sm:$0xff] }
 0x2be   : > { %2884 = vmatmul.mubr.bf16.gmra.mxu0 %v5313_v53  ;;  %3700 = vmatprep.subr.bf16.mxu1 %v5574_v14  ;;  %v6633_v53 = vld [vmem:[#allocation29_spill] sm:$0xff]  ;;  %v6637_v14 = vld [vmem:[#allocation26_spill] sm:$0xff] }
 0x2bf   : > { %3129 = vst [vmem:[%s5658_s12 + $0x3f8] sm:$0xff] %v2338_v27  ;;  %2893 = vmatprep.mubr.bf16.mxu0 %v6584_v29 }
 0x2c1   : > { %3708 = vmatpush1.bf16.msra.mxu1 %v5585_v31  ;;  %v6640_v31 = vld [vmem:[#allocation22_spill] sm:$0xff] }
 0x2c2   : > { %3701 = vmatprep.subr.bf16.mxu1 %v5589_v33  ;;  %v6641_v33 = vld [vmem:[#allocation18_spill] sm:$0xff] }
 0x2c4   : > { %2733 = vmatmul.mubr.bf16.gmra.mxu1 %v5341_v12  ;;  %v6638_v12 = vld [vmem:[#allocation21_spill] sm:$0xff] }
 0x2c5   : > { %2742 = vmatprep.mubr.bf16.mxu1 %v5345_v24  ;;  %3709 = vmatpush1.bf16.msra.mxu1 %v5602_v59  ;;  %v6639_v24 = vld [vmem:[#allocation31_spill] sm:$0xff] }
 0x2c6   : > { %2894 = vmatmul.mubr.bf16.gmra.mxu0 %v6631_v48  ;;  %3702 = vmatprep.subr.bf16.mxu1 %v6632_v58 }
 0x2c7   : > { %2903 = vmatprep.mubr.bf16.mxu0 %v6584_v29 }
 0x2c9   : > { %3710 = vmatpush1.bf16.msra.mxu1 %v6633_v53 }
 0x2ca   : > { %3703 = vmatprep.subr.bf16.mxu1 %v6634_v30 }
 0x2cc   : > { %2743 = vmatmul.mubr.bf16.gmra.mxu1 %v6635_v1 }
 0x2cd   : > { %2752 = vmatprep.mubr.bf16.mxu1 %v6636_v51  ;;  %3711 = vmatpush1.bf16.msra.mxu1 %v6637_v14 }
 0x2ce   : > { %2904 = vmatmul.mubr.bf16.gmra.mxu0 %v6638_v12  ;;  %3704 = vmatprep.subr.bf16.mxu1 %v6639_v24 }
 0x2cf   : > { %2913 = vmatprep.mubr.bf16.mxu0 %v6584_v29 }
 0x2d1   : > { %3712 = vmatpush1.bf16.msra.mxu1 %v5655_v20  ;;  %v6642_v20 = vld [vmem:[#allocation24_spill] sm:$0xff] }
 0x2d2   : > { %v1296_v62 = vsub.s32 2, %v6642_v20  ;;  %v1300_v7 = vsub.s32 3, %v6642_v20 }
 0x2d4   : > { %2753 = vmatmul.mubr.bf16.gmra.mxu1 %v5383_v54 }
 0x2d5   : > { %2762 = vmatprep.mubr.bf16.mxu1 %v6640_v31 }
 0x2d6   : > { %2914 = vmatmul.mubr.bf16.gmra.mxu0 %v6641_v33 }
 0x2d7   : > { %2923 = vmatprep.mubr.bf16.mxu0 %v6584_v29 }
 0x2dc   : > { %2763 = vmatmul.mubr.bf16.gmra.mxu1 %v5406_v60 }
 0x2dd   : > { %2772 = vmatprep.mubr.bf16.mxu1 %v5410_v39 }
 0x2de   : > { %2924 = vmatmul.mubr.bf16.gmra.mxu0 %v5404_v11 }
 0x2df   : > { %2933 = vmatprep.mubr.bf16.mxu0 %v6584_v29 }
 0x2e4   : > { %2773 = vmatmul.mubr.bf16.gmra.mxu1 %v5429_v42 }
 0x2e5   : > { %2782 = vmatprep.mubr.bf16.mxu1 %v5432_v18 }
 0x2e6   : > { %2934 = vmatmul.mubr.bf16.gmra.mxu0 %v5427_v38 }
 0x2e7   : > { %2943 = vmatprep.mubr.bf16.mxu0 %v6584_v29 }
 0x2ec   : > { %2783 = vmatmul.mubr.bf16.gmra.mxu1 %v5449_v55 }
 0x2ed   : > { %2792 = vmatprep.mubr.bf16.mxu1 %v5452_v21 }
 0x2ee   : > { %2944 = vmatmul.mubr.bf16.gmra.mxu0 %v5447_v32 }
 0x2ef   : > { %2953 = vmatprep.mubr.bf16.mxu0 %v6584_v29 }
 0x2f4   : > { %2793 = vmatmul.mubr.bf16.gmra.mxu1 %v5469_v15 }
 0x2f5   : > { %2802 = vmatprep.mubr.bf16.mxu1 %v5471_v36 }
 0x2f6   : > { %2954 = vmatmul.mubr.bf16.gmra.mxu0 %v5467_v57 }
 0x2f7   : > { %2963 = vmatprep.mubr.bf16.mxu0 %v6584_v29 }
 0x2fc   : > { %v2341_v54 = vpop.f32.mrf.mxu1  ;;  %2803 = vmatmul.mubr.bf16.gmra.mxu1 %v5485_v4 }
 0x2fd   : > { %v2180_v11 = vpop.f32.mrf.mxu0  ;;  %2812 = vmatprep.mubr.bf16.mxu1 %v5487_v16 }
 0x2fe   : > { %v2181_v60 = vadd.f32 %v2180_v11, %v5628_v43  ;;  %2964 = vmatmul.mubr.bf16.gmra.mxu0 %v5483_v63  ;;  %v2343_v39 = vpop.f32.mrf.mxu1 }
 0x2ff   : > { %v2182_v38 = vpop.f32.mrf.mxu0  ;;  %2973 = vmatprep.mubr.bf16.mxu0 %v6584_v29 }
 0x300   : > { %v2342_v42 = vadd.f32 %v2341_v54, %v2181_v60  ;;  %v2183_v18 = vadd.f32 %v2182_v38, %v5635_v56  ;;  %v2345_v32 = vpop.f32.mrf.mxu1 }
 0x301   : > { %v2184_v55 = vpop.f32.mrf.mxu0 }
 0x302   : > { %3134 = vst [vmem:[%s5658_s12 + $0x420] sm:$0xff] %v2342_v42  ;;  %v2344_v21 = vadd.f32 %v2343_v39, %v2183_v18  ;;  %v2185_v57 = vadd.f32 %v2184_v55, %v5628_v43  ;;  %v2347_v15 = vpop.f32.mrf.mxu1 }
 0x303   : > { %v2186_v36 = vpop.f32.mrf.mxu0 }
 0x304   : > { %3135 = vst [vmem:[%s5658_s12 + $0x428] sm:$0xff] %v2344_v21  ;;  %v2346_v4 = vadd.f32 %v2345_v32, %v2185_v57  ;;  %v2187_v63 = vadd.f32 %v2186_v36, %v5635_v56  ;;  %v2351_v16 = vpop.f32.mrf.mxu1  ;;  %2813 = vmatmul.mubr.bf16.gmra.mxu1 %v5503_v37 }
 0x305   : > { %v2190_v59 = vpop.f32.mrf.mxu0  ;;  %2822 = vmatprep.mubr.bf16.mxu1 %v5514_v0  ;;  %v6643_v0 = vld [vmem:[#allocation28_spill] sm:$0xff] }
 0x306   : > { %3140 = vst [vmem:[%s5658_s12 + $0x450] sm:$0xff] %v2346_v4  ;;  %v2348_v23 = vadd.f32 %v2347_v15, %v2187_v63  ;;  %v2191_v3 = vadd.f32 %v2190_v59, %v5628_v43  ;;  %2974 = vmatmul.mubr.bf16.gmra.mxu0 %v5501_v5  ;;  %v2353_v25 = vpop.f32.mrf.mxu1  ;;  %v5870_v41 = vrot.slane %v6643_v0, %v1296_v62 }
 0x307   : > { %v2192_v52 = vpop.f32.mrf.mxu0  ;;  %v5874_v5 = vrot.slane %v6643_v0, %v1300_v7 }
 0x308   : > { %3141 = vst [vmem:[%s5658_s12 + $0x458] sm:$0xff] %v2348_v23  ;;  %v2352_v8 = vadd.f32 %v2351_v16, %v2191_v3  ;;  %v2193_v37 = vadd.f32 %v2192_v52, %v5635_v56  ;;  %v2355_v26 = vpop.f32.mrf.mxu1 }
 0x309   : > { %v2194_v40 = vpop.f32.mrf.mxu0 }
 0x30a   : > { %3146 = vst [vmem:[%s5658_s12 + $0x480] sm:$0xf] %v2352_v8  ;;  %v2354_v2 = vadd.f32 %v2353_v25, %v2193_v37  ;;  %v2356_v43 = vpop.f32.mrf.mxu1 }
 0x30b   : > { %v2195_v6 = vpop.f32.mrf.mxu0 }
 0x30c   : > { %3147 = vst [vmem:[%s5658_s12 + $0x488] sm:$0xf] %v2354_v2  ;;  %v2392_v28 = vpop.f32.mrf.mxu1  ;;  %2823 = vmatmul.mubr.bf16.gmra.mxu1 %v5518_v35 }
 0x30d   : > { %v2393_v56 = vadd.f32 %v2392_v28, %v5870_v41  ;;  %2832 = vmatprep.mubr.bf16.mxu1 %v5526_v10 }
 0x30e   : > { %v2553_v49 = vpop.f32.mrf.mxu0  ;;  %v2394_v46 = vpop.f32.mrf.mxu1 }
 0x30f   : > { %v2554_v45 = vadd.f32 %v2553_v49, %v2393_v56  ;;  %v2395_v22 = vadd.f32 %v2394_v46, %v5874_v5 }
 0x310   : > { %v2555_v34 = vpop.f32.mrf.mxu0  ;;  %v2396_v9 = vpop.f32.mrf.mxu1 }
 0x311   : > { %3004 = vst [vmem:[%s5658_s12 + $0x10] sm:$0xff] %v2554_v45  ;;  %v2556_v19 = vadd.f32 %v2555_v34, %v2395_v22  ;;  %v2397_v13 = vadd.f32 %v2396_v9, %v5870_v41 }
 0x312   : > { %v2557_v17 = vpop.f32.mrf.mxu0  ;;  %v2398_v44 = vpop.f32.mrf.mxu1 }
 0x313   : > { %3005 = vst [vmem:[%s5658_s12 + $0x18] sm:$0xff] %v2556_v19  ;;  %v2558_v35 = vadd.f32 %v2557_v17, %v2397_v13  ;;  %v2399_v10 = vadd.f32 %v2398_v44, %v5874_v5 }
 0x314   : > { %v2559_v27 = vpop.f32.mrf.mxu0  ;;  %v2402_v48 = vpop.f32.mrf.mxu1  ;;  %2833 = vmatmul.mubr.bf16.gmra.mxu1 %v5532_v61 }
 0x315   : > { %3010 = vst [vmem:[%s5658_s12 + $0x40] sm:$0xff] %v2558_v35  ;;  %v2560_v58 = vadd.f32 %v2559_v27, %v2399_v10  ;;  %v2403_v53 = vadd.f32 %v2402_v48, %v5870_v41  ;;  %2983 = vmatprep.mubr.bf16.mxu1 %v6584_v29 }
 0x316   : > { %v2563_v30 = vpop.f32.mrf.mxu0  ;;  %v2404_v1 = vpop.f32.mrf.mxu1 }
 0x317   : > { %3011 = vst [vmem:[%s5658_s12 + $0x48] sm:$0xff] %v2560_v58  ;;  %v2564_v51 = vadd.f32 %v2563_v30, %v2403_v53  ;;  %v2405_v14 = vadd.f32 %v2404_v1, %v5874_v5 }
 0x318   : > { %v2565_v12 = vpop.f32.mrf.mxu0  ;;  %v2406_v24 = vpop.f32.mrf.mxu1 }
 0x319   : > { %3016 = vst [vmem:[%s5658_s12 + $0x70] sm:$0xff] %v2564_v51  ;;  %v2566_v31 = vadd.f32 %v2565_v12, %v2405_v14  ;;  %v2407_v61 = vadd.f32 %v2406_v24, %v5870_v41 }
 0x31a   : > { %v2567_v33 = vpop.f32.mrf.mxu0  ;;  %v2408_v54 = vpop.f32.mrf.mxu1 }
 0x31b   : > { %3017 = vst [vmem:[%s5658_s12 + $0x78] sm:$0xff] %v2566_v31  ;;  %v2568_v11 = vadd.f32 %v2567_v33, %v2407_v61  ;;  %v2409_v60 = vadd.f32 %v2408_v54, %v5874_v5 }
 0x31c   : > { %v2569_v39 = vpop.f32.mrf.mxu0  ;;  %v2412_v38 = vpop.f32.mrf.mxu1  ;;  %2984 = vmatmul.mubr.bf16.vlgmr.msra.gmra.mxu1 %v5516_v47 }
 0x31d   : > { %3022 = vst [vmem:[%s5658_s12 + $0xa0] sm:$0xff] %v2568_v11  ;;  %v2570_v42 = vadd.f32 %v2569_v39, %v2409_v60  ;;  %v2413_v18 = vadd.f32 %v2412_v38, %v5870_v41  ;;  %2993 = vmatprep.mubr.bf16.mxu1 %v6584_v29 }
 0x31e   : > { %v2573_v32 = vpop.f32.mrf.mxu0  ;;  %v2414_v55 = vpop.f32.mrf.mxu1 }
 0x31f   : > { %3023 = vst [vmem:[%s5658_s12 + $0xa8] sm:$0xff] %v2570_v42  ;;  %v2574_v21 = vadd.f32 %v2573_v32, %v2413_v18  ;;  %v2415_v57 = vadd.f32 %v2414_v55, %v5874_v5 }
 0x320   : > { %v2575_v15 = vpop.f32.mrf.mxu0  ;;  %v2416_v36 = vpop.f32.mrf.mxu1 }
 0x321   : > { %3028 = vst [vmem:[%s5658_s12 + $0xd0] sm:$0xff] %v2574_v21  ;;  %v2576_v4 = vadd.f32 %v2575_v15, %v2415_v57  ;;  %v2417_v47 = vadd.f32 %v2416_v36, %v5870_v41 }
 0x322   : > { %v2577_v63 = vpop.f32.mrf.mxu0  ;;  %v2418_v16 = vpop.f32.mrf.mxu1 }
 0x323   : > { %3029 = vst [vmem:[%s5658_s12 + $0xd8] sm:$0xff] %v2576_v4  ;;  %v2578_v59 = vadd.f32 %v2577_v63, %v2417_v47  ;;  %v2419_v29 = vadd.f32 %v2418_v16, %v5874_v5 }
 0x324   : > { %v2579_v62 = vpop.f32.mrf.mxu0  ;;  %v2422_v23 = vpop.f32.mrf.mxu1  ;;  %2994 = vmatmul.mubr.bf16.gmra.mxu1 %v5530_v50 }
 0x325   : > { %3034 = vst [vmem:[%s5658_s12 + $0x100] sm:$0xff] %v2578_v59  ;;  %v2580_v3 = vadd.f32 %v2579_v62, %v2419_v29  ;;  %v2423_v25 = vadd.f32 %v2422_v23, %v5870_v41 }
 0x326   : > { %v2583_v52 = vpop.f32.mrf.mxu0  ;;  %v2424_v7 = vpop.f32.mrf.mxu1 }
 0x327   : > { %3035 = vst [vmem:[%s5658_s12 + $0x108] sm:$0xff] %v2580_v3  ;;  %v2584_v8 = vadd.f32 %v2583_v52, %v2423_v25  ;;  %v2425_v37 = vadd.f32 %v2424_v7, %v5874_v5 }
 0x328   : > { %v2585_v26 = vpop.f32.mrf.mxu0  ;;  %v2426_v40 = vpop.f32.mrf.mxu1 }
 0x329   : > { %3040 = vst [vmem:[%s5658_s12 + $0x130] sm:$0xff] %v2584_v8  ;;  %v2586_v0 = vadd.f32 %v2585_v26, %v2425_v37  ;;  %v2427_v2 = vadd.f32 %v2426_v40, %v5870_v41 }
 0x32a   : > { %v2587_v50 = vpop.f32.mrf.mxu0  ;;  %v2428_v43 = vpop.f32.mrf.mxu1 }
 0x32b   : > { %3041 = vst [vmem:[%s5658_s12 + $0x138] sm:$0xff] %v2586_v0  ;;  %v2588_v6 = vadd.f32 %v2587_v50, %v2427_v2  ;;  %v2429_v28 = vadd.f32 %v2428_v43, %v5874_v5 }
 0x32c   : > { %v2589_v56 = vpop.f32.mrf.mxu0  ;;  %v2432_v49 = vpop.f32.mrf.mxu1 }
 0x32d   : > { %3046 = vst [vmem:[%s5658_s12 + $0x160] sm:$0xff] %v2588_v6  ;;  %v2590_v46 = vadd.f32 %v2589_v56, %v2429_v28  ;;  %v2433_v45 = vadd.f32 %v2432_v49, %v5870_v41 }
 0x32e   : > { %v2593_v22 = vpop.f32.mrf.mxu0  ;;  %v2434_v34 = vpop.f32.mrf.mxu1 }
 0x32f   : > { %3047 = vst [vmem:[%s5658_s12 + $0x168] sm:$0xff] %v2590_v46  ;;  %v2594_v9 = vadd.f32 %v2593_v22, %v2433_v45  ;;  %v2435_v19 = vadd.f32 %v2434_v34, %v5874_v5 }
 0x330   : > { %v2595_v13 = vpop.f32.mrf.mxu0  ;;  %v2436_v17 = vpop.f32.mrf.mxu1 }
 0x331   : > { %3052 = vst [vmem:[%s5658_s12 + $0x190] sm:$0xff] %v2594_v9  ;;  %v2596_v44 = vadd.f32 %v2595_v13, %v2435_v19  ;;  %v2437_v35 = vadd.f32 %v2436_v17, %v5870_v41 }
 0x332   : > { %v2597_v10 = vpop.f32.mrf.mxu0  ;;  %v2438_v27 = vpop.f32.mrf.mxu1 }
 0x333   : > { %3053 = vst [vmem:[%s5658_s12 + $0x198] sm:$0xff] %v2596_v44  ;;  %v2598_v48 = vadd.f32 %v2597_v10, %v2437_v35  ;;  %v2439_v58 = vadd.f32 %v2438_v27, %v5874_v5 }
 0x334   : > { %v2599_v53 = vpop.f32.mrf.mxu0  ;;  %v2442_v30 = vpop.f32.mrf.mxu1 }
 0x335   : > { %3058 = vst [vmem:[%s5658_s12 + $0x1c0] sm:$0xff] %v2598_v48  ;;  %v2600_v1 = vadd.f32 %v2599_v53, %v2439_v58  ;;  %v2443_v51 = vadd.f32 %v2442_v30, %v5870_v41 }
 0x336   : > { %v2603_v14 = vpop.f32.mrf.mxu0  ;;  %v2444_v12 = vpop.f32.mrf.mxu1 }
 0x337   : > { %3059 = vst [vmem:[%s5658_s12 + $0x1c8] sm:$0xff] %v2600_v1  ;;  %v2604_v24 = vadd.f32 %v2603_v14, %v2443_v51  ;;  %v2445_v31 = vadd.f32 %v2444_v12, %v5874_v5 }
 0x338   : > { %v2605_v61 = vpop.f32.mrf.mxu0  ;;  %v2446_v33 = vpop.f32.mrf.mxu1 }
 0x339   : > { %3064 = vst [vmem:[%s5658_s12 + $0x1f0] sm:$0xff] %v2604_v24  ;;  %v2606_v54 = vadd.f32 %v2605_v61, %v2445_v31  ;;  %v2447_v11 = vadd.f32 %v2446_v33, %v5870_v41 }
 0x33a   : > { %v2607_v60 = vpop.f32.mrf.mxu0  ;;  %v2448_v39 = vpop.f32.mrf.mxu1 }
 0x33b   : > { %3065 = vst [vmem:[%s5658_s12 + $0x1f8] sm:$0xff] %v2606_v54  ;;  %v2608_v38 = vadd.f32 %v2607_v60, %v2447_v11  ;;  %v2449_v42 = vadd.f32 %v2448_v39, %v5874_v5 }
 0x33c   : > { %v2609_v18 = vpop.f32.mrf.mxu0  ;;  %v2452_v32 = vpop.f32.mrf.mxu1 }
 0x33d   : > { %3070 = vst [vmem:[%s5658_s12 + $0x220] sm:$0xff] %v2608_v38  ;;  %v2610_v55 = vadd.f32 %v2609_v18, %v2449_v42  ;;  %v2453_v21 = vadd.f32 %v2452_v32, %v5870_v41 }
 0x33e   : > { %v2613_v57 = vpop.f32.mrf.mxu0  ;;  %v2454_v15 = vpop.f32.mrf.mxu1 }
 0x33f   : > { %3071 = vst [vmem:[%s5658_s12 + $0x228] sm:$0xff] %v2610_v55  ;;  %v2614_v36 = vadd.f32 %v2613_v57, %v2453_v21  ;;  %v2455_v4 = vadd.f32 %v2454_v15, %v5874_v5 }
 0x340   : > { %v2615_v47 = vpop.f32.mrf.mxu0  ;;  %v2456_v63 = vpop.f32.mrf.mxu1 }
 0x341   : > { %3076 = vst [vmem:[%s5658_s12 + $0x250] sm:$0xff] %v2614_v36  ;;  %v2616_v16 = vadd.f32 %v2615_v47, %v2455_v4  ;;  %v2457_v59 = vadd.f32 %v2456_v63, %v5870_v41 }
 0x342   : > { %v2617_v29 = vpop.f32.mrf.mxu0  ;;  %v2458_v62 = vpop.f32.mrf.mxu1 }
 0x343   : > { %3077 = vst [vmem:[%s5658_s12 + $0x258] sm:$0xff] %v2616_v16  ;;  %v2618_v23 = vadd.f32 %v2617_v29, %v2457_v59  ;;  %v2459_v3 = vadd.f32 %v2458_v62, %v5874_v5 }
 0x344   : > { %v2619_v25 = vpop.f32.mrf.mxu0  ;;  %v2462_v52 = vpop.f32.mrf.mxu1 }
 0x345   : > { %3082 = vst [vmem:[%s5658_s12 + $0x280] sm:$0xff] %v2618_v23  ;;  %v2620_v7 = vadd.f32 %v2619_v25, %v2459_v3  ;;  %v2463_v8 = vadd.f32 %v2462_v52, %v5870_v41 }
 0x346   : > { %v2623_v37 = vpop.f32.mrf.mxu0  ;;  %v2464_v26 = vpop.f32.mrf.mxu1 }
 0x347   : > { %3083 = vst [vmem:[%s5658_s12 + $0x288] sm:$0xff] %v2620_v7  ;;  %v2624_v40 = vadd.f32 %v2623_v37, %v2463_v8  ;;  %v2465_v0 = vadd.f32 %v2464_v26, %v5874_v5 }
 0x348   : > { %v2625_v2 = vpop.f32.mrf.mxu0  ;;  %v2466_v50 = vpop.f32.mrf.mxu1 }
 0x349   : > { %3088 = vst [vmem:[%s5658_s12 + $0x2b0] sm:$0xff] %v2624_v40  ;;  %v2626_v43 = vadd.f32 %v2625_v2, %v2465_v0  ;;  %v2467_v6 = vadd.f32 %v2466_v50, %v5870_v41 }
 0x34a   : > { %v2627_v28 = vpop.f32.mrf.mxu0  ;;  %v2468_v56 = vpop.f32.mrf.mxu1 }
 0x34b   : > { %3089 = vst [vmem:[%s5658_s12 + $0x2b8] sm:$0xff] %v2626_v43  ;;  %v2628_v49 = vadd.f32 %v2627_v28, %v2467_v6  ;;  %v2469_v46 = vadd.f32 %v2468_v56, %v5874_v5 }
 0x34c   : > { %v2629_v45 = vpop.f32.mrf.mxu0  ;;  %v2472_v22 = vpop.f32.mrf.mxu1 }
 0x34d   : > { %3094 = vst [vmem:[%s5658_s12 + $0x2e0] sm:$0xff] %v2628_v49  ;;  %v2630_v34 = vadd.f32 %v2629_v45, %v2469_v46  ;;  %v2473_v9 = vadd.f32 %v2472_v22, %v5870_v41 }
 0x34e   : > { %v2633_v19 = vpop.f32.mrf.mxu0  ;;  %v2474_v13 = vpop.f32.mrf.mxu1 }
 0x34f   : > { %3095 = vst [vmem:[%s5658_s12 + $0x2e8] sm:$0xff] %v2630_v34  ;;  %v2634_v17 = vadd.f32 %v2633_v19, %v2473_v9  ;;  %v2475_v44 = vadd.f32 %v2474_v13, %v5874_v5 }
 0x350   : > { %v2635_v35 = vpop.f32.mrf.mxu0  ;;  %v2476_v10 = vpop.f32.mrf.mxu1 }
 0x351   : > { %3100 = vst [vmem:[%s5658_s12 + $0x310] sm:$0xff] %v2634_v17  ;;  %v2636_v27 = vadd.f32 %v2635_v35, %v2475_v44  ;;  %v2477_v48 = vadd.f32 %v2476_v10, %v5870_v41  ;;  %v1304_v44 = vsub.s32 4, %v6642_v20 }
 0x352   : > { %v2637_v58 = vpop.f32.mrf.mxu0  ;;  %v2478_v53 = vpop.f32.mrf.mxu1 }
 0x353   : > { %3101 = vst [vmem:[%s5658_s12 + $0x318] sm:$0xff] %v2636_v27  ;;  %v2638_v30 = vadd.f32 %v2637_v58, %v2477_v48  ;;  %v2479_v1 = vadd.f32 %v2478_v53, %v5874_v5  ;;  %v1308_v58 = vsub.s32 5, %v6642_v20 }
 0x354   : > { %v2639_v51 = vpop.f32.mrf.mxu0  ;;  %v2482_v14 = vpop.f32.mrf.mxu1 }
 0x355   : > { %3106 = vst [vmem:[%s5658_s12 + $0x340] sm:$0xff] %v2638_v30  ;;  %v2640_v12 = vadd.f32 %v2639_v51, %v2479_v1  ;;  %v2483_v24 = vadd.f32 %v2482_v14, %v5870_v41  ;;  %v4007_v51 = vld [vmem:[%s5598_s17] sm:$0x3f] }
 0x356   : > { %v2643_v31 = vpop.f32.mrf.mxu0  ;;  %v2484_v61 = vpop.f32.mrf.mxu1  ;;  %v5986_v14 = vrot.slane %v4007_v51, %v1304_v44 }
 0x357   : > { %3107 = vst [vmem:[%s5658_s12 + $0x348] sm:$0xff] %v2640_v12  ;;  %v2644_v33 = vadd.f32 %v2643_v31, %v2483_v24  ;;  %v2485_v54 = vadd.f32 %v2484_v61, %v5874_v5  ;;  %v5989_v24 = vrot.slane %v4007_v51, %v1308_v58 }
 0x358   : > { %v2645_v11 = vpop.f32.mrf.mxu0  ;;  %v2486_v60 = vpop.f32.mrf.mxu1 }
 0x359   : > { %3112 = vst [vmem:[%s5658_s12 + $0x370] sm:$0xff] %v2644_v33  ;;  %v2646_v39 = vadd.f32 %v2645_v11, %v2485_v54  ;;  %v2487_v38 = vadd.f32 %v2486_v60, %v5870_v41 }
 0x35a   : > { %v2647_v42 = vpop.f32.mrf.mxu0  ;;  %v2488_v18 = vpop.f32.mrf.mxu1 }
 0x35b   : > { %3113 = vst [vmem:[%s5658_s12 + $0x378] sm:$0xff] %v2646_v39  ;;  %v2648_v32 = vadd.f32 %v2647_v42, %v2487_v38  ;;  %v2489_v55 = vadd.f32 %v2488_v18, %v5874_v5 }
 0x35c   : > { %v2649_v21 = vpop.f32.mrf.mxu0  ;;  %v2492_v57 = vpop.f32.mrf.mxu1 }
 0x35d   : > { %3118 = vst [vmem:[%s5658_s12 + $0x3a0] sm:$0xff] %v2648_v32  ;;  %v2650_v15 = vadd.f32 %v2649_v21, %v2489_v55  ;;  %v2493_v36 = vadd.f32 %v2492_v57, %v5870_v41 }
 0x35e   : > { %v2653_v4 = vpop.f32.mrf.mxu0  ;;  %v2494_v47 = vpop.f32.mrf.mxu1 }
 0x35f   : > { %3119 = vst [vmem:[%s5658_s12 + $0x3a8] sm:$0xff] %v2650_v15  ;;  %v2654_v63 = vadd.f32 %v2653_v4, %v2493_v36  ;;  %v2495_v16 = vadd.f32 %v2494_v47, %v5874_v5 }
 0x360   : > { %v2655_v59 = vpop.f32.mrf.mxu0  ;;  %v2496_v29 = vpop.f32.mrf.mxu1 }
 0x361   : > { %3124 = vst [vmem:[%s5658_s12 + $0x3d0] sm:$0xff] %v2654_v63  ;;  %v2656_v62 = vadd.f32 %v2655_v59, %v2495_v16  ;;  %v2497_v23 = vadd.f32 %v2496_v29, %v5870_v41 }
 0x362   : > { %v2657_v3 = vpop.f32.mrf.mxu0  ;;  %v2498_v25 = vpop.f32.mrf.mxu1 }
 0x363   : > { %3125 = vst [vmem:[%s5658_s12 + $0x3d8] sm:$0xff] %v2656_v62  ;;  %v2658_v52 = vadd.f32 %v2657_v3, %v2497_v23  ;;  %v2499_v7 = vadd.f32 %v2498_v25, %v5874_v5 }
 0x364   : > { %v2659_v8 = vpop.f32.mrf.mxu0  ;;  %v2502_v37 = vpop.f32.mrf.mxu1 }
 0x365   : > { %3130 = vst [vmem:[%s5658_s12 + $0x400] sm:$0xff] %v2658_v52  ;;  %v2660_v26 = vadd.f32 %v2659_v8, %v2499_v7  ;;  %v2503_v40 = vadd.f32 %v2502_v37, %v5870_v41 }
 0x366   : > { %v2663_v0 = vpop.f32.mrf.mxu0  ;;  %v2504_v2 = vpop.f32.mrf.mxu1 }
 0x367   : > { %3131 = vst [vmem:[%s5658_s12 + $0x408] sm:$0xff] %v2660_v26  ;;  %v2664_v50 = vadd.f32 %v2663_v0, %v2503_v40  ;;  %v2505_v43 = vadd.f32 %v2504_v2, %v5874_v5 }
 0x368   : > { %v2665_v6 = vpop.f32.mrf.mxu0  ;;  %v2506_v28 = vpop.f32.mrf.mxu1 }
 0x369   : > { %3136 = vst [vmem:[%s5658_s12 + $0x430] sm:$0xff] %v2664_v50  ;;  %v2666_v56 = vadd.f32 %v2665_v6, %v2505_v43  ;;  %v2507_v49 = vadd.f32 %v2506_v28, %v5870_v41 }
 0x36a   : > { %v2667_v46 = vpop.f32.mrf.mxu0  ;;  %v2508_v45 = vpop.f32.mrf.mxu1 }
 0x36b   : > { %3137 = vst [vmem:[%s5658_s12 + $0x438] sm:$0xff] %v2666_v56  ;;  %v2668_v22 = vadd.f32 %v2667_v46, %v2507_v49  ;;  %v2509_v34 = vadd.f32 %v2508_v45, %v5874_v5 }
 0x36c   : > { %v2669_v9 = vpop.f32.mrf.mxu0  ;;  %v2512_v19 = vpop.f32.mrf.mxu1 }
 0x36d   : > { %3142 = vst [vmem:[%s5658_s12 + $0x460] sm:$0xff] %v2668_v22  ;;  %v2670_v13 = vadd.f32 %v2669_v9, %v2509_v34  ;;  %v2513_v17 = vadd.f32 %v2512_v19, %v5870_v41 }
 0x36e   : > { %v2673_v35 = vpop.f32.mrf.mxu0  ;;  %v2514_v10 = vpop.f32.mrf.mxu1 }
 0x36f   : > { %3143 = vst [vmem:[%s5658_s12 + $0x468] sm:$0xff] %v2670_v13  ;;  %v2674_v27 = vadd.f32 %v2673_v35, %v2513_v17  ;;  %v2515_v48 = vadd.f32 %v2514_v10, %v5874_v5 }
 0x370   : > { %v2675_v53 = vpop.f32.mrf.mxu0  ;;  %v2516_v30 = vpop.f32.mrf.mxu1 }
 0x371   : > { %3148 = vst [vmem:[%s5658_s12 + $0x490] sm:$0xf] %v2674_v27  ;;  %v2676_v1 = vadd.f32 %v2675_v53, %v2515_v48 }
 0x372   : > { %v2677_v41 = vpop.f32.mrf.mxu0  ;;  %v2517_v12 = vpop.f32.mrf.mxu1 }
 0x373   : > { %3149 = vst [vmem:[%s5658_s12 + $0x498] sm:$0xf] %v2676_v1 }
 0x374   : > { %v2678_v31 = vpop.f32.mrf.mxu0  ;;  %v2714_v61 = vpop.f32.mrf.mxu1 }
 0x375   : > { %v2715_v5 = vadd.f32 %v2714_v61, %v5986_v14 }
 0x376   : > { %v2875_v33 = vpop.f32.mrf.mxu0  ;;  %v2716_v20 = vpop.f32.mrf.mxu1 }
 0x377   : > { %v2876_v54 = vadd.f32 %v2875_v33, %v2715_v5  ;;  %v2717_v11 = vadd.f32 %v2716_v20, %v5989_v24 }
 0x378   : > { %v2877_v60 = vpop.f32.mrf.mxu0  ;;  %v2718_v39 = vpop.f32.mrf.mxu1 }
 0x379   : > { %3006 = vst [vmem:[%s5658_s12 + $0x20] sm:$0xff] %v2876_v54  ;;  %v2878_v38 = vadd.f32 %v2877_v60, %v2717_v11  ;;  %v2719_v42 = vadd.f32 %v2718_v39, %v5986_v14 }
 0x37a   : > { %v2879_v18 = vpop.f32.mrf.mxu0  ;;  %v2720_v32 = vpop.f32.mrf.mxu1 }
 0x37b   : > { %3007 = vst [vmem:[%s5658_s12 + $0x28] sm:$0xff] %v2878_v38  ;;  %v2880_v55 = vadd.f32 %v2879_v18, %v2719_v42  ;;  %v2721_v21 = vadd.f32 %v2720_v32, %v5989_v24 }
 0x37c   : > { %v2881_v57 = vpop.f32.mrf.mxu0  ;;  %v2724_v15 = vpop.f32.mrf.mxu1 }
 0x37d   : > { %3012 = vst [vmem:[%s5658_s12 + $0x50] sm:$0xff] %v2880_v55  ;;  %v2882_v36 = vadd.f32 %v2881_v57, %v2721_v21  ;;  %v2725_v4 = vadd.f32 %v2724_v15, %v5986_v14 }
 0x37e   : > { %v2885_v47 = vpop.f32.mrf.mxu0  ;;  %v2726_v63 = vpop.f32.mrf.mxu1 }
 0x37f   : > { %3013 = vst [vmem:[%s5658_s12 + $0x58] sm:$0xff] %v2882_v36  ;;  %v2886_v16 = vadd.f32 %v2885_v47, %v2725_v4  ;;  %v2727_v59 = vadd.f32 %v2726_v63, %v5989_v24 }
 0x380   : > { %v2887_v29 = vpop.f32.mrf.mxu0  ;;  %v2728_v62 = vpop.f32.mrf.mxu1 }
 0x381   : > { %3018 = vst [vmem:[%s5658_s12 + $0x80] sm:$0xff] %v2886_v16  ;;  %v2888_v23 = vadd.f32 %v2887_v29, %v2727_v59  ;;  %v2729_v3 = vadd.f32 %v2728_v62, %v5986_v14 }
 0x382   : > { %v2889_v25 = vpop.f32.mrf.mxu0  ;;  %v2730_v52 = vpop.f32.mrf.mxu1 }
 0x383   : > { %3019 = vst [vmem:[%s5658_s12 + $0x88] sm:$0xff] %v2888_v23  ;;  %v2890_v7 = vadd.f32 %v2889_v25, %v2729_v3  ;;  %v2731_v8 = vadd.f32 %v2730_v52, %v5989_v24 }
 0x384   : > { %v2891_v37 = vpop.f32.mrf.mxu0  ;;  %v2734_v26 = vpop.f32.mrf.mxu1 }
 0x385   : > { %3024 = vst [vmem:[%s5658_s12 + $0xb0] sm:$0xff] %v2890_v7  ;;  %v2892_v40 = vadd.f32 %v2891_v37, %v2731_v8  ;;  %v2735_v0 = vadd.f32 %v2734_v26, %v5986_v14 }
 0x386   : > { %v2895_v2 = vpop.f32.mrf.mxu0  ;;  %v2736_v50 = vpop.f32.mrf.mxu1 }
 0x387   : > { %3025 = vst [vmem:[%s5658_s12 + $0xb8] sm:$0xff] %v2892_v40  ;;  %v2896_v43 = vadd.f32 %v2895_v2, %v2735_v0  ;;  %v2737_v6 = vadd.f32 %v2736_v50, %v5989_v24 }
 0x388   : > { %v2897_v28 = vpop.f32.mrf.mxu0  ;;  %v2738_v56 = vpop.f32.mrf.mxu1 }
 0x389   : > { %3030 = vst [vmem:[%s5658_s12 + $0xe0] sm:$0xff] %v2896_v43  ;;  %v2898_v49 = vadd.f32 %v2897_v28, %v2737_v6  ;;  %v2739_v46 = vadd.f32 %v2738_v56, %v5986_v14 }
 0x38a   : > { %v2899_v45 = vpop.f32.mrf.mxu0  ;;  %v2740_v22 = vpop.f32.mrf.mxu1 }
 0x38b   : > { %3031 = vst [vmem:[%s5658_s12 + $0xe8] sm:$0xff] %v2898_v49  ;;  %v2900_v34 = vadd.f32 %v2899_v45, %v2739_v46  ;;  %v2741_v9 = vadd.f32 %v2740_v22, %v5989_v24 }
 0x38c   : > { %v2901_v19 = vpop.f32.mrf.mxu0  ;;  %v2744_v13 = vpop.f32.mrf.mxu1 }
 0x38d   : > { %3036 = vst [vmem:[%s5658_s12 + $0x110] sm:$0xff] %v2900_v34  ;;  %v2902_v17 = vadd.f32 %v2901_v19, %v2741_v9  ;;  %v2745_v44 = vadd.f32 %v2744_v13, %v5986_v14 }
 0x38e   : > { %v2905_v35 = vpop.f32.mrf.mxu0  ;;  %v2746_v10 = vpop.f32.mrf.mxu1 }
 0x38f   : > { %3037 = vst [vmem:[%s5658_s12 + $0x118] sm:$0xff] %v2902_v17  ;;  %v2906_v27 = vadd.f32 %v2905_v35, %v2745_v44  ;;  %v2747_v48 = vadd.f32 %v2746_v10, %v5989_v24 }
 0x390   : > { %v2907_v58 = vpop.f32.mrf.mxu0  ;;  %v2748_v53 = vpop.f32.mrf.mxu1 }
 0x391   : > { %3042 = vst [vmem:[%s5658_s12 + $0x140] sm:$0xff] %v2906_v27  ;;  %v2908_v30 = vadd.f32 %v2907_v58, %v2747_v48  ;;  %v2749_v1 = vadd.f32 %v2748_v53, %v5986_v14 }
 0x392   : > { %v2909_v51 = vpop.f32.mrf.mxu0  ;;  %v2750_v41 = vpop.f32.mrf.mxu1 }
 0x393   : > { %3043 = vst [vmem:[%s5658_s12 + $0x148] sm:$0xff] %v2908_v30  ;;  %v2910_v12 = vadd.f32 %v2909_v51, %v2749_v1  ;;  %v2751_v31 = vadd.f32 %v2750_v41, %v5989_v24 }
 0x394   : > { %v2911_v61 = vpop.f32.mrf.mxu0  ;;  %v2754_v5 = vpop.f32.mrf.mxu1 }
 0x395   : > { %3048 = vst [vmem:[%s5658_s12 + $0x170] sm:$0xff] %v2910_v12  ;;  %v2912_v33 = vadd.f32 %v2911_v61, %v2751_v31  ;;  %v2755_v20 = vadd.f32 %v2754_v5, %v5986_v14 }
 0x396   : > { %v2915_v54 = vpop.f32.mrf.mxu0  ;;  %v2756_v11 = vpop.f32.mrf.mxu1 }
 0x397   : > { %3049 = vst [vmem:[%s5658_s12 + $0x178] sm:$0xff] %v2912_v33  ;;  %v2916_v60 = vadd.f32 %v2915_v54, %v2755_v20  ;;  %v2757_v39 = vadd.f32 %v2756_v11, %v5989_v24 }
 0x398   : > { %v2917_v38 = vpop.f32.mrf.mxu0  ;;  %v2758_v42 = vpop.f32.mrf.mxu1 }
 0x399   : > { %3054 = vst [vmem:[%s5658_s12 + $0x1a0] sm:$0xff] %v2916_v60  ;;  %v2918_v18 = vadd.f32 %v2917_v38, %v2757_v39  ;;  %v2759_v32 = vadd.f32 %v2758_v42, %v5986_v14 }
 0x39a   : > { %v2919_v55 = vpop.f32.mrf.mxu0  ;;  %v2760_v21 = vpop.f32.mrf.mxu1 }
 0x39b   : > { %3055 = vst [vmem:[%s5658_s12 + $0x1a8] sm:$0xff] %v2918_v18  ;;  %v2920_v57 = vadd.f32 %v2919_v55, %v2759_v32  ;;  %v2761_v15 = vadd.f32 %v2760_v21, %v5989_v24 }
 0x39c   : > { %v2921_v36 = vpop.f32.mrf.mxu0  ;;  %v2764_v4 = vpop.f32.mrf.mxu1 }
 0x39d   : > { %3060 = vst [vmem:[%s5658_s12 + $0x1d0] sm:$0xff] %v2920_v57  ;;  %v2922_v47 = vadd.f32 %v2921_v36, %v2761_v15  ;;  %v2765_v63 = vadd.f32 %v2764_v4, %v5986_v14 }
 0x39e   : > { %v2925_v16 = vpop.f32.mrf.mxu0  ;;  %v2766_v59 = vpop.f32.mrf.mxu1 }
 0x39f   : > { %3061 = vst [vmem:[%s5658_s12 + $0x1d8] sm:$0xff] %v2922_v47  ;;  %v2926_v29 = vadd.f32 %v2925_v16, %v2765_v63  ;;  %v2767_v62 = vadd.f32 %v2766_v59, %v5989_v24 }
 0x3a0   : > { %v2927_v23 = vpop.f32.mrf.mxu0  ;;  %v2768_v3 = vpop.f32.mrf.mxu1 }
 0x3a1   : > { %3066 = vst [vmem:[%s5658_s12 + $0x200] sm:$0xff] %v2926_v29  ;;  %v2928_v25 = vadd.f32 %v2927_v23, %v2767_v62  ;;  %v2769_v52 = vadd.f32 %v2768_v3, %v5986_v14 }
 0x3a2   : > { %v2929_v7 = vpop.f32.mrf.mxu0  ;;  %v2770_v8 = vpop.f32.mrf.mxu1 }
 0x3a3   : > { %3067 = vst [vmem:[%s5658_s12 + $0x208] sm:$0xff] %v2928_v25  ;;  %v2930_v37 = vadd.f32 %v2929_v7, %v2769_v52  ;;  %v2771_v26 = vadd.f32 %v2770_v8, %v5989_v24 }
 0x3a4   : > { %v2931_v40 = vpop.f32.mrf.mxu0  ;;  %v2774_v0 = vpop.f32.mrf.mxu1 }
 0x3a5   : > { %3072 = vst [vmem:[%s5658_s12 + $0x230] sm:$0xff] %v2930_v37  ;;  %v2932_v2 = vadd.f32 %v2931_v40, %v2771_v26  ;;  %v2775_v50 = vadd.f32 %v2774_v0, %v5986_v14 }
 0x3a6   : > { %v2935_v43 = vpop.f32.mrf.mxu0  ;;  %v2776_v6 = vpop.f32.mrf.mxu1 }
 0x3a7   : > { %3073 = vst [vmem:[%s5658_s12 + $0x238] sm:$0xff] %v2932_v2  ;;  %v2936_v28 = vadd.f32 %v2935_v43, %v2775_v50  ;;  %v2777_v56 = vadd.f32 %v2776_v6, %v5989_v24 }
 0x3a8   : > { %v2937_v49 = vpop.f32.mrf.mxu0  ;;  %v2778_v46 = vpop.f32.mrf.mxu1 }
 0x3a9   : > { %3078 = vst [vmem:[%s5658_s12 + $0x260] sm:$0xff] %v2936_v28  ;;  %v2938_v45 = vadd.f32 %v2937_v49, %v2777_v56  ;;  %v2779_v22 = vadd.f32 %v2778_v46, %v5986_v14 }
 0x3aa   : > { %v2939_v34 = vpop.f32.mrf.mxu0  ;;  %v2780_v9 = vpop.f32.mrf.mxu1 }
 0x3ab   : > { %3079 = vst [vmem:[%s5658_s12 + $0x268] sm:$0xff] %v2938_v45  ;;  %v2940_v19 = vadd.f32 %v2939_v34, %v2779_v22  ;;  %v2781_v13 = vadd.f32 %v2780_v9, %v5989_v24 }
 0x3ac   : > { %v2941_v17 = vpop.f32.mrf.mxu0  ;;  %v2784_v44 = vpop.f32.mrf.mxu1 }
 0x3ad   : > { %3084 = vst [vmem:[%s5658_s12 + $0x290] sm:$0xff] %v2940_v19  ;;  %v2942_v35 = vadd.f32 %v2941_v17, %v2781_v13  ;;  %v2785_v10 = vadd.f32 %v2784_v44, %v5986_v14 }
 0x3ae   : > { %v2945_v27 = vpop.f32.mrf.mxu0  ;;  %v2786_v48 = vpop.f32.mrf.mxu1 }
 0x3af   : > { %3085 = vst [vmem:[%s5658_s12 + $0x298] sm:$0xff] %v2942_v35  ;;  %v2946_v58 = vadd.f32 %v2945_v27, %v2785_v10  ;;  %v2787_v53 = vadd.f32 %v2786_v48, %v5989_v24 }
 0x3b0   : > { %v2947_v30 = vpop.f32.mrf.mxu0  ;;  %v2788_v1 = vpop.f32.mrf.mxu1 }
 0x3b1   : > { %3090 = vst [vmem:[%s5658_s12 + $0x2c0] sm:$0xff] %v2946_v58  ;;  %v2948_v51 = vadd.f32 %v2947_v30, %v2787_v53  ;;  %v2789_v41 = vadd.f32 %v2788_v1, %v5986_v14 }
 0x3b2   : > { %v2949_v12 = vpop.f32.mrf.mxu0  ;;  %v2790_v31 = vpop.f32.mrf.mxu1 }
 0x3b3   : > { %3091 = vst [vmem:[%s5658_s12 + $0x2c8] sm:$0xff] %v2948_v51  ;;  %v2950_v61 = vadd.f32 %v2949_v12, %v2789_v41  ;;  %v2791_v5 = vadd.f32 %v2790_v31, %v5989_v24 }
 0x3b4   : > { %v2951_v33 = vpop.f32.mrf.mxu0  ;;  %v2794_v20 = vpop.f32.mrf.mxu1 }
 0x3b5   : > { %3096 = vst [vmem:[%s5658_s12 + $0x2f0] sm:$0xff] %v2950_v61  ;;  %v2952_v54 = vadd.f32 %v2951_v33, %v2791_v5  ;;  %v2795_v11 = vadd.f32 %v2794_v20, %v5986_v14 }
 0x3b6   : > { %v2955_v60 = vpop.f32.mrf.mxu0  ;;  %v2796_v39 = vpop.f32.mrf.mxu1 }
 0x3b7   : > { %3097 = vst [vmem:[%s5658_s12 + $0x2f8] sm:$0xff] %v2952_v54  ;;  %v2956_v38 = vadd.f32 %v2955_v60, %v2795_v11  ;;  %v2797_v42 = vadd.f32 %v2796_v39, %v5989_v24 }
 0x3b8   : > { %v2957_v18 = vpop.f32.mrf.mxu0  ;;  %v2798_v32 = vpop.f32.mrf.mxu1 }
 0x3b9   : > { %3102 = vst [vmem:[%s5658_s12 + $0x320] sm:$0xff] %v2956_v38  ;;  %v2958_v55 = vadd.f32 %v2957_v18, %v2797_v42  ;;  %v2799_v21 = vadd.f32 %v2798_v32, %v5986_v14 }
 0x3ba   : > { %v2959_v57 = vpop.f32.mrf.mxu0  ;;  %v2800_v15 = vpop.f32.mrf.mxu1 }
 0x3bb   : > { %3103 = vst [vmem:[%s5658_s12 + $0x328] sm:$0xff] %v2958_v55  ;;  %v2960_v36 = vadd.f32 %v2959_v57, %v2799_v21  ;;  %v2801_v4 = vadd.f32 %v2800_v15, %v5989_v24 }
 0x3bc   : > { %v2961_v47 = vpop.f32.mrf.mxu0  ;;  %v2804_v63 = vpop.f32.mrf.mxu1 }
 0x3bd   : > { %3108 = vst [vmem:[%s5658_s12 + $0x350] sm:$0xff] %v2960_v36  ;;  %v2962_v16 = vadd.f32 %v2961_v47, %v2801_v4  ;;  %v2805_v59 = vadd.f32 %v2804_v63, %v5986_v14  ;;  %v3178_v47 = vld [vmem:[%s5658_s12 + $0x10] sm:$0xff] (%p4084_p5)  ;;  %v3180_v63 = vld [vmem:[%s5658_s12 + $0x18] sm:$0xff] (%p4084_p5) }
 0x3be   : > { %v2965_v29 = vpop.f32.mrf.mxu0  ;;  %v2806_v62 = vpop.f32.mrf.mxu1  ;;  %3179 = vst [vmem:[%s6103_s21 + $0x10] sm:$0xff] (%p4084_p5), %v3178_v47  ;;  %3181 = vst [vmem:[%s6103_s21 + $0x18] sm:$0xff] (%p4084_p5), %v3180_v63  ;;  %v3306_v47 = vld [vmem:[%s5658_s12 + $0x210] sm:$0xff] (%p4084_p5)  ;;  %v3308_v63 = vld [vmem:[%s5658_s12 + $0x218] sm:$0xff] (%p4084_p5) }
 0x3bf   : > { %3109 = vst [vmem:[%s5658_s12 + $0x358] sm:$0xff] %v2962_v16  ;;  %v2966_v23 = vadd.f32 %v2965_v29, %v2805_v59  ;;  %v2807_v3 = vadd.f32 %v2806_v62, %v5989_v24  ;;  %v3182_v16 = vld [vmem:[%s5658_s12 + $0x20] sm:$0xff] (%p4084_p5)  ;;  %v3184_v59 = vld [vmem:[%s5658_s12 + $0x28] sm:$0xff] (%p4084_p5)  ;;  %v3186_v29 = vld [vmem:[%s5658_s12 + $0x30] sm:$0xff] (%p4084_p5) }
 0x3c0   : > { %v2967_v25 = vpop.f32.mrf.mxu0  ;;  %v2808_v52 = vpop.f32.mrf.mxu1  ;;  %v3188_v62 = vld [vmem:[%s5658_s12 + $0x38] sm:$0xff] (%p4084_p5)  ;;  %3183 = vst [vmem:[%s6103_s21 + $0x20] sm:$0xff] (%p4084_p5), %v3182_v16  ;;  %3185 = vst [vmem:[%s6103_s21 + $0x28] sm:$0xff] (%p4084_p5), %v3184_v59  ;;  %v3310_v16 = vld [vmem:[%s5658_s12 + $0x220] sm:$0xff] (%p4084_p5) }
 0x3c1   : > { %3114 = vst [vmem:[%s5658_s12 + $0x380] sm:$0xff] %v2966_v23  ;;  %v2968_v7 = vadd.f32 %v2967_v25, %v2807_v3  ;;  %v2809_v8 = vadd.f32 %v2808_v52, %v5986_v14  ;;  %v3190_v23 = vld [vmem:[%s5658_s12 + $0x40] sm:$0xff] (%p4084_p5)  ;;  %3187 = vst [vmem:[%s6103_s21 + $0x60] sm:$0xff] (%p4084_p5), %v3186_v29  ;;  %v3192_v3 = vld [vmem:[%s5658_s12 + $0x48] sm:$0xff] (%p4084_p5) }
 0x3c2   : > { %v2969_v37 = vpop.f32.mrf.mxu0  ;;  %v2810_v26 = vpop.f32.mrf.mxu1  ;;  %3189 = vst [vmem:[%s6103_s21 + $0x68] sm:$0xff] (%p4084_p5), %v3188_v62  ;;  %3191 = vst [vmem:[%s6103_s21 + $0x70] sm:$0xff] (%p4084_p5), %v3190_v23  ;;  %v3194_v25 = vld [vmem:[%s5658_s12 + $0x50] sm:$0xff] (%p4084_p5)  ;;  %v3196_v52 = vld [vmem:[%s5658_s12 + $0x58] sm:$0xff] (%p4084_p5) }
 0x3c3   : > { %3115 = vst [vmem:[%s5658_s12 + $0x388] sm:$0xff] %v2968_v7  ;;  %v2970_v40 = vadd.f32 %v2969_v37, %v2809_v8  ;;  %v2811_v0 = vadd.f32 %v2810_v26, %v5989_v24  ;;  %3193 = vst [vmem:[%s6103_s21 + $0x78] sm:$0xff] (%p4084_p5), %v3192_v3  ;;  %v3198_v7 = vld [vmem:[%s5658_s12 + $0x60] sm:$0xff] (%p4084_p5)  ;;  %v3200_v8 = vld [vmem:[%s5658_s12 + $0x68] sm:$0xff] (%p4084_p5) }
 0x3c4   : > { %v2971_v2 = vpop.f32.mrf.mxu0  ;;  %v2814_v50 = vpop.f32.mrf.mxu1  ;;  %3195 = vst [vmem:[%s6103_s21 + $0x80] sm:$0xff] (%p4084_p5), %v3194_v25  ;;  %3197 = vst [vmem:[%s6103_s21 + $0x88] sm:$0xff] (%p4084_p5), %v3196_v52  ;;  %v3202_v37 = vld [vmem:[%s5658_s12 + $0x70] sm:$0xff] (%p4084_p5)  ;;  %v3204_v26 = vld [vmem:[%s5658_s12 + $0x78] sm:$0xff] (%p4084_p5) }
 0x3c5   : > { %3120 = vst [vmem:[%s5658_s12 + $0x3b0] sm:$0xff] %v2970_v40  ;;  %v2972_v43 = vadd.f32 %v2971_v2, %v2811_v0  ;;  %v2815_v6 = vadd.f32 %v2814_v50, %v5986_v14  ;;  %3199 = vst [vmem:[%s6103_s21 + $0xc0] sm:$0xff] (%p4084_p5), %v3198_v7  ;;  %v3206_v40 = vld [vmem:[%s5658_s12 + $0x80] sm:$0xff] (%p4084_p5)  ;;  %v3208_v0 = vld [vmem:[%s5658_s12 + $0x88] sm:$0xff] (%p4084_p5) }
 0x3c6   : > { %v2975_v28 = vpop.f32.mrf.mxu0  ;;  %v2816_v56 = vpop.f32.mrf.mxu1  ;;  %3201 = vst [vmem:[%s6103_s21 + $0xc8] sm:$0xff] (%p4084_p5), %v3200_v8  ;;  %3203 = vst [vmem:[%s6103_s21 + $0xd0] sm:$0xff] (%p4084_p5), %v3202_v37  ;;  %v3210_v2 = vld [vmem:[%s5658_s12 + $0x90] sm:$0xff] (%p4084_p5)  ;;  %v3212_v50 = vld [vmem:[%s5658_s12 + $0x98] sm:$0xff] (%p4084_p5) }
 0x3c7   : > { %3121 = vst [vmem:[%s5658_s12 + $0x3b8] sm:$0xff] %v2972_v43  ;;  %v2976_v49 = vadd.f32 %v2975_v28, %v2815_v6  ;;  %v2817_v46 = vadd.f32 %v2816_v56, %v5989_v24  ;;  %3205 = vst [vmem:[%s6103_s21 + $0xd8] sm:$0xff] (%p4084_p5), %v3204_v26  ;;  %v3214_v43 = vld [vmem:[%s5658_s12 + $0xa0] sm:$0xff] (%p4084_p5)  ;;  %v3216_v6 = vld [vmem:[%s5658_s12 + $0xa8] sm:$0xff] (%p4084_p5) }
 0x3c8   : > { %v2977_v45 = vpop.f32.mrf.mxu0  ;;  %v2818_v22 = vpop.f32.mrf.mxu1  ;;  %3207 = vst [vmem:[%s6103_s21 + $0xe0] sm:$0xff] (%p4084_p5), %v3206_v40  ;;  %3209 = vst [vmem:[%s6103_s21 + $0xe8] sm:$0xff] (%p4084_p5), %v3208_v0  ;;  %v3218_v28 = vld [vmem:[%s5658_s12 + $0xb0] sm:$0xff] (%p4084_p5)  ;;  %v3220_v56 = vld [vmem:[%s5658_s12 + $0xb8] sm:$0xff] (%p4084_p5) }
 0x3c9   : > { %3126 = vst [vmem:[%s5658_s12 + $0x3e0] sm:$0xff] %v2976_v49  ;;  %v2978_v34 = vadd.f32 %v2977_v45, %v2817_v46  ;;  %v2819_v9 = vadd.f32 %v2818_v22, %v5986_v14  ;;  %3211 = vst [vmem:[%s6103_s21 + $0x120] sm:$0xff] (%p4084_p5), %v3210_v2  ;;  %v3222_v49 = vld [vmem:[%s5658_s12 + $0xc0] sm:$0xff] (%p4084_p5)  ;;  %v3224_v46 = vld [vmem:[%s5658_s12 + $0xc8] sm:$0xff] (%p4084_p5) }
 0x3ca   : > { %v2979_v19 = vpop.f32.mrf.mxu0  ;;  %v2820_v13 = vpop.f32.mrf.mxu1  ;;  %3213 = vst [vmem:[%s6103_s21 + $0x128] sm:$0xff] (%p4084_p5), %v3212_v50  ;;  %3215 = vst [vmem:[%s6103_s21 + $0x130] sm:$0xff] (%p4084_p5), %v3214_v43  ;;  %v3226_v45 = vld [vmem:[%s5658_s12 + $0xd0] sm:$0xff] (%p4084_p5)  ;;  %v3228_v22 = vld [vmem:[%s5658_s12 + $0xd8] sm:$0xff] (%p4084_p5) }
 0x3cb   : > { %3127 = vst [vmem:[%s5658_s12 + $0x3e8] sm:$0xff] %v2978_v34  ;;  %v2980_v17 = vadd.f32 %v2979_v19, %v2819_v9  ;;  %v2821_v44 = vadd.f32 %v2820_v13, %v5989_v24  ;;  %3217 = vst [vmem:[%s6103_s21 + $0x138] sm:$0xff] (%p4084_p5), %v3216_v6  ;;  %v3230_v34 = vld [vmem:[%s5658_s12 + $0xe0] sm:$0xff] (%p4084_p5)  ;;  %v3232_v9 = vld [vmem:[%s5658_s12 + $0xe8] sm:$0xff] (%p4084_p5) }
 0x3cc   : > { %v2981_v35 = vpop.f32.mrf.mxu0  ;;  %v2824_v10 = vpop.f32.mrf.mxu1  ;;  %3219 = vst [vmem:[%s6103_s21 + $0x140] sm:$0xff] (%p4084_p5), %v3218_v28  ;;  %3221 = vst [vmem:[%s6103_s21 + $0x148] sm:$0xff] (%p4084_p5), %v3220_v56  ;;  %v3234_v19 = vld [vmem:[%s5658_s12 + $0xf0] sm:$0xff] (%p4084_p5)  ;;  %v3236_v13 = vld [vmem:[%s5658_s12 + $0xf8] sm:$0xff] (%p4084_p5) }
 0x3cd   : > { %3132 = vst [vmem:[%s5658_s12 + $0x410] sm:$0xff] %v2980_v17  ;;  %v2982_v27 = vadd.f32 %v2981_v35, %v2821_v44  ;;  %v2825_v12 = vadd.f32 %v2824_v10, %v5986_v14  ;;  %3223 = vst [vmem:[%s6103_s21 + $0x180] sm:$0xff] (%p4084_p5), %v3222_v49  ;;  %v3238_v17 = vld [vmem:[%s5658_s12 + $0x100] sm:$0xff] (%p4084_p5)  ;;  %v3240_v44 = vld [vmem:[%s5658_s12 + $0x108] sm:$0xff] (%p4084_p5) }
 0x3ce   : > { %v2826_v48 = vpop.f32.mrf.mxu1  ;;  %3225 = vst [vmem:[%s6103_s21 + $0x188] sm:$0xff] (%p4084_p5), %v3224_v46  ;;  %3227 = vst [vmem:[%s6103_s21 + $0x190] sm:$0xff] (%p4084_p5), %v3226_v45  ;;  %v3242_v35 = vld [vmem:[%s5658_s12 + $0x110] sm:$0xff] (%p4084_p5)  ;;  %v3244_v10 = vld [vmem:[%s5658_s12 + $0x118] sm:$0xff] (%p4084_p5) }
 0x3cf   : > { %3133 = vst [vmem:[%s5658_s12 + $0x418] sm:$0xff] %v2982_v27  ;;  %v2827_v61 = vadd.f32 %v2826_v48, %v5989_v24  ;;  %3229 = vst [vmem:[%s6103_s21 + $0x198] sm:$0xff] (%p4084_p5), %v3228_v22  ;;  %v3246_v27 = vld [vmem:[%s5658_s12 + $0x120] sm:$0xff] (%p4084_p5)  ;;  %v3248_v48 = vld [vmem:[%s5658_s12 + $0x128] sm:$0xff] (%p4084_p5) }
 0x3d0   : > { %v2828_v58 = vpop.f32.mrf.mxu1  ;;  %3231 = vst [vmem:[%s6103_s21 + $0x1a0] sm:$0xff] (%p4084_p5), %v3230_v34  ;;  %3233 = vst [vmem:[%s6103_s21 + $0x1a8] sm:$0xff] (%p4084_p5), %v3232_v9  ;;  %v3312_v59 = vld [vmem:[%s5658_s12 + $0x228] sm:$0xff] (%p4084_p5)  ;;  %v3314_v29 = vld [vmem:[%s5658_s12 + $0x230] sm:$0xff] (%p4084_p5) }
 0x3d1   : > { %v2829_v20 = vadd.f32 %v2828_v58, %v5986_v14  ;;  %3235 = vst [vmem:[%s6103_s21 + $0x1e0] sm:$0xff] (%p4084_p5), %v3234_v19  ;;  %3237 = vst [vmem:[%s6103_s21 + $0x1e8] sm:$0xff] (%p4084_p5), %v3236_v13  ;;  %v3250_v58 = vld [vmem:[%s5658_s12 + $0x130] sm:$0xff] (%p4084_p5)  ;;  %v3316_v62 = vld [vmem:[%s5658_s12 + $0x238] sm:$0xff] (%p4084_p5) }
 0x3d2   : > { %v2830_v53 = vpop.f32.mrf.mxu1  ;;  %3239 = vst [vmem:[%s6103_s21 + $0x1f0] sm:$0xff] (%p4084_p5), %v3238_v17  ;;  %3241 = vst [vmem:[%s6103_s21 + $0x1f8] sm:$0xff] (%p4084_p5), %v3240_v44  ;;  %v3318_v23 = vld [vmem:[%s5658_s12 + $0x240] sm:$0xff] (%p4084_p5)  ;;  %v3320_v3 = vld [vmem:[%s5658_s12 + $0x248] sm:$0xff] (%p4084_p5) }
 0x3d3   : > { %v2831_v60 = vadd.f32 %v2830_v53, %v5989_v24  ;;  %3243 = vst [vmem:[%s6103_s21 + $0x200] sm:$0xff] (%p4084_p5), %v3242_v35  ;;  %3245 = vst [vmem:[%s6103_s21 + $0x208] sm:$0xff] (%p4084_p5), %v3244_v10  ;;  %v3252_v53 = vld [vmem:[%s5658_s12 + $0x138] sm:$0xff] (%p4084_p5)  ;;  %v3322_v25 = vld [vmem:[%s5658_s12 + $0x250] sm:$0xff] (%p4084_p5) }
 0x3d4   : > { %v2834_v30 = vpop.f32.mrf.mxu1  ;;  %3247 = vst [vmem:[%s6103_s21 + $0x240] sm:$0xff] (%p4084_p5), %v3246_v27  ;;  %3249 = vst [vmem:[%s6103_s21 + $0x248] sm:$0xff] (%p4084_p5), %v3248_v48  ;;  %v3324_v52 = vld [vmem:[%s5658_s12 + $0x258] sm:$0xff] (%p4084_p5)  ;;  %v3326_v7 = vld [vmem:[%s5658_s12 + $0x260] sm:$0xff] (%p4084_p5) }
 0x3d5   : > { %v2835_v42 = vadd.f32 %v2834_v30, %v5986_v14  ;;  %v3174_v14 = vld [vmem:[%s5658_s12] sm:$0xff] (%p4084_p5)  ;;  %3251 = vst [vmem:[%s6103_s21 + $0x250] sm:$0xff] (%p4084_p5), %v3250_v58  ;;  %3253 = vst [vmem:[%s6103_s21 + $0x258] sm:$0xff] (%p4084_p5), %v3252_v53  ;;  %v3328_v8 = vld [vmem:[%s5658_s12 + $0x268] sm:$0xff] (%p4084_p5) }
 0x3d6   : > { %v2836_v1 = vpop.f32.mrf.mxu1  ;;  %3175 = vst [vmem:[%s6103_s21] sm:$0xff] (%p4084_p5), %v3174_v14  ;;  %v3254_v30 = vld [vmem:[%s5658_s12 + $0x140] sm:$0xff] (%p4084_p5)  ;;  %3307 = vst [vmem:[%s6103_s21 + $0x420] sm:$0xff] (%p4084_p5), %v3306_v47  ;;  %v3330_v37 = vld [vmem:[%s5658_s12 + $0x270] sm:$0xff] (%p4084_p5) }
 0x3d7   : > { %v2837_v55 = vadd.f32 %v2836_v1, %v5989_v24  ;;  %v3176_v24 = vld [vmem:[%s5658_s12 + $0x8] sm:$0xff] (%p4084_p5)  ;;  %3255 = vst [vmem:[%s6103_s21 + $0x260] sm:$0xff] (%p4084_p5), %v3254_v30  ;;  %v3302_v14 = vld [vmem:[%s5658_s12 + $0x200] sm:$0xff] (%p4084_p5)  ;;  %3309 = vst [vmem:[%s6103_s21 + $0x428] sm:$0xff] (%p4084_p5), %v3308_v63 }
 0x3d8   : > { %v2838_v51 = vpop.f32.mrf.mxu1  ;;  %3177 = vst [vmem:[%s6103_s21 + $0x8] sm:$0xff] (%p4084_p5), %v3176_v24  ;;  %v3256_v1 = vld [vmem:[%s5658_s12 + $0x148] sm:$0xff] (%p4084_p5)  ;;  %3303 = vst [vmem:[%s6103_s21 + $0x3e0] sm:$0xff] (%p4084_p5), %v3302_v14  ;;  %v3332_v26 = vld [vmem:[%s5658_s12 + $0x278] sm:$0xff] (%p4084_p5) }
 0x3d9   : > { %3257 = vst [vmem:[%s6103_s21 + $0x268] sm:$0xff] (%p4084_p5), %v3256_v1  ;;  %v3258_v51 = vld [vmem:[%s5658_s12 + $0x150] sm:$0xff] (%p4084_p5)  ;;  %v3304_v24 = vld [vmem:[%s5658_s12 + $0x208] sm:$0xff] (%p4084_p5)  ;;  %3311 = vst [vmem:[%s6103_s21 + $0x430] sm:$0xff] (%p4084_p5), %v3310_v16 }
 0x3da   : > { %v2839_v41 = vpop.f32.mrf.mxu1  ;;  %3259 = vst [vmem:[%s6103_s21 + $0x2a0] sm:$0xff] (%p4084_p5), %v3258_v51  ;;  %3305 = vst [vmem:[%s6103_s21 + $0x3e8] sm:$0xff] (%p4084_p5), %v3304_v24  ;;  %v3334_v40 = vld [vmem:[%s5658_s12 + $0x280] sm:$0xff] (%p4084_p5)  ;;  %v3336_v0 = vld [vmem:[%s5658_s12 + $0x288] sm:$0xff] (%p4084_p5) }
 0x3db   : > { %v3260_v41 = vld [vmem:[%s5658_s12 + $0x158] sm:$0xff] (%p4084_p5)  ;;  %3313 = vst [vmem:[%s6103_s21 + $0x438] sm:$0xff] (%p4084_p5), %v3312_v59  ;;  %3315 = vst [vmem:[%s6103_s21 + $0x440] sm:$0xff] (%p4084_p5), %v3314_v29  ;;  %v3338_v2 = vld [vmem:[%s5658_s12 + $0x290] sm:$0xff] (%p4084_p5) }
 0x3dc   : > { %v2985_v31 = vpop.f32.mrf.mxu1  ;;  %3261 = vst [vmem:[%s6103_s21 + $0x2a8] sm:$0xff] (%p4084_p5), %v3260_v41  ;;  %3317 = vst [vmem:[%s6103_s21 + $0x448] sm:$0xff] (%p4084_p5), %v3316_v62  ;;  %v3340_v50 = vld [vmem:[%s5658_s12 + $0x298] sm:$0xff] (%p4084_p5)  ;;  %v3342_v43 = vld [vmem:[%s5658_s12 + $0x2a0] sm:$0xff] (%p4084_p5) }
 0x3dd   : > { %v2986_v5 = vadd.f32 %v2985_v31, %v2825_v12  ;;  %v3262_v12 = vld [vmem:[%s5658_s12 + $0x160] sm:$0xff] (%p4084_p5)  ;;  %v3264_v31 = vld [vmem:[%s5658_s12 + $0x168] sm:$0xff] (%p4084_p5)  ;;  %3319 = vst [vmem:[%s6103_s21 + $0x480] sm:$0xff] (%p4084_p5), %v3318_v23  ;;  %3321 = vst [vmem:[%s6103_s21 + $0x488] sm:$0xff] (%p4084_p5), %v3320_v3 }
 0x3de   : > { %v2987_v33 = vpop.f32.mrf.mxu1  ;;  %3263 = vst [vmem:[%s6103_s21 + $0x2b0] sm:$0xff] (%p4084_p5), %v3262_v12  ;;  %3265 = vst [vmem:[%s6103_s21 + $0x2b8] sm:$0xff] (%p4084_p5), %v3264_v31  ;;  %v3344_v6 = vld [vmem:[%s5658_s12 + $0x2a8] sm:$0xff] (%p4084_p5)  ;;  %v3346_v28 = vld [vmem:[%s5658_s12 + $0x2b0] sm:$0xff] (%p4084_p5) }
 0x3df   : > { %3138 = vst [vmem:[%s5658_s12 + $0x440] sm:$0xff] %v2986_v5  ;;  %v2988_v54 = vadd.f32 %v2987_v33, %v2827_v61  ;;  %v3266_v61 = vld [vmem:[%s5658_s12 + $0x170] sm:$0xff] (%p4084_p5)  ;;  %v3268_v5 = vld [vmem:[%s5658_s12 + $0x178] sm:$0xff] (%p4084_p5)  ;;  %v3270_v33 = vld [vmem:[%s5658_s12 + $0x180] sm:$0xff] (%p4084_p5) }
 0x3e0   : > { %v2989_v11 = vpop.f32.mrf.mxu1  ;;  %3267 = vst [vmem:[%s6103_s21 + $0x2c0] sm:$0xff] (%p4084_p5), %v3266_v61  ;;  %3269 = vst [vmem:[%s6103_s21 + $0x2c8] sm:$0xff] (%p4084_p5), %v3268_v5  ;;  %v3348_v56 = vld [vmem:[%s5658_s12 + $0x2b8] sm:$0xff] (%p4084_p5)  ;;  %v3350_v49 = vld [vmem:[%s5658_s12 + $0x2c0] sm:$0xff] (%p4084_p5) }
 0x3e1   : > { %3139 = vst [vmem:[%s5658_s12 + $0x448] sm:$0xff] %v2988_v54  ;;  %v2990_v39 = vadd.f32 %v2989_v11, %v2829_v20  ;;  %v3272_v20 = vld [vmem:[%s5658_s12 + $0x188] sm:$0xff] (%p4084_p5)  ;;  %v3274_v54 = vld [vmem:[%s5658_s12 + $0x190] sm:$0xff] (%p4084_p5)  ;;  %3271 = vst [vmem:[%s6103_s21 + $0x300] sm:$0xff] (%p4084_p5), %v3270_v33 }
 0x3e2   : > { %v2991_v38 = vpop.f32.mrf.mxu1  ;;  %3273 = vst [vmem:[%s6103_s21 + $0x308] sm:$0xff] (%p4084_p5), %v3272_v20  ;;  %3275 = vst [vmem:[%s6103_s21 + $0x310] sm:$0xff] (%p4084_p5), %v3274_v54  ;;  %v3276_v11 = vld [vmem:[%s5658_s12 + $0x198] sm:$0xff] (%p4084_p5)  ;;  %v3352_v46 = vld [vmem:[%s5658_s12 + $0x2c8] sm:$0xff] (%p4084_p5) }
 0x3e3   : > { %3144 = vst [vmem:[%s5658_s12 + $0x470] sm:$0xff] %v2990_v39  ;;  %v2992_v18 = vadd.f32 %v2991_v38, %v2831_v60  ;;  %v3278_v60 = vld [vmem:[%s5658_s12 + $0x1a0] sm:$0xff] (%p4084_p5)  ;;  %v3280_v39 = vld [vmem:[%s5658_s12 + $0x1a8] sm:$0xff] (%p4084_p5)  ;;  %3277 = vst [vmem:[%s6103_s21 + $0x318] sm:$0xff] (%p4084_p5), %v3276_v11 }
 0x3e4   : > { %v2995_v32 = vpop.f32.mrf.mxu1  ;;  %3279 = vst [vmem:[%s6103_s21 + $0x320] sm:$0xff] (%p4084_p5), %v3278_v60  ;;  %3281 = vst [vmem:[%s6103_s21 + $0x328] sm:$0xff] (%p4084_p5), %v3280_v39  ;;  %v3282_v38 = vld [vmem:[%s5658_s12 + $0x1b0] sm:$0xff] (%p4084_p5)  ;;  %v3356_v22 = vld [vmem:[%s5658_s12 + $0x2d8] sm:$0xff] (%p4084_p5) }
 0x3e5   : > { %3145 = vst [vmem:[%s5658_s12 + $0x478] sm:$0xff] %v2992_v18  ;;  %v2996_v21 = vadd.f32 %v2995_v32, %v2835_v42  ;;  %v3284_v42 = vld [vmem:[%s5658_s12 + $0x1b8] sm:$0xff] (%p4084_p5)  ;;  %v3286_v18 = vld [vmem:[%s5658_s12 + $0x1c0] sm:$0xff] (%p4084_p5)  ;;  %3283 = vst [vmem:[%s6103_s21 + $0x360] sm:$0xff] (%p4084_p5), %v3282_v38 }
 0x3e6   : > { %v2997_v57 = vpop.f32.mrf.mxu1  ;;  %3158 = sbr.rel (!%p4084_p5) target bundleno = 1042 (0x412), region = 59  ;;  %3285 = vst [vmem:[%s6103_s21 + $0x368] sm:$0xff] (%p4084_p5), %v3284_v42  ;;  %3287 = vst [vmem:[%s6103_s21 + $0x370] sm:$0xff] (%p4084_p5), %v3286_v18  ;;  %v3288_v32 = vld [vmem:[%s5658_s12 + $0x1c8] sm:$0xff] (%p4084_p5)  ;;  %v3354_v45 = vld [vmem:[%s5658_s12 + $0x2d0] sm:$0xff] (%p4084_p5) }
 0x3e7   : > { %3150 = vst [vmem:[%s5658_s12 + $0x4a0] sm:$0xf] %v2996_v21  ;;  %v2998_v15 = vadd.f32 %v2997_v57, %v2837_v55  ;;  %v3290_v55 = vld [vmem:[%s5658_s12 + $0x1d0] sm:$0xff] (%p4084_p5)  ;;  %v3292_v21 = vld [vmem:[%s5658_s12 + $0x1d8] sm:$0xff] (%p4084_p5)  ;;  %3289 = vst [vmem:[%s6103_s21 + $0x378] sm:$0xff] (%p4084_p5), %v3288_v32 }
 0x3e8   : > { %v2999_v36 = vpop.f32.mrf.mxu1  ;;  %3291 = vst [vmem:[%s6103_s21 + $0x380] sm:$0xff] (%p4084_p5), %v3290_v55  ;;  %3293 = vst [vmem:[%s6103_s21 + $0x388] sm:$0xff] (%p4084_p5), %v3292_v21  ;;  %v3294_v57 = vld [vmem:[%s5658_s12 + $0x1e0] sm:$0xff] (%p4084_p5)  ;;  %v3360_v9 = vld [vmem:[%s5658_s12 + $0x2e8] sm:$0xff] (%p4084_p5) }
 0x3e9   : > { %3151 = vst [vmem:[%s5658_s12 + $0x4a8] sm:$0xf] %v2998_v15  ;;  %v3296_v15 = vld [vmem:[%s5658_s12 + $0x1e8] sm:$0xff] (%p4084_p5)  ;;  %v3298_v36 = vld [vmem:[%s5658_s12 + $0x1f0] sm:$0xff] (%p4084_p5)  ;;  %3295 = vst [vmem:[%s6103_s21 + $0x3c0] sm:$0xff] (%p4084_p5), %v3294_v57 }
 0x3ea   : > { %v3000_v4 = vpop.f32.mrf.mxu1  ;;  %3297 = vst [vmem:[%s6103_s21 + $0x3c8] sm:$0xff] (%p4084_p5), %v3296_v15  ;;  %3299 = vst [vmem:[%s6103_s21 + $0x3d0] sm:$0xff] (%p4084_p5), %v3298_v36  ;;  %v3358_v34 = vld [vmem:[%s5658_s12 + $0x2e0] sm:$0xff] (%p4084_p5)  ;;  %v3362_v19 = vld [vmem:[%s5658_s12 + $0x2f0] sm:$0xff] (%p4084_p5) }
 0x3eb   : > { %v3300_v4 = vld [vmem:[%s5658_s12 + $0x1f8] sm:$0xff]  ;;  %3323 = vst [vmem:[%s6103_s21 + $0x490] sm:$0xff] %v3322_v25  ;;  %3325 = vst [vmem:[%s6103_s21 + $0x498] sm:$0xff] %v3324_v52  ;;  %v3366_v17 = vld [vmem:[%s5658_s12 + $0x300] sm:$0xff] }
 0x3ec   : > { %3301 = vst [vmem:[%s6103_s21 + $0x3d8] sm:$0xff] %v3300_v4  ;;  %3327 = vst [vmem:[%s6103_s21 + $0x4a0] sm:$0xff] %v3326_v7  ;;  %v3364_v13 = vld [vmem:[%s5658_s12 + $0x2f8] sm:$0xff]  ;;  %v3368_v44 = vld [vmem:[%s5658_s12 + $0x308] sm:$0xff] }
 0x3ed   : > { %3329 = vst [vmem:[%s6103_s21 + $0x4a8] sm:$0xff] %v3328_v8  ;;  %3331 = vst [vmem:[%s6103_s21 + $0x4e0] sm:$0xff] %v3330_v37  ;;  %v3370_v35 = vld [vmem:[%s5658_s12 + $0x310] sm:$0xff]  ;;  %v3372_v10 = vld [vmem:[%s5658_s12 + $0x318] sm:$0xff] }
 0x3ee   : > { %3333 = vst [vmem:[%s6103_s21 + $0x4e8] sm:$0xff] %v3332_v26  ;;  %3335 = vst [vmem:[%s6103_s21 + $0x4f0] sm:$0xff] %v3334_v40  ;;  %v3374_v27 = vld [vmem:[%s5658_s12 + $0x320] sm:$0xff]  ;;  %v3376_v48 = vld [vmem:[%s5658_s12 + $0x328] sm:$0xff] }
 0x3ef   : > { %3337 = vst [vmem:[%s6103_s21 + $0x4f8] sm:$0xff] %v3336_v0  ;;  %3339 = vst [vmem:[%s6103_s21 + $0x500] sm:$0xff] %v3338_v2  ;;  %v3378_v58 = vld [vmem:[%s5658_s12 + $0x330] sm:$0xff]  ;;  %v3380_v53 = vld [vmem:[%s5658_s12 + $0x338] sm:$0xff] }
 0x3f0   : > { %3341 = vst [vmem:[%s6103_s21 + $0x508] sm:$0xff] %v3340_v50  ;;  %3343 = vst [vmem:[%s6103_s21 + $0x540] sm:$0xff] %v3342_v43  ;;  %v3382_v30 = vld [vmem:[%s5658_s12 + $0x340] sm:$0xff]  ;;  %v3384_v1 = vld [vmem:[%s5658_s12 + $0x348] sm:$0xff] }
 0x3f1   : > { %3345 = vst [vmem:[%s6103_s21 + $0x548] sm:$0xff] %v3344_v6  ;;  %3347 = vst [vmem:[%s6103_s21 + $0x550] sm:$0xff] %v3346_v28  ;;  %v3386_v51 = vld [vmem:[%s5658_s12 + $0x350] sm:$0xff]  ;;  %v3388_v41 = vld [vmem:[%s5658_s12 + $0x358] sm:$0xff] }
 0x3f2   : > { %3349 = vst [vmem:[%s6103_s21 + $0x558] sm:$0xff] %v3348_v56  ;;  %3351 = vst [vmem:[%s6103_s21 + $0x560] sm:$0xff] %v3350_v49  ;;  %v3390_v12 = vld [vmem:[%s5658_s12 + $0x360] sm:$0xff]  ;;  %v3392_v31 = vld [vmem:[%s5658_s12 + $0x368] sm:$0xff] }
 0x3f3   : > { %3353 = vst [vmem:[%s6103_s21 + $0x568] sm:$0xff] %v3352_v46  ;;  %3355 = vst [vmem:[%s6103_s21 + $0x5a0] sm:$0xff] %v3354_v45  ;;  %v3394_v61 = vld [vmem:[%s5658_s12 + $0x370] sm:$0xff]  ;;  %v3396_v5 = vld [vmem:[%s5658_s12 + $0x378] sm:$0xff] }
 0x3f4   : > { %3357 = vst [vmem:[%s6103_s21 + $0x5a8] sm:$0xff] %v3356_v22  ;;  %3359 = vst [vmem:[%s6103_s21 + $0x5b0] sm:$0xff] %v3358_v34  ;;  %v3398_v33 = vld [vmem:[%s5658_s12 + $0x380] sm:$0xff]  ;;  %v3400_v20 = vld [vmem:[%s5658_s12 + $0x388] sm:$0xff] }
 0x3f5   : > { %3361 = vst [vmem:[%s6103_s21 + $0x5b8] sm:$0xff] %v3360_v9  ;;  %3363 = vst [vmem:[%s6103_s21 + $0x5c0] sm:$0xff] %v3362_v19  ;;  %v3402_v54 = vld [vmem:[%s5658_s12 + $0x390] sm:$0xff]  ;;  %v3404_v11 = vld [vmem:[%s5658_s12 + $0x398] sm:$0xff] }
 0x3f6   : > { %3365 = vst [vmem:[%s6103_s21 + $0x5c8] sm:$0xff] %v3364_v13  ;;  %3367 = vst [vmem:[%s6103_s21 + $0x600] sm:$0xff] %v3366_v17  ;;  %v3406_v60 = vld [vmem:[%s5658_s12 + $0x3a0] sm:$0xff]  ;;  %v3408_v39 = vld [vmem:[%s5658_s12 + $0x3a8] sm:$0xff] }
 0x3f7   : > { %3369 = vst [vmem:[%s6103_s21 + $0x608] sm:$0xff] %v3368_v44  ;;  %3371 = vst [vmem:[%s6103_s21 + $0x610] sm:$0xff] %v3370_v35  ;;  %v3410_v38 = vld [vmem:[%s5658_s12 + $0x3b0] sm:$0xff]  ;;  %v3412_v42 = vld [vmem:[%s5658_s12 + $0x3b8] sm:$0xff] }
 0x3f8   : > { %3373 = vst [vmem:[%s6103_s21 + $0x618] sm:$0xff] %v3372_v10  ;;  %3375 = vst [vmem:[%s6103_s21 + $0x620] sm:$0xff] %v3374_v27  ;;  %v3414_v18 = vld [vmem:[%s5658_s12 + $0x3c0] sm:$0xff]  ;;  %v3416_v32 = vld [vmem:[%s5658_s12 + $0x3c8] sm:$0xff] }
 0x3f9   : > { %3377 = vst [vmem:[%s6103_s21 + $0x628] sm:$0xff] %v3376_v48  ;;  %3379 = vst [vmem:[%s6103_s21 + $0x660] sm:$0xff] %v3378_v58  ;;  %v3418_v55 = vld [vmem:[%s5658_s12 + $0x3d0] sm:$0xff]  ;;  %v3420_v21 = vld [vmem:[%s5658_s12 + $0x3d8] sm:$0xff] }
 0x3fa   : > { %3381 = vst [vmem:[%s6103_s21 + $0x668] sm:$0xff] %v3380_v53  ;;  %3383 = vst [vmem:[%s6103_s21 + $0x670] sm:$0xff] %v3382_v30  ;;  %v3422_v57 = vld [vmem:[%s5658_s12 + $0x3e0] sm:$0xff]  ;;  %v3424_v15 = vld [vmem:[%s5658_s12 + $0x3e8] sm:$0xff] }
 0x3fb   : > { %3385 = vst [vmem:[%s6103_s21 + $0x678] sm:$0xff] %v3384_v1  ;;  %3387 = vst [vmem:[%s6103_s21 + $0x680] sm:$0xff] %v3386_v51  ;;  %v3426_v36 = vld [vmem:[%s5658_s12 + $0x3f0] sm:$0xff]  ;;  %v3428_v4 = vld [vmem:[%s5658_s12 + $0x3f8] sm:$0xff] }
 0x3fc   : > { %3389 = vst [vmem:[%s6103_s21 + $0x688] sm:$0xff] %v3388_v41  ;;  %3391 = vst [vmem:[%s6103_s21 + $0x6c0] sm:$0xff] %v3390_v12  ;;  %v3430_v14 = vld [vmem:[%s5658_s12 + $0x400] sm:$0xff]  ;;  %v3432_v24 = vld [vmem:[%s5658_s12 + $0x408] sm:$0xff] }
 0x3fd   : > { %3393 = vst [vmem:[%s6103_s21 + $0x6c8] sm:$0xff] %v3392_v31  ;;  %3395 = vst [vmem:[%s6103_s21 + $0x6d0] sm:$0xff] %v3394_v61  ;;  %v3434_v47 = vld [vmem:[%s5658_s12 + $0x410] sm:$0xff]  ;;  %v3436_v63 = vld [vmem:[%s5658_s12 + $0x418] sm:$0xff] }
 0x3fe   : > { %3397 = vst [vmem:[%s6103_s21 + $0x6d8] sm:$0xff] %v3396_v5  ;;  %3399 = vst [vmem:[%s6103_s21 + $0x6e0] sm:$0xff] %v3398_v33  ;;  %v3438_v16 = vld [vmem:[%s5658_s12 + $0x420] sm:$0xff]  ;;  %v3440_v59 = vld [vmem:[%s5658_s12 + $0x428] sm:$0xff] }
 0x3ff   : > { %3401 = vst [vmem:[%s6103_s21 + $0x6e8] sm:$0xff] %v3400_v20  ;;  %3403 = vst [vmem:[%s6103_s21 + $0x720] sm:$0xff] %v3402_v54  ;;  %v3442_v29 = vld [vmem:[%s5658_s12 + $0x430] sm:$0xff]  ;;  %v3444_v62 = vld [vmem:[%s5658_s12 + $0x438] sm:$0xff] }
 0x400   : > { %3405 = vst [vmem:[%s6103_s21 + $0x728] sm:$0xff] %v3404_v11  ;;  %3407 = vst [vmem:[%s6103_s21 + $0x730] sm:$0xff] %v3406_v60  ;;  %v3446_v23 = vld [vmem:[%s5658_s12 + $0x440] sm:$0xff]  ;;  %v3448_v3 = vld [vmem:[%s5658_s12 + $0x448] sm:$0xff] }
 0x401   : > { %3409 = vst [vmem:[%s6103_s21 + $0x738] sm:$0xff] %v3408_v39  ;;  %3411 = vst [vmem:[%s6103_s21 + $0x740] sm:$0xff] %v3410_v38  ;;  %v3450_v25 = vld [vmem:[%s5658_s12 + $0x450] sm:$0xff]  ;;  %v3452_v52 = vld [vmem:[%s5658_s12 + $0x458] sm:$0xff] }
 0x402   : > { %3413 = vst [vmem:[%s6103_s21 + $0x748] sm:$0xff] %v3412_v42  ;;  %3415 = vst [vmem:[%s6103_s21 + $0x780] sm:$0xff] %v3414_v18  ;;  %v3454_v7 = vld [vmem:[%s5658_s12 + $0x460] sm:$0xff]  ;;  %v3456_v8 = vld [vmem:[%s5658_s12 + $0x468] sm:$0xff] }
 0x403   : > { %3417 = vst [vmem:[%s6103_s21 + $0x788] sm:$0xff] %v3416_v32  ;;  %3419 = vst [vmem:[%s6103_s21 + $0x790] sm:$0xff] %v3418_v55  ;;  %v3458_v37 = vld [vmem:[%s5658_s12 + $0x470] sm:$0xff]  ;;  %v3460_v26 = vld [vmem:[%s5658_s12 + $0x478] sm:$0xff] }
 0x404   : > { %3421 = vst [vmem:[%s6103_s21 + $0x798] sm:$0xff] %v3420_v21  ;;  %3423 = vst [vmem:[%s6103_s21 + $0x7a0] sm:$0xff] %v3422_v57  ;;  %v3462_v40 = vld [vmem:[%s5658_s12 + $0x480] sm:$0xff]  ;;  %v3464_v0 = vld [vmem:[%s5658_s12 + $0x488] sm:$0xff] }
 0x405   : > { %3425 = vst [vmem:[%s6103_s21 + $0x7a8] sm:$0xff] %v3424_v15  ;;  %3427 = vst [vmem:[%s6103_s21 + $0x7e0] sm:$0xff] %v3426_v36  ;;  %v3466_v2 = vld [vmem:[%s5658_s12 + $0x490] sm:$0xff]  ;;  %v3468_v50 = vld [vmem:[%s5658_s12 + $0x498] sm:$0xff] }
 0x406   : > { %3429 = vst [vmem:[%s6103_s21 + $0x7e8] sm:$0xff] %v3428_v4  ;;  %3431 = vst [vmem:[%s6103_s21 + $0x7f0] sm:$0xff] %v3430_v14  ;;  %v3470_v43 = vld [vmem:[%s5658_s12 + $0x4a0] sm:$0xff]  ;;  %v3472_v6 = vld [vmem:[%s5658_s12 + $0x4a8] sm:$0xff] }
 0x407   : > { %3433 = vst [vmem:[%s6103_s21 + $0x7f8] sm:$0xff] %v3432_v24  ;;  %3435 = vst [vmem:[%s6103_s21 + $0x800] sm:$0xff] %v3434_v47 }
 0x408   : > { %3437 = vst [vmem:[%s6103_s21 + $0x808] sm:$0xff] %v3436_v63  ;;  %3439 = vst [vmem:[%s6103_s21 + $0x840] sm:$0xff] %v3438_v16 }
 0x409   : > { %3441 = vst [vmem:[%s6103_s21 + $0x848] sm:$0xff] %v3440_v59  ;;  %3443 = vst [vmem:[%s6103_s21 + $0x850] sm:$0xff] %v3442_v29 }
 0x40a   : > { %3445 = vst [vmem:[%s6103_s21 + $0x858] sm:$0xff] %v3444_v62  ;;  %3447 = vst [vmem:[%s6103_s21 + $0x860] sm:$0xff] %v3446_v23 }
 0x40b   : > { %3449 = vst [vmem:[%s6103_s21 + $0x868] sm:$0xff] %v3448_v3  ;;  %3451 = vst [vmem:[%s6103_s21 + $0x8a0] sm:$0xff] %v3450_v25 }
 0x40c   : > { %3453 = vst [vmem:[%s6103_s21 + $0x8a8] sm:$0xff] %v3452_v52  ;;  %3455 = vst [vmem:[%s6103_s21 + $0x8b0] sm:$0xff] %v3454_v7 }
 0x40d   : > { %3457 = vst [vmem:[%s6103_s21 + $0x8b8] sm:$0xff] %v3456_v8  ;;  %3459 = vst [vmem:[%s6103_s21 + $0x8c0] sm:$0xff] %v3458_v37 }
 0x40e   : > { %3461 = vst [vmem:[%s6103_s21 + $0x8c8] sm:$0xff] %v3460_v26  ;;  %3463 = vst [vmem:[%s6103_s21 + $0x900] sm:$0xff] %v3462_v40 }
 0x40f   : > { %3465 = vst [vmem:[%s6103_s21 + $0x908] sm:$0xff] %v3464_v0  ;;  %3467 = vst [vmem:[%s6103_s21 + $0x910] sm:$0xff] %v3466_v2 }
 0x410   : > { %3469 = vst [vmem:[%s6103_s21 + $0x918] sm:$0xff] %v3468_v50  ;;  %3471 = vst [vmem:[%s6103_s21 + $0x920] sm:$0xff] %v3470_v43 }
 0x411   : > { %3473 = vst [vmem:[%s6103_s21 + $0x928] sm:$0xff] %v3472_v6 }
 0x412 PF: > { %p10_p11 = scmp.ge.s32.totalorder %s4072_s16, 4   ;;  %s6644_s12 = smov %s4026_s13 }
 0x413   : > { %s6645_s13 = smov %s4082_s19  ;;  %s6646_s14 = smov %s4072_s16 }
 0x414   :  { %12 = sbr.rel (!%p10_p11) target bundleno = 2 (0x2), region = 116 }

</bundles_post_ra>
